<compile_context>
chip_gen: v7x
topology: tpu7x:2x2x1
jax: 0.10.0
libtpu: 0.0.40
codegen_flags: <defaults>
</compile_context>

<pallas_src>
import functools

import jax
import jax.numpy as jnp
from jax.experimental import pallas as pl
from jax.experimental.pallas import tpu as pltpu


def _layernorm(v, g, b, eps=1e-5):
    mu = jnp.mean(v, axis=-1, keepdims=True)
    var = jnp.mean(jnp.square(v - mu), axis=-1, keepdims=True)
    return (v - mu) * jax.lax.rsqrt(var + eps) * g + b


def _layer_kernel(
    seq_ref,                     # (T, C)      f32   assembled [clip-proj ; prefix] tokens
    mask_ref,                    # (T, T)      f32   block-diagonal additive mask (0 / -1e30)
    g1_ref, be1_ref,             # (1, 1, C)   f32   layernorm1 gamma / beta
    wqkv_ref,                    # (1, C, 3C)  bf16  fused [Q|K|V] projection, (in,out)
    wp_ref,                      # (1, C, C)   bf16  output projection, (in,out)
    bp_ref,                      # (1, 1, C)   f32   output projection bias
    g2_ref, be2_ref,             # (1, 1, C)   f32   layernorm2 gamma / beta
    w1_ref,                      # (1, C, Hm)  bf16  mlp fc1, (in,out)
    b1_ref,                      # (1, 1, Hm)  f32
    w2_ref,                      # (1, Hm, C)  bf16  mlp fc2, (in,out)
    b2_ref,                      # (1, 1, C)   f32
    o_ref,                       # (B, PL, C)        output (written on last step only)
    x_scr,                       # (T, C) f32        running sequence (persists across layers)
    ctx_scr,                     # (T, C) f32        per-head attention contexts
    *, num_heads, batch, clip_len, prefix_len,
):
    layer = pl.program_id(0)
    T, C = x_scr.shape
    hd = C // num_heads
    scale = float(hd) ** -0.5
    N = clip_len + prefix_len

    @pl.when(layer == 0)
    def _():
        x_scr[...] = seq_ref[...]

    x = x_scr[...]                                             # (T, C) f32

    # ---- LayerNorm1 + multi-head self-attention ----
    xn = _layernorm(x, g1_ref[0], be1_ref[0])
    # One wide bf16 MXU push for all heads of Q, K and V.
    qkv = jnp.dot(xn.astype(jnp.bfloat16), wqkv_ref[0],
                  preferred_element_type=jnp.float32)          # (T, 3C) f32
    for h in range(num_heads):
        q_h = qkv[:, h * hd:(h + 1) * hd]                      # (T, hd)
        k_h = qkv[:, C + h * hd:C + (h + 1) * hd]
        v_h = qkv[:, 2 * C + h * hd:2 * C + (h + 1) * hd]
        # (T, T) scores; contract over the last dim of both (no transpose materialized).
        s = jax.lax.dot_general(q_h, k_h, (((1,), (1,)), ((), ())),
                                preferred_element_type=jnp.float32) * scale
        s = s + mask_ref[...]                                  # mask BEFORE the row max
        s = s - jnp.max(s, axis=-1, keepdims=True)
        p = jnp.exp(s)
        p = p * pl.reciprocal(jnp.sum(p, axis=-1, keepdims=True), approx=True)
        # Store this head's context into its 16-lane block of the (T, C) buffer.
        ctx_scr[:, h * hd:(h + 1) * hd] = jnp.dot(
            p, v_h, preferred_element_type=jnp.float32)
    # Single full-width output projection over all heads.
    attn = jnp.dot(ctx_scr[...].astype(jnp.bfloat16), wp_ref[0],
                   preferred_element_type=jnp.float32) + bp_ref[0]
    x = x + attn

    # ---- LayerNorm2 + MLP (relu) ----
    xn2 = _layernorm(x, g2_ref[0], be2_ref[0])
    h1 = jnp.dot(xn2.astype(jnp.bfloat16), w1_ref[0],
                 preferred_element_type=jnp.float32) + b1_ref[0]
    h1 = jnp.maximum(h1, 0.0)
    x = x + jnp.dot(h1.astype(jnp.bfloat16), w2_ref[0],
                    preferred_element_type=jnp.float32) + b2_ref[0]

    x_scr[...] = x

    @pl.when(layer == pl.num_programs(0) - 1)
    def _():
        for b in range(batch):   # 8-row, sublane-aligned, lane-dense stores
            o_ref[b, :, :] = x[b * N + clip_len:(b + 1) * N, :].astype(o_ref.dtype)


def pack_mapper_params(params):
    """One-time host-side weight packing.  Call ONCE and reuse across forward calls."""
    prefix = params["prefix_const"]
    _, C = prefix.shape
    layers = params["layers"]
    L = len(layers)

    def st_mat(fn):              # bf16 weights: halve DMA/VMEM, native MXU bf16 path
        return jnp.stack([fn(p) for p in layers]).astype(jnp.bfloat16)

    def st_vec(fn):              # biases / norm params stay f32
        return jnp.stack([fn(p) for p in layers]).astype(jnp.float32).reshape(L, 1, -1)

    return {
        "lin_wT": params["lin_w"].T,                # (dim_clip, CL*C) — used in XLA prologue
        "lin_b": params["lin_b"],
        "prefix_const": prefix,                     # (PL, C)
        "g1": st_vec(lambda p: p["g1"]), "be1": st_vec(lambda p: p["b1"]),
        # Fused [Q | K | V] projection in (in, out) layout.  wkv.T is already [K | V] with
        # head h occupying lanes h*hd:(h+1)*hd of each C-wide section (matches torch reshape).
        "wqkv": st_mat(lambda p: jnp.concatenate([p["wq"].T, p["wkv"].T], axis=1)),
        "wpT": st_mat(lambda p: p["wp"].T),
        "bp": st_vec(lambda p: p["bp"]),
        "g2": st_vec(lambda p: p["g2"]), "be2": st_vec(lambda p: p["b2"]),
        "w1T": st_mat(lambda p: p["w1"].T), "b1": st_vec(lambda p: p["bm1"]),
        "w2T": st_mat(lambda p: p["w2"].T), "b2": st_vec(lambda p: p["bm2"]),
    }


@functools.partial(jax.jit, static_argnames=("num_heads",))
def transformer_mapper_fwd(x_clip, packed, *, num_heads):
    B = x_clip.shape[0]
    PL, C = packed["prefix_const"].shape
    CL = packed["lin_wT"].shape[1] // C
    L = packed["g1"].shape[0]
    Hm = packed["b1"].shape[2]
    N = CL + PL
    T = B * N

    # ---- prologue in plain XLA: CLIP linear + prefix concat (token-major (T, C)) ----
    proj = (x_clip @ packed["lin_wT"] + packed["lin_b"]).reshape(B, CL, C)
    seq = jnp.concatenate(
        [proj, jnp.broadcast_to(packed["prefix_const"][None], (B, PL, C))],
        axis=1).reshape(T, C).astype(jnp.float32)

    # Block-diagonal additive mask: 0 within a batch row's tokens, -1e30 across rows.
    tok_b = jnp.arange(T, dtype=jnp.int32) // N
    mask = jnp.where(tok_b[:, None] == tok_b[None, :], 0.0, -1e30).astype(jnp.float32)

    kernel = functools.partial(
        _layer_kernel, num_heads=num_heads, batch=B, clip_len=CL, prefix_len=PL)

    grid_spec = pltpu.PrefetchScalarGridSpec(
        num_scalar_prefetch=0,
        grid=(L,),
        in_specs=[
            pl.BlockSpec((T, C), lambda l: (0, 0)),              # seq (resident)
            pl.BlockSpec((T, T), lambda l: (0, 0)),              # mask (resident)
            pl.BlockSpec((1, 1, C), lambda l: (l, 0, 0)),        # g1
            pl.BlockSpec((1, 1, C), lambda l: (l, 0, 0)),        # be1
            pl.BlockSpec((1, C, 3 * C), lambda l: (l, 0, 0)),    # wqkv (double-buffered)
            pl.BlockSpec((1, C, C), lambda l: (l, 0, 0)),        # wpT
            pl.BlockSpec((1, 1, C), lambda l: (l, 0, 0)),        # bp
            pl.BlockSpec((1, 1, C), lambda l: (l, 0, 0)),        # g2
            pl.BlockSpec((1, 1, C), lambda l: (l, 0, 0)),        # be2
            pl.BlockSpec((1, C, Hm), lambda l: (l, 0, 0)),       # w1T
            pl.BlockSpec((1, 1, Hm), lambda l: (l, 0, 0)),       # b1
            pl.BlockSpec((1, Hm, C), lambda l: (l, 0, 0)),       # w2T
            pl.BlockSpec((1, 1, C), lambda l: (l, 0, 0)),        # b2
        ],
        out_specs=pl.BlockSpec((B, PL, C), lambda l: (0, 0, 0)),
        scratch_shapes=[pltpu.VMEM((T, C), jnp.float32),         # running sequence
                        pltpu.VMEM((T, C), jnp.float32)],        # attention contexts
    )

    # NOTE: footprint here is well under the default scoped VMEM on v5e/v6e/v7x; for
    # realistic ClipCap sizes set pltpu.CompilerParams(vmem_limit_bytes=...) explicitly.
    return pl.pallas_call(
        kernel,
        out_shape=jax.ShapeDtypeStruct((B, PL, C), x_clip.dtype),
        grid_spec=grid_spec,
        compiler_params=pltpu.CompilerParams(
            dimension_semantics=("arbitrary",)),   # layer axis carries the sequence
    )(seq, mask,
      packed["g1"], packed["be1"], packed["wqkv"], packed["wpT"], packed["bp"],
      packed["g2"], packed["be2"], packed["w1T"], packed["b1"],
      packed["w2T"], packed["b2"])


def mapper_reference(x_clip, params, num_heads):
    """Pure-JAX mirror of TransformerMapper.forward (PyTorch semantics)."""
    def ln(v, g, b):
        mu = v.mean(-1, keepdims=True)
        var = ((v - mu) ** 2).mean(-1, keepdims=True)
        return (v - mu) / jnp.sqrt(var + 1e-5) * g + b

    prefix_const = params["prefix_const"]
    PL, C = prefix_const.shape
    B = x_clip.shape[0]
    CL = params["lin_w"].shape[0] // C
    H = num_heads
    hd = C // H
    N = CL + PL

    proj = x_clip @ params["lin_w"].T + params["lin_b"]
    seq = jnp.concatenate(
        [proj.reshape(B, CL, C),
         jnp.broadcast_to(prefix_const[None], (B, PL, C))], axis=1)

    for p in params["layers"]:
        xn = ln(seq, p["g1"], p["b1"])
        q = (xn @ p["wq"].T).reshape(B, N, H, hd)
        kv = (xn @ p["wkv"].T).reshape(B, N, 2, H, hd)
        k, v = kv[:, :, 0], kv[:, :, 1]
        att = jnp.einsum("bnhd,bmhd->bnmh", q, k) * (float(hd) ** -0.5)
        att = jax.nn.softmax(att, axis=2)
        o = jnp.einsum("bnmh,bmhd->bnhd", att, v).reshape(B, N, C)
        seq = seq + o @ p["wp"].T + p["bp"]
        xn2 = ln(seq, p["g2"], p["b2"])
        hmid = jnp.maximum(xn2 @ p["w1"].T + p["bm1"], 0.0)
        seq = seq + hmid @ p["w2"].T + p["bm2"]
    return seq[:, CL:]


if __name__ == "__main__":
    # Small-but-representative TransformerMapper config:
    #   dim_clip=64, dim_embedding=128 (lane-dense), clip_length=8, prefix_length=8,
    #   num_heads=8 (hard-wired by TransformerMapper), num_layers=2 (small test),
    #   mlp_ratio=2.0 (Transformer default), bias-free q/kv projections, relu MLP,
    #   dropout=0.0, no mask, self-attention (enc_dec=False).
    B, DIM_CLIP, C = 2, 64, 128
    CL, PL = 8, 8
    H, L = 8, 2
    Hm = int(C * 2.0)

    key = jax.random.PRNGKey(0)
    keys = iter(jax.random.split(key, 64))

    def nrm(shape, s=0.05):
        return s * jax.random.normal(next(keys), shape, jnp.float32)

    params = {
        "lin_w": nrm((CL * C, DIM_CLIP)),
        "lin_b": nrm((CL * C,)),
        "prefix_const": jax.random.normal(next(keys), (PL, C), jnp.float32),
        "layers": [],
    }
    for _ in range(L):
        params["layers"].append({
            "g1": 1.0 + nrm((C,)), "b1": nrm((C,)),
            "wq": nrm((C, C)), "wkv": nrm((2 * C, C)),
            "wp": nrm((C, C)), "bp": nrm((C,)),
            "g2": 1.0 + nrm((C,)), "b2": nrm((C,)),
            "w1": nrm((Hm, C)), "bm1": nrm((Hm,)),
            "w2": nrm((C, Hm)), "bm2": nrm((C,)),
        })

    x_clip = jax.random.normal(jax.random.PRNGKey(1), (B, DIM_CLIP), jnp.float32)

    packed = pack_mapper_params(params)     # one-time packing, hoisted out of the fwd path
    out = transformer_mapper_fwd(x_clip, packed, num_heads=H)
    out = jax.block_until_ready(out)

    ref = mapper_reference(x_clip, params, num_heads=H)
    assert out.shape == (B, PL, C)
    # Tolerance covers bf16 weights/activations on the MXU (f32 accumulation) and the EUP
    # approximate-reciprocal softmax; layout/semantic bugs would be O(1) errors.
    err = float(jnp.max(jnp.abs(out - ref)))
    assert jnp.allclose(out, ref, atol=3e-2, rtol=3e-2), f"mismatch vs ref, max|err|={err}"
    print("KERNEL_OK")
</pallas_src>

<mosaic_0001>
module attributes {stable_mosaic.version = 11 : i64} {
  func.func @_layer_kernel(%arg0: i32, %arg1: memref<32x128xf32, #tpu.memory_space<vmem>>, %arg2: memref<32x32xf32, #tpu.memory_space<vmem>>, %arg3: memref<1x1x128xf32, #tpu.memory_space<vmem>>, %arg4: memref<1x1x128xf32, #tpu.memory_space<vmem>>, %arg5: memref<1x128x384xbf16, #tpu.memory_space<vmem>>, %arg6: memref<1x128x128xbf16, #tpu.memory_space<vmem>>, %arg7: memref<1x1x128xf32, #tpu.memory_space<vmem>>, %arg8: memref<1x1x128xf32, #tpu.memory_space<vmem>>, %arg9: memref<1x1x128xf32, #tpu.memory_space<vmem>>, %arg10: memref<1x128x256xbf16, #tpu.memory_space<vmem>>, %arg11: memref<1x1x256xf32, #tpu.memory_space<vmem>>, %arg12: memref<1x256x128xbf16, #tpu.memory_space<vmem>>, %arg13: memref<1x1x128xf32, #tpu.memory_space<vmem>>, %arg14: memref<2x8x128xf32, #tpu.memory_space<vmem>>, %arg15: memref<32x128xf32, #tpu.memory_space<vmem>>, %arg16: memref<32x128xf32, #tpu.memory_space<vmem>>) attributes {dimension_semantics = [#tpu.dimension_semantics<arbitrary>], iteration_bounds = array<i64: 2>, scalar_prefetch = 0 : i64, scratch_operands = 2 : i64, tpu.core_type = #tpu.core_type<tc>, window_params = [{pipeline_mode = #tpu.pipeline_mode<synchronous>, transform_indices = @transform_0, window_bounds = array<i64: 32, 128>}, {pipeline_mode = #tpu.pipeline_mode<synchronous>, transform_indices = @transform_1, window_bounds = array<i64: 32, 32>}, {transform_indices = @transform_2, window_bounds = array<i64: 1, 1, 128>}, {transform_indices = @transform_3, window_bounds = array<i64: 1, 1, 128>}, {transform_indices = @transform_4, window_bounds = array<i64: 1, 128, 384>}, {transform_indices = @transform_5, window_bounds = array<i64: 1, 128, 128>}, {transform_indices = @transform_6, window_bounds = array<i64: 1, 1, 128>}, {transform_indices = @transform_7, window_bounds = array<i64: 1, 1, 128>}, {transform_indices = @transform_8, window_bounds = array<i64: 1, 1, 128>}, {transform_indices = @transform_9, window_bounds = array<i64: 1, 128, 256>}, {transform_indices = @transform_10, window_bounds = array<i64: 1, 1, 256>}, {transform_indices = @transform_11, window_bounds = array<i64: 1, 256, 128>}, {transform_indices = @transform_12, window_bounds = array<i64: 1, 1, 128>}, {pipeline_mode = #tpu.pipeline_mode<synchronous>, transform_indices = @transform_13, window_bounds = array<i64: 2, 8, 128>}]} {
    %c0_i32 = arith.constant 0 : i32
    %0 = arith.cmpi eq, %arg0, %c0_i32 : i32
    %1 = arith.extui %0 : i1 to i32
    %c0_i32_0 = arith.constant 0 : i32
    %2 = arith.cmpi ne, %1, %c0_i32_0 : i32
    scf.if %2 {
      %c0_119 = arith.constant 0 : index
      %c0_120 = arith.constant 0 : index
      %253 = vector.load %arg1[%c0_119, %c0_120] : memref<32x128xf32, #tpu.memory_space<vmem>>, vector<32x128xf32>
      %c0_121 = arith.constant 0 : index
      %c0_122 = arith.constant 0 : index
      %254 = vector.load %arg15[%c0_121, %c0_122] : memref<32x128xf32, #tpu.memory_space<vmem>>, vector<32x128xf32>
      tpu.vector_store %arg15[%c0_121, %c0_122], %253 {strides = array<i32>} : memref<32x128xf32, #tpu.memory_space<vmem>>, vector<32x128xf32>,
    } else {
    }
    %c0 = arith.constant 0 : index
    %c0_1 = arith.constant 0 : index
    %3 = vector.load %arg15[%c0, %c0_1] : memref<32x128xf32, #tpu.memory_space<vmem>>, vector<32x128xf32>
    %c0_2 = arith.constant 0 : index
    %c0_3 = arith.constant 0 : index
    %c0_4 = arith.constant 0 : index
    %4 = vector.load %arg3[%c0_2, %c0_3, %c0_4] : memref<1x1x128xf32, #tpu.memory_space<vmem>>, vector<1x1x128xf32>
    %5 = vector.shape_cast %4 : vector<1x1x128xf32> to vector<1x128xf32>
    %c0_5 = arith.constant 0 : index
    %c0_6 = arith.constant 0 : index
    %c0_7 = arith.constant 0 : index
    %6 = vector.load %arg4[%c0_5, %c0_6, %c0_7] : memref<1x1x128xf32, #tpu.memory_space<vmem>>, vector<1x1x128xf32>
    %7 = vector.shape_cast %6 : vector<1x1x128xf32> to vector<1x128xf32>
    %cst = arith.constant dense<0.000000e+00> : vector<32xf32>
    %8 = vector.multi_reduction <add>, %3, %cst [1] : vector<32x128xf32> to vector<32xf32>
    %9 = vector.shape_cast %8 : vector<32xf32> to vector<32x1xf32>
    %cst_8 = arith.constant 1.280000e+02 : f32
    %10 = vector.broadcast %cst_8 : f32 to vector<32x1xf32>
    %11 = arith.divf %9, %10 : vector<32x1xf32>
    %12 = vector.broadcast %11 : vector<32x1xf32> to vector<32x128xf32>
    %13 = arith.subf %3, %12 : vector<32x128xf32>
    %14 = arith.mulf %13, %13 : vector<32x128xf32>
    %cst_9 = arith.constant dense<0.000000e+00> : vector<32xf32>
    %15 = vector.multi_reduction <add>, %14, %cst_9 [1] : vector<32x128xf32> to vector<32xf32>
    %16 = vector.shape_cast %15 : vector<32xf32> to vector<32x1xf32>
    %cst_10 = arith.constant 1.280000e+02 : f32
    %17 = vector.broadcast %cst_10 : f32 to vector<32x1xf32>
    %18 = arith.divf %16, %17 : vector<32x1xf32>
    %19 = vector.broadcast %11 : vector<32x1xf32> to vector<32x128xf32>
    %20 = arith.subf %3, %19 : vector<32x128xf32>
    %cst_11 = arith.constant 9.99999974E-6 : f32
    %21 = vector.broadcast %cst_11 : f32 to vector<32x1xf32>
    %22 = arith.addf %18, %21 : vector<32x1xf32>
    %23 = math.rsqrt %22 : vector<32x1xf32>
    %24 = vector.broadcast %23 : vector<32x1xf32> to vector<32x128xf32>
    %25 = arith.mulf %20, %24 : vector<32x128xf32>
    %26 = vector.broadcast %5 : vector<1x128xf32> to vector<32x128xf32>
    %27 = arith.mulf %25, %26 : vector<32x128xf32>
    %28 = vector.broadcast %7 : vector<1x128xf32> to vector<32x128xf32>
    %29 = arith.addf %27, %28 : vector<32x128xf32>
    %30 = arith.truncf %29 : vector<32x128xf32> to vector<32x128xbf16>
    %c0_12 = arith.constant 0 : index
    %c0_13 = arith.constant 0 : index
    %c0_14 = arith.constant 0 : index
    %31 = vector.load %arg5[%c0_12, %c0_13, %c0_14] : memref<1x128x384xbf16, #tpu.memory_space<vmem>>, vector<1x128x384xbf16>
    %32 = vector.shape_cast %31 : vector<1x128x384xbf16> to vector<128x384xbf16>
    %cst_15 = arith.constant dense<0.000000e+00> : vector<32x384xf32>
    %33 = tpu.matmul %30, %32, %cst_15 {dimension_numbers = #tpu.dot_dimension_numbers<[1], [0], [0], [1], [0, 0, 1, 1], [], []>} : vector<32x128xbf16>, vector<128x384xbf16>, vector<32x384xf32> -> vector<32x384xf32>
    %34 = vector.extract_strided_slice %33 {offsets = [0, 0], sizes = [32, 16], strides = [1, 1]} : vector<32x384xf32> to vector<32x16xf32>
    %35 = vector.extract_strided_slice %33 {offsets = [0, 128], sizes = [32, 16], strides = [1, 1]} : vector<32x384xf32> to vector<32x16xf32>
    %36 = vector.extract_strided_slice %33 {offsets = [0, 256], sizes = [32, 16], strides = [1, 1]} : vector<32x384xf32> to vector<32x16xf32>
    %cst_16 = arith.constant dense<0.000000e+00> : vector<32x32xf32>
    %37 = tpu.matmul %34, %35, %cst_16 {dimension_numbers = #tpu.dot_dimension_numbers<[1], [1], [0], [0], [0, 0, 1, 0], [], []>} : vector<32x16xf32>, vector<32x16xf32>, vector<32x32xf32> -> vector<32x32xf32>
    %cst_17 = arith.constant 2.500000e-01 : f32
    %38 = vector.broadcast %cst_17 : f32 to vector<32x32xf32>
    %39 = arith.mulf %37, %38 : vector<32x32xf32>
    %c0_18 = arith.constant 0 : index
    %c0_19 = arith.constant 0 : index
    %40 = vector.load %arg2[%c0_18, %c0_19] : memref<32x32xf32, #tpu.memory_space<vmem>>, vector<32x32xf32>
    %41 = arith.addf %39, %40 : vector<32x32xf32>
    %cst_20 = arith.constant dense<0xFF800000> : vector<32xf32>
    %42 = vector.multi_reduction <maximumf>, %41, %cst_20 [1] : vector<32x32xf32> to vector<32xf32>
    %43 = vector.shape_cast %42 : vector<32xf32> to vector<32x1xf32>
    %44 = vector.broadcast %43 : vector<32x1xf32> to vector<32x32xf32>
    %45 = arith.subf %41, %44 : vector<32x32xf32>
    %46 = math.exp %45 : vector<32x32xf32>
    %cst_21 = arith.constant dense<0.000000e+00> : vector<32xf32>
    %47 = vector.multi_reduction <add>, %46, %cst_21 [1] : vector<32x32xf32> to vector<32xf32>
    %48 = vector.shape_cast %47 : vector<32xf32> to vector<32x1xf32>
    %49 = tpu.reciprocal %48 {approx = true} : vector<32x1xf32> -> vector<32x1xf32>
    %50 = vector.broadcast %49 : vector<32x1xf32> to vector<32x32xf32>
    %51 = arith.mulf %46, %50 : vector<32x32xf32>
    %cst_22 = arith.constant dense<0.000000e+00> : vector<32x16xf32>
    %52 = tpu.matmul %51, %36, %cst_22 {dimension_numbers = #tpu.dot_dimension_numbers<[1], [0], [0], [1], [0, 0, 1, 1], [], []>} : vector<32x32xf32>, vector<32x16xf32>, vector<32x16xf32> -> vector<32x16xf32>
    %c0_23 = arith.constant 0 : index
    %c0_24 = arith.constant 0 : index
    %53 = vector.load %arg16[%c0_23, %c0_24] : memref<32x128xf32, #tpu.memory_space<vmem>>, vector<32x16xf32>
    tpu.vector_store %arg16[%c0_23, %c0_24], %52 {strides = array<i32>} : memref<32x128xf32, #tpu.memory_space<vmem>>, vector<32x16xf32>,
    %54 = vector.extract_strided_slice %33 {offsets = [0, 16], sizes = [32, 16], strides = [1, 1]} : vector<32x384xf32> to vector<32x16xf32>
    %55 = vector.extract_strided_slice %33 {offsets = [0, 144], sizes = [32, 16], strides = [1, 1]} : vector<32x384xf32> to vector<32x16xf32>
    %56 = vector.extract_strided_slice %33 {offsets = [0, 272], sizes = [32, 16], strides = [1, 1]} : vector<32x384xf32> to vector<32x16xf32>
    %cst_25 = arith.constant dense<0.000000e+00> : vector<32x32xf32>
    %57 = tpu.matmul %54, %55, %cst_25 {dimension_numbers = #tpu.dot_dimension_numbers<[1], [1], [0], [0], [0, 0, 1, 0], [], []>} : vector<32x16xf32>, vector<32x16xf32>, vector<32x32xf32> -> vector<32x32xf32>
    %cst_26 = arith.constant 2.500000e-01 : f32
    %58 = vector.broadcast %cst_26 : f32 to vector<32x32xf32>
    %59 = arith.mulf %57, %58 : vector<32x32xf32>
    %c0_27 = arith.constant 0 : index
    %c0_28 = arith.constant 0 : index
    %60 = vector.load %arg2[%c0_27, %c0_28] : memref<32x32xf32, #tpu.memory_space<vmem>>, vector<32x32xf32>
    %61 = arith.addf %59, %60 : vector<32x32xf32>
    %cst_29 = arith.constant dense<0xFF800000> : vector<32xf32>
    %62 = vector.multi_reduction <maximumf>, %61, %cst_29 [1] : vector<32x32xf32> to vector<32xf32>
    %63 = vector.shape_cast %62 : vector<32xf32> to vector<32x1xf32>
    %64 = vector.broadcast %63 : vector<32x1xf32> to vector<32x32xf32>
    %65 = arith.subf %61, %64 : vector<32x32xf32>
    %66 = math.exp %65 : vector<32x32xf32>
    %cst_30 = arith.constant dense<0.000000e+00> : vector<32xf32>
    %67 = vector.multi_reduction <add>, %66, %cst_30 [1] : vector<32x32xf32> to vector<32xf32>
    %68 = vector.shape_cast %67 : vector<32xf32> to vector<32x1xf32>
    %69 = tpu.reciprocal %68 {approx = true} : vector<32x1xf32> -> vector<32x1xf32>
    %70 = vector.broadcast %69 : vector<32x1xf32> to vector<32x32xf32>
    %71 = arith.mulf %66, %70 : vector<32x32xf32>
    %cst_31 = arith.constant dense<0.000000e+00> : vector<32x16xf32>
    %72 = tpu.matmul %71, %56, %cst_31 {dimension_numbers = #tpu.dot_dimension_numbers<[1], [0], [0], [1], [0, 0, 1, 1], [], []>} : vector<32x32xf32>, vector<32x16xf32>, vector<32x16xf32> -> vector<32x16xf32>
    %c0_32 = arith.constant 0 : index
    %c16 = arith.constant 16 : index
    %73 = vector.load %arg16[%c0_32, %c16] : memref<32x128xf32, #tpu.memory_space<vmem>>, vector<32x16xf32>
    tpu.vector_store %arg16[%c0_32, %c16], %72 {strides = array<i32>} : memref<32x128xf32, #tpu.memory_space<vmem>>, vector<32x16xf32>,
    %74 = vector.extract_strided_slice %33 {offsets = [0, 32], sizes = [32, 16], strides = [1, 1]} : vector<32x384xf32> to vector<32x16xf32>
    %75 = vector.extract_strided_slice %33 {offsets = [0, 160], sizes = [32, 16], strides = [1, 1]} : vector<32x384xf32> to vector<32x16xf32>
    %76 = vector.extract_strided_slice %33 {offsets = [0, 288], sizes = [32, 16], strides = [1, 1]} : vector<32x384xf32> to vector<32x16xf32>
    %cst_33 = arith.constant dense<0.000000e+00> : vector<32x32xf32>
    %77 = tpu.matmul %74, %75, %cst_33 {dimension_numbers = #tpu.dot_dimension_numbers<[1], [1], [0], [0], [0, 0, 1, 0], [], []>} : vector<32x16xf32>, vector<32x16xf32>, vector<32x32xf32> -> vector<32x32xf32>
    %cst_34 = arith.constant 2.500000e-01 : f32
    %78 = vector.broadcast %cst_34 : f32 to vector<32x32xf32>
    %79 = arith.mulf %77, %78 : vector<32x32xf32>
    %c0_35 = arith.constant 0 : index
    %c0_36 = arith.constant 0 : index
    %80 = vector.load %arg2[%c0_35, %c0_36] : memref<32x32xf32, #tpu.memory_space<vmem>>, vector<32x32xf32>
    %81 = arith.addf %79, %80 : vector<32x32xf32>
    %cst_37 = arith.constant dense<0xFF800000> : vector<32xf32>
    %82 = vector.multi_reduction <maximumf>, %81, %cst_37 [1] : vector<32x32xf32> to vector<32xf32>
    %83 = vector.shape_cast %82 : vector<32xf32> to vector<32x1xf32>
    %84 = vector.broadcast %83 : vector<32x1xf32> to vector<32x32xf32>
    %85 = arith.subf %81, %84 : vector<32x32xf32>
    %86 = math.exp %85 : vector<32x32xf32>
    %cst_38 = arith.constant dense<0.000000e+00> : vector<32xf32>
    %87 = vector.multi_reduction <add>, %86, %cst_38 [1] : vector<32x32xf32> to vector<32xf32>
    %88 = vector.shape_cast %87 : vector<32xf32> to vector<32x1xf32>
    %89 = tpu.reciprocal %88 {approx = true} : vector<32x1xf32> -> vector<32x1xf32>
    %90 = vector.broadcast %89 : vector<32x1xf32> to vector<32x32xf32>
    %91 = arith.mulf %86, %90 : vector<32x32xf32>
    %cst_39 = arith.constant dense<0.000000e+00> : vector<32x16xf32>
    %92 = tpu.matmul %91, %76, %cst_39 {dimension_numbers = #tpu.dot_dimension_numbers<[1], [0], [0], [1], [0, 0, 1, 1], [], []>} : vector<32x32xf32>, vector<32x16xf32>, vector<32x16xf32> -> vector<32x16xf32>
    %c0_40 = arith.constant 0 : index
    %c32 = arith.constant 32 : index
    %93 = vector.load %arg16[%c0_40, %c32] : memref<32x128xf32, #tpu.memory_space<vmem>>, vector<32x16xf32>
    tpu.vector_store %arg16[%c0_40, %c32], %92 {strides = array<i32>} : memref<32x128xf32, #tpu.memory_space<vmem>>, vector<32x16xf32>,
    %94 = vector.extract_strided_slice %33 {offsets = [0, 48], sizes = [32, 16], strides = [1, 1]} : vector<32x384xf32> to vector<32x16xf32>
    %95 = vector.extract_strided_slice %33 {offsets = [0, 176], sizes = [32, 16], strides = [1, 1]} : vector<32x384xf32> to vector<32x16xf32>
    %96 = vector.extract_strided_slice %33 {offsets = [0, 304], sizes = [32, 16], strides = [1, 1]} : vector<32x384xf32> to vector<32x16xf32>
    %cst_41 = arith.constant dense<0.000000e+00> : vector<32x32xf32>
    %97 = tpu.matmul %94, %95, %cst_41 {dimension_numbers = #tpu.dot_dimension_numbers<[1], [1], [0], [0], [0, 0, 1, 0], [], []>} : vector<32x16xf32>, vector<32x16xf32>, vector<32x32xf32> -> vector<32x32xf32>
    %cst_42 = arith.constant 2.500000e-01 : f32
    %98 = vector.broadcast %cst_42 : f32 to vector<32x32xf32>
    %99 = arith.mulf %97, %98 : vector<32x32xf32>
    %c0_43 = arith.constant 0 : index
    %c0_44 = arith.constant 0 : index
    %100 = vector.load %arg2[%c0_43, %c0_44] : memref<32x32xf32, #tpu.memory_space<vmem>>, vector<32x32xf32>
    %101 = arith.addf %99, %100 : vector<32x32xf32>
    %cst_45 = arith.constant dense<0xFF800000> : vector<32xf32>
    %102 = vector.multi_reduction <maximumf>, %101, %cst_45 [1] : vector<32x32xf32> to vector<32xf32>
    %103 = vector.shape_cast %102 : vector<32xf32> to vector<32x1xf32>
    %104 = vector.broadcast %103 : vector<32x1xf32> to vector<32x32xf32>
    %105 = arith.subf %101, %104 : vector<32x32xf32>
    %106 = math.exp %105 : vector<32x32xf32>
    %cst_46 = arith.constant dense<0.000000e+00> : vector<32xf32>
    %107 = vector.multi_reduction <add>, %106, %cst_46 [1] : vector<32x32xf32> to vector<32xf32>
    %108 = vector.shape_cast %107 : vector<32xf32> to vector<32x1xf32>
    %109 = tpu.reciprocal %108 {approx = true} : vector<32x1xf32> -> vector<32x1xf32>
    %110 = vector.broadcast %109 : vector<32x1xf32> to vector<32x32xf32>
    %111 = arith.mulf %106, %110 : vector<32x32xf32>
    %cst_47 = arith.constant dense<0.000000e+00> : vector<32x16xf32>
    %112 = tpu.matmul %111, %96, %cst_47 {dimension_numbers = #tpu.dot_dimension_numbers<[1], [0], [0], [1], [0, 0, 1, 1], [], []>} : vector<32x32xf32>, vector<32x16xf32>, vector<32x16xf32> -> vector<32x16xf32>
    %c0_48 = arith.constant 0 : index
    %c48 = arith.constant 48 : index
    %113 = vector.load %arg16[%c0_48, %c48] : memref<32x128xf32, #tpu.memory_space<vmem>>, vector<32x16xf32>
    tpu.vector_store %arg16[%c0_48, %c48], %112 {strides = array<i32>} : memref<32x128xf32, #tpu.memory_space<vmem>>, vector<32x16xf32>,
    %114 = vector.extract_strided_slice %33 {offsets = [0, 64], sizes = [32, 16], strides = [1, 1]} : vector<32x384xf32> to vector<32x16xf32>
    %115 = vector.extract_strided_slice %33 {offsets = [0, 192], sizes = [32, 16], strides = [1, 1]} : vector<32x384xf32> to vector<32x16xf32>
    %116 = vector.extract_strided_slice %33 {offsets = [0, 320], sizes = [32, 16], strides = [1, 1]} : vector<32x384xf32> to vector<32x16xf32>
    %cst_49 = arith.constant dense<0.000000e+00> : vector<32x32xf32>
    %117 = tpu.matmul %114, %115, %cst_49 {dimension_numbers = #tpu.dot_dimension_numbers<[1], [1], [0], [0], [0, 0, 1, 0], [], []>} : vector<32x16xf32>, vector<32x16xf32>, vector<32x32xf32> -> vector<32x32xf32>
    %cst_50 = arith.constant 2.500000e-01 : f32
    %118 = vector.broadcast %cst_50 : f32 to vector<32x32xf32>
    %119 = arith.mulf %117, %118 : vector<32x32xf32>
    %c0_51 = arith.constant 0 : index
    %c0_52 = arith.constant 0 : index
    %120 = vector.load %arg2[%c0_51, %c0_52] : memref<32x32xf32, #tpu.memory_space<vmem>>, vector<32x32xf32>
    %121 = arith.addf %119, %120 : vector<32x32xf32>
    %cst_53 = arith.constant dense<0xFF800000> : vector<32xf32>
    %122 = vector.multi_reduction <maximumf>, %121, %cst_53 [1] : vector<32x32xf32> to vector<32xf32>
    %123 = vector.shape_cast %122 : vector<32xf32> to vector<32x1xf32>
    %124 = vector.broadcast %123 : vector<32x1xf32> to vector<32x32xf32>
    %125 = arith.subf %121, %124 : vector<32x32xf32>
    %126 = math.exp %125 : vector<32x32xf32>
    %cst_54 = arith.constant dense<0.000000e+00> : vector<32xf32>
    %127 = vector.multi_reduction <add>, %126, %cst_54 [1] : vector<32x32xf32> to vector<32xf32>
    %128 = vector.shape_cast %127 : vector<32xf32> to vector<32x1xf32>
    %129 = tpu.reciprocal %128 {approx = true} : vector<32x1xf32> -> vector<32x1xf32>
    %130 = vector.broadcast %129 : vector<32x1xf32> to vector<32x32xf32>
    %131 = arith.mulf %126, %130 : vector<32x32xf32>
    %cst_55 = arith.constant dense<0.000000e+00> : vector<32x16xf32>
    %132 = tpu.matmul %131, %116, %cst_55 {dimension_numbers = #tpu.dot_dimension_numbers<[1], [0], [0], [1], [0, 0, 1, 1], [], []>} : vector<32x32xf32>, vector<32x16xf32>, vector<32x16xf32> -> vector<32x16xf32>
    %c0_56 = arith.constant 0 : index
    %c64 = arith.constant 64 : index
    %133 = vector.load %arg16[%c0_56, %c64] : memref<32x128xf32, #tpu.memory_space<vmem>>, vector<32x16xf32>
    tpu.vector_store %arg16[%c0_56, %c64], %132 {strides = array<i32>} : memref<32x128xf32, #tpu.memory_space<vmem>>, vector<32x16xf32>,
    %134 = vector.extract_strided_slice %33 {offsets = [0, 80], sizes = [32, 16], strides = [1, 1]} : vector<32x384xf32> to vector<32x16xf32>
    %135 = vector.extract_strided_slice %33 {offsets = [0, 208], sizes = [32, 16], strides = [1, 1]} : vector<32x384xf32> to vector<32x16xf32>
    %136 = vector.extract_strided_slice %33 {offsets = [0, 336], sizes = [32, 16], strides = [1, 1]} : vector<32x384xf32> to vector<32x16xf32>
    %cst_57 = arith.constant dense<0.000000e+00> : vector<32x32xf32>
    %137 = tpu.matmul %134, %135, %cst_57 {dimension_numbers = #tpu.dot_dimension_numbers<[1], [1], [0], [0], [0, 0, 1, 0], [], []>} : vector<32x16xf32>, vector<32x16xf32>, vector<32x32xf32> -> vector<32x32xf32>
    %cst_58 = arith.constant 2.500000e-01 : f32
    %138 = vector.broadcast %cst_58 : f32 to vector<32x32xf32>
    %139 = arith.mulf %137, %138 : vector<32x32xf32>
    %c0_59 = arith.constant 0 : index
    %c0_60 = arith.constant 0 : index
    %140 = vector.load %arg2[%c0_59, %c0_60] : memref<32x32xf32, #tpu.memory_space<vmem>>, vector<32x32xf32>
    %141 = arith.addf %139, %140 : vector<32x32xf32>
    %cst_61 = arith.constant dense<0xFF800000> : vector<32xf32>
    %142 = vector.multi_reduction <maximumf>, %141, %cst_61 [1] : vector<32x32xf32> to vector<32xf32>
    %143 = vector.shape_cast %142 : vector<32xf32> to vector<32x1xf32>
    %144 = vector.broadcast %143 : vector<32x1xf32> to vector<32x32xf32>
    %145 = arith.subf %141, %144 : vector<32x32xf32>
    %146 = math.exp %145 : vector<32x32xf32>
    %cst_62 = arith.constant dense<0.000000e+00> : vector<32xf32>
    %147 = vector.multi_reduction <add>, %146, %cst_62 [1] : vector<32x32xf32> to vector<32xf32>
    %148 = vector.shape_cast %147 : vector<32xf32> to vector<32x1xf32>
    %149 = tpu.reciprocal %148 {approx = true} : vector<32x1xf32> -> vector<32x1xf32>
    %150 = vector.broadcast %149 : vector<32x1xf32> to vector<32x32xf32>
    %151 = arith.mulf %146, %150 : vector<32x32xf32>
    %cst_63 = arith.constant dense<0.000000e+00> : vector<32x16xf32>
    %152 = tpu.matmul %151, %136, %cst_63 {dimension_numbers = #tpu.dot_dimension_numbers<[1], [0], [0], [1], [0, 0, 1, 1], [], []>} : vector<32x32xf32>, vector<32x16xf32>, vector<32x16xf32> -> vector<32x16xf32>
    %c0_64 = arith.constant 0 : index
    %c80 = arith.constant 80 : index
    %153 = vector.load %arg16[%c0_64, %c80] : memref<32x128xf32, #tpu.memory_space<vmem>>, vector<32x16xf32>
    tpu.vector_store %arg16[%c0_64, %c80], %152 {strides = array<i32>} : memref<32x128xf32, #tpu.memory_space<vmem>>, vector<32x16xf32>,
    %154 = vector.extract_strided_slice %33 {offsets = [0, 96], sizes = [32, 16], strides = [1, 1]} : vector<32x384xf32> to vector<32x16xf32>
    %155 = vector.extract_strided_slice %33 {offsets = [0, 224], sizes = [32, 16], strides = [1, 1]} : vector<32x384xf32> to vector<32x16xf32>
    %156 = vector.extract_strided_slice %33 {offsets = [0, 352], sizes = [32, 16], strides = [1, 1]} : vector<32x384xf32> to vector<32x16xf32>
    %cst_65 = arith.constant dense<0.000000e+00> : vector<32x32xf32>
    %157 = tpu.matmul %154, %155, %cst_65 {dimension_numbers = #tpu.dot_dimension_numbers<[1], [1], [0], [0], [0, 0, 1, 0], [], []>} : vector<32x16xf32>, vector<32x16xf32>, vector<32x32xf32> -> vector<32x32xf32>
    %cst_66 = arith.constant 2.500000e-01 : f32
    %158 = vector.broadcast %cst_66 : f32 to vector<32x32xf32>
    %159 = arith.mulf %157, %158 : vector<32x32xf32>
    %c0_67 = arith.constant 0 : index
    %c0_68 = arith.constant 0 : index
    %160 = vector.load %arg2[%c0_67, %c0_68] : memref<32x32xf32, #tpu.memory_space<vmem>>, vector<32x32xf32>
    %161 = arith.addf %159, %160 : vector<32x32xf32>
    %cst_69 = arith.constant dense<0xFF800000> : vector<32xf32>
    %162 = vector.multi_reduction <maximumf>, %161, %cst_69 [1] : vector<32x32xf32> to vector<32xf32>
    %163 = vector.shape_cast %162 : vector<32xf32> to vector<32x1xf32>
    %164 = vector.broadcast %163 : vector<32x1xf32> to vector<32x32xf32>
    %165 = arith.subf %161, %164 : vector<32x32xf32>
    %166 = math.exp %165 : vector<32x32xf32>
    %cst_70 = arith.constant dense<0.000000e+00> : vector<32xf32>
    %167 = vector.multi_reduction <add>, %166, %cst_70 [1] : vector<32x32xf32> to vector<32xf32>
    %168 = vector.shape_cast %167 : vector<32xf32> to vector<32x1xf32>
    %169 = tpu.reciprocal %168 {approx = true} : vector<32x1xf32> -> vector<32x1xf32>
    %170 = vector.broadcast %169 : vector<32x1xf32> to vector<32x32xf32>
    %171 = arith.mulf %166, %170 : vector<32x32xf32>
    %cst_71 = arith.constant dense<0.000000e+00> : vector<32x16xf32>
    %172 = tpu.matmul %171, %156, %cst_71 {dimension_numbers = #tpu.dot_dimension_numbers<[1], [0], [0], [1], [0, 0, 1, 1], [], []>} : vector<32x32xf32>, vector<32x16xf32>, vector<32x16xf32> -> vector<32x16xf32>
    %c0_72 = arith.constant 0 : index
    %c96 = arith.constant 96 : index
    %173 = vector.load %arg16[%c0_72, %c96] : memref<32x128xf32, #tpu.memory_space<vmem>>, vector<32x16xf32>
    tpu.vector_store %arg16[%c0_72, %c96], %172 {strides = array<i32>} : memref<32x128xf32, #tpu.memory_space<vmem>>, vector<32x16xf32>,
    %174 = vector.extract_strided_slice %33 {offsets = [0, 112], sizes = [32, 16], strides = [1, 1]} : vector<32x384xf32> to vector<32x16xf32>
    %175 = vector.extract_strided_slice %33 {offsets = [0, 240], sizes = [32, 16], strides = [1, 1]} : vector<32x384xf32> to vector<32x16xf32>
    %176 = vector.extract_strided_slice %33 {offsets = [0, 368], sizes = [32, 16], strides = [1, 1]} : vector<32x384xf32> to vector<32x16xf32>
    %cst_73 = arith.constant dense<0.000000e+00> : vector<32x32xf32>
    %177 = tpu.matmul %174, %175, %cst_73 {dimension_numbers = #tpu.dot_dimension_numbers<[1], [1], [0], [0], [0, 0, 1, 0], [], []>} : vector<32x16xf32>, vector<32x16xf32>, vector<32x32xf32> -> vector<32x32xf32>
    %cst_74 = arith.constant 2.500000e-01 : f32
    %178 = vector.broadcast %cst_74 : f32 to vector<32x32xf32>
    %179 = arith.mulf %177, %178 : vector<32x32xf32>
    %c0_75 = arith.constant 0 : index
    %c0_76 = arith.constant 0 : index
    %180 = vector.load %arg2[%c0_75, %c0_76] : memref<32x32xf32, #tpu.memory_space<vmem>>, vector<32x32xf32>
    %181 = arith.addf %179, %180 : vector<32x32xf32>
    %cst_77 = arith.constant dense<0xFF800000> : vector<32xf32>
    %182 = vector.multi_reduction <maximumf>, %181, %cst_77 [1] : vector<32x32xf32> to vector<32xf32>
    %183 = vector.shape_cast %182 : vector<32xf32> to vector<32x1xf32>
    %184 = vector.broadcast %183 : vector<32x1xf32> to vector<32x32xf32>
    %185 = arith.subf %181, %184 : vector<32x32xf32>
    %186 = math.exp %185 : vector<32x32xf32>
    %cst_78 = arith.constant dense<0.000000e+00> : vector<32xf32>
    %187 = vector.multi_reduction <add>, %186, %cst_78 [1] : vector<32x32xf32> to vector<32xf32>
    %188 = vector.shape_cast %187 : vector<32xf32> to vector<32x1xf32>
    %189 = tpu.reciprocal %188 {approx = true} : vector<32x1xf32> -> vector<32x1xf32>
    %190 = vector.broadcast %189 : vector<32x1xf32> to vector<32x32xf32>
    %191 = arith.mulf %186, %190 : vector<32x32xf32>
    %cst_79 = arith.constant dense<0.000000e+00> : vector<32x16xf32>
    %192 = tpu.matmul %191, %176, %cst_79 {dimension_numbers = #tpu.dot_dimension_numbers<[1], [0], [0], [1], [0, 0, 1, 1], [], []>} : vector<32x32xf32>, vector<32x16xf32>, vector<32x16xf32> -> vector<32x16xf32>
    %c0_80 = arith.constant 0 : index
    %c112 = arith.constant 112 : index
    %193 = vector.load %arg16[%c0_80, %c112] : memref<32x128xf32, #tpu.memory_space<vmem>>, vector<32x16xf32>
    tpu.vector_store %arg16[%c0_80, %c112], %192 {strides = array<i32>} : memref<32x128xf32, #tpu.memory_space<vmem>>, vector<32x16xf32>,
    %c0_81 = arith.constant 0 : index
    %c0_82 = arith.constant 0 : index
    %194 = vector.load %arg16[%c0_81, %c0_82] : memref<32x128xf32, #tpu.memory_space<vmem>>, vector<32x128xf32>
    %195 = arith.truncf %194 : vector<32x128xf32> to vector<32x128xbf16>
    %c0_83 = arith.constant 0 : index
    %c0_84 = arith.constant 0 : index
    %c0_85 = arith.constant 0 : index
    %196 = vector.load %arg6[%c0_83, %c0_84, %c0_85] : memref<1x128x128xbf16, #tpu.memory_space<vmem>>, vector<1x128x128xbf16>
    %197 = vector.shape_cast %196 : vector<1x128x128xbf16> to vector<128x128xbf16>
    %cst_86 = arith.constant dense<0.000000e+00> : vector<32x128xf32>
    %198 = tpu.matmul %195, %197, %cst_86 {dimension_numbers = #tpu.dot_dimension_numbers<[1], [0], [0], [1], [0, 0, 1, 1], [], []>} : vector<32x128xbf16>, vector<128x128xbf16>, vector<32x128xf32> -> vector<32x128xf32>
    %c0_87 = arith.constant 0 : index
    %c0_88 = arith.constant 0 : index
    %c0_89 = arith.constant 0 : index
    %199 = vector.load %arg7[%c0_87, %c0_88, %c0_89] : memref<1x1x128xf32, #tpu.memory_space<vmem>>, vector<1x1x128xf32>
    %200 = vector.shape_cast %199 : vector<1x1x128xf32> to vector<1x128xf32>
    %201 = vector.broadcast %200 : vector<1x128xf32> to vector<32x128xf32>
    %202 = arith.addf %198, %201 : vector<32x128xf32>
    %203 = arith.addf %3, %202 : vector<32x128xf32>
    %c0_90 = arith.constant 0 : index
    %c0_91 = arith.constant 0 : index
    %c0_92 = arith.constant 0 : index
    %204 = vector.load %arg8[%c0_90, %c0_91, %c0_92] : memref<1x1x128xf32, #tpu.memory_space<vmem>>, vector<1x1x128xf32>
    %205 = vector.shape_cast %204 : vector<1x1x128xf32> to vector<1x128xf32>
    %c0_93 = arith.constant 0 : index
    %c0_94 = arith.constant 0 : index
    %c0_95 = arith.constant 0 : index
    %206 = vector.load %arg9[%c0_93, %c0_94, %c0_95] : memref<1x1x128xf32, #tpu.memory_space<vmem>>, vector<1x1x128xf32>
    %207 = vector.shape_cast %206 : vector<1x1x128xf32> to vector<1x128xf32>
    %cst_96 = arith.constant dense<0.000000e+00> : vector<32xf32>
    %208 = vector.multi_reduction <add>, %203, %cst_96 [1] : vector<32x128xf32> to vector<32xf32>
    %209 = vector.shape_cast %208 : vector<32xf32> to vector<32x1xf32>
    %cst_97 = arith.constant 1.280000e+02 : f32
    %210 = vector.broadcast %cst_97 : f32 to vector<32x1xf32>
    %211 = arith.divf %209, %210 : vector<32x1xf32>
    %212 = vector.broadcast %211 : vector<32x1xf32> to vector<32x128xf32>
    %213 = arith.subf %203, %212 : vector<32x128xf32>
    %214 = arith.mulf %213, %213 : vector<32x128xf32>
    %cst_98 = arith.constant dense<0.000000e+00> : vector<32xf32>
    %215 = vector.multi_reduction <add>, %214, %cst_98 [1] : vector<32x128xf32> to vector<32xf32>
    %216 = vector.shape_cast %215 : vector<32xf32> to vector<32x1xf32>
    %cst_99 = arith.constant 1.280000e+02 : f32
    %217 = vector.broadcast %cst_99 : f32 to vector<32x1xf32>
    %218 = arith.divf %216, %217 : vector<32x1xf32>
    %219 = vector.broadcast %211 : vector<32x1xf32> to vector<32x128xf32>
    %220 = arith.subf %203, %219 : vector<32x128xf32>
    %cst_100 = arith.constant 9.99999974E-6 : f32
    %221 = vector.broadcast %cst_100 : f32 to vector<32x1xf32>
    %222 = arith.addf %218, %221 : vector<32x1xf32>
    %223 = math.rsqrt %222 : vector<32x1xf32>
    %224 = vector.broadcast %223 : vector<32x1xf32> to vector<32x128xf32>
    %225 = arith.mulf %220, %224 : vector<32x128xf32>
    %226 = vector.broadcast %205 : vector<1x128xf32> to vector<32x128xf32>
    %227 = arith.mulf %225, %226 : vector<32x128xf32>
    %228 = vector.broadcast %207 : vector<1x128xf32> to vector<32x128xf32>
    %229 = arith.addf %227, %228 : vector<32x128xf32>
    %230 = arith.truncf %229 : vector<32x128xf32> to vector<32x128xbf16>
    %c0_101 = arith.constant 0 : index
    %c0_102 = arith.constant 0 : index
    %c0_103 = arith.constant 0 : index
    %231 = vector.load %arg10[%c0_101, %c0_102, %c0_103] : memref<1x128x256xbf16, #tpu.memory_space<vmem>>, vector<1x128x256xbf16>
    %232 = vector.shape_cast %231 : vector<1x128x256xbf16> to vector<128x256xbf16>
    %cst_104 = arith.constant dense<0.000000e+00> : vector<32x256xf32>
    %233 = tpu.matmul %230, %232, %cst_104 {dimension_numbers = #tpu.dot_dimension_numbers<[1], [0], [0], [1], [0, 0, 1, 1], [], []>} : vector<32x128xbf16>, vector<128x256xbf16>, vector<32x256xf32> -> vector<32x256xf32>
    %c0_105 = arith.constant 0 : index
    %c0_106 = arith.constant 0 : index
    %c0_107 = arith.constant 0 : index
    %234 = vector.load %arg11[%c0_105, %c0_106, %c0_107] : memref<1x1x256xf32, #tpu.memory_space<vmem>>, vector<1x1x256xf32>
    %235 = vector.shape_cast %234 : vector<1x1x256xf32> to vector<1x256xf32>
    %236 = vector.broadcast %235 : vector<1x256xf32> to vector<32x256xf32>
    %237 = arith.addf %233, %236 : vector<32x256xf32>
    %cst_108 = arith.constant 0.000000e+00 : f32
    %238 = vector.broadcast %cst_108 : f32 to vector<32x256xf32>
    %239 = arith.maximumf %237, %238 : vector<32x256xf32>
    %240 = arith.truncf %239 : vector<32x256xf32> to vector<32x256xbf16>
    %c0_109 = arith.constant 0 : index
    %c0_110 = arith.constant 0 : index
    %c0_111 = arith.constant 0 : index
    %241 = vector.load %arg12[%c0_109, %c0_110, %c0_111] : memref<1x256x128xbf16, #tpu.memory_space<vmem>>, vector<1x256x128xbf16>
    %242 = vector.shape_cast %241 : vector<1x256x128xbf16> to vector<256x128xbf16>
    %cst_112 = arith.constant dense<0.000000e+00> : vector<32x128xf32>
    %243 = tpu.matmul %240, %242, %cst_112 {dimension_numbers = #tpu.dot_dimension_numbers<[1], [0], [0], [1], [0, 0, 1, 1], [], []>} : vector<32x256xbf16>, vector<256x128xbf16>, vector<32x128xf32> -> vector<32x128xf32>
    %244 = arith.addf %203, %243 : vector<32x128xf32>
    %c0_113 = arith.constant 0 : index
    %c0_114 = arith.constant 0 : index
    %c0_115 = arith.constant 0 : index
    %245 = vector.load %arg13[%c0_113, %c0_114, %c0_115] : memref<1x1x128xf32, #tpu.memory_space<vmem>>, vector<1x1x128xf32>
    %246 = vector.shape_cast %245 : vector<1x1x128xf32> to vector<1x128xf32>
    %247 = vector.broadcast %246 : vector<1x128xf32> to vector<32x128xf32>
    %248 = arith.addf %244, %247 : vector<32x128xf32>
    %c0_116 = arith.constant 0 : index
    %c0_117 = arith.constant 0 : index
    %249 = vector.load %arg15[%c0_116, %c0_117] : memref<32x128xf32, #tpu.memory_space<vmem>>, vector<32x128xf32>
    tpu.vector_store %arg15[%c0_116, %c0_117], %248 {strides = array<i32>} : memref<32x128xf32, #tpu.memory_space<vmem>>, vector<32x128xf32>,
    %c1_i32 = arith.constant 1 : i32
    %250 = arith.cmpi eq, %arg0, %c1_i32 : i32
    %251 = arith.extui %250 : i1 to i32
    %c0_i32_118 = arith.constant 0 : i32
    %252 = arith.cmpi ne, %251, %c0_i32_118 : i32
    scf.if %252 {
      %253 = vector.extract_strided_slice %248 {offsets = [8, 0], sizes = [8, 128], strides = [1, 1]} : vector<32x128xf32> to vector<8x128xf32>
      %c0_119 = arith.constant 0 : index
      %c0_120 = arith.constant 0 : index
      %c0_121 = arith.constant 0 : index
      %254 = vector.load %arg14[%c0_119, %c0_120, %c0_121] : memref<2x8x128xf32, #tpu.memory_space<vmem>>, vector<1x8x128xf32>
      %255 = vector.shape_cast %254 : vector<1x8x128xf32> to vector<8x128xf32>
      %256 = vector.shape_cast %253 : vector<8x128xf32> to vector<1x8x128xf32>
      tpu.vector_store %arg14[%c0_119, %c0_120, %c0_121], %256 {strides = array<i32>} : memref<2x8x128xf32, #tpu.memory_space<vmem>>, vector<1x8x128xf32>,
      %257 = vector.extract_strided_slice %248 {offsets = [24, 0], sizes = [8, 128], strides = [1, 1]} : vector<32x128xf32> to vector<8x128xf32>
      %c1 = arith.constant 1 : index
      %c0_122 = arith.constant 0 : index
      %c0_123 = arith.constant 0 : index
      %258 = vector.load %arg14[%c1, %c0_122, %c0_123] : memref<2x8x128xf32, #tpu.memory_space<vmem>>, vector<1x8x128xf32>
      %259 = vector.shape_cast %258 : vector<1x8x128xf32> to vector<8x128xf32>
      %260 = vector.shape_cast %257 : vector<8x128xf32> to vector<1x8x128xf32>
      tpu.vector_store %arg14[%c1, %c0_122, %c0_123], %260 {strides = array<i32>} : memref<2x8x128xf32, #tpu.memory_space<vmem>>, vector<1x8x128xf32>,
    } else {
    }
    return
  }
  func.func @transform_0(%arg0: i32) -> (i32, i32) {
    %c0_i32 = arith.constant 0 : i32
    %c0_i32_0 = arith.constant 0 : i32
    %c0_i32_1 = arith.constant 0 : i32
    return %c0_i32, %c0_i32_0 : i32, i32
  }
  func.func @transform_1(%arg0: i32) -> (i32, i32) {
    %c0_i32 = arith.constant 0 : i32
    %c0_i32_0 = arith.constant 0 : i32
    %c0_i32_1 = arith.constant 0 : i32
    return %c0_i32, %c0_i32_0 : i32, i32
  }
  func.func @transform_2(%arg0: i32) -> (i32, i32, i32) {
    %c0_i32 = arith.constant 0 : i32
    %c0_i32_0 = arith.constant 0 : i32
    %c0_i32_1 = arith.constant 0 : i32
    return %arg0, %c0_i32, %c0_i32_0 : i32, i32, i32
  }
  func.func @transform_3(%arg0: i32) -> (i32, i32, i32) {
    %c0_i32 = arith.constant 0 : i32
    %c0_i32_0 = arith.constant 0 : i32
    %c0_i32_1 = arith.constant 0 : i32
    return %arg0, %c0_i32, %c0_i32_0 : i32, i32, i32
  }
  func.func @transform_4(%arg0: i32) -> (i32, i32, i32) {
    %c0_i32 = arith.constant 0 : i32
    %c0_i32_0 = arith.constant 0 : i32
    %c0_i32_1 = arith.constant 0 : i32
    return %arg0, %c0_i32, %c0_i32_0 : i32, i32, i32
  }
  func.func @transform_5(%arg0: i32) -> (i32, i32, i32) {
    %c0_i32 = arith.constant 0 : i32
    %c0_i32_0 = arith.constant 0 : i32
    %c0_i32_1 = arith.constant 0 : i32
    return %arg0, %c0_i32, %c0_i32_0 : i32, i32, i32
  }
  func.func @transform_6(%arg0: i32) -> (i32, i32, i32) {
    %c0_i32 = arith.constant 0 : i32
    %c0_i32_0 = arith.constant 0 : i32
    %c0_i32_1 = arith.constant 0 : i32
    return %arg0, %c0_i32, %c0_i32_0 : i32, i32, i32
  }
  func.func @transform_7(%arg0: i32) -> (i32, i32, i32) {
    %c0_i32 = arith.constant 0 : i32
    %c0_i32_0 = arith.constant 0 : i32
    %c0_i32_1 = arith.constant 0 : i32
    return %arg0, %c0_i32, %c0_i32_0 : i32, i32, i32
  }
  func.func @transform_8(%arg0: i32) -> (i32, i32, i32) {
    %c0_i32 = arith.constant 0 : i32
    %c0_i32_0 = arith.constant 0 : i32
    %c0_i32_1 = arith.constant 0 : i32
    return %arg0, %c0_i32, %c0_i32_0 : i32, i32, i32
  }
  func.func @transform_9(%arg0: i32) -> (i32, i32, i32) {
    %c0_i32 = arith.constant 0 : i32
    %c0_i32_0 = arith.constant 0 : i32
    %c0_i32_1 = arith.constant 0 : i32
    return %arg0, %c0_i32, %c0_i32_0 : i32, i32, i32
  }
  func.func @transform_10(%arg0: i32) -> (i32, i32, i32) {
    %c0_i32 = arith.constant 0 : i32
    %c0_i32_0 = arith.constant 0 : i32
    %c0_i32_1 = arith.constant 0 : i32
    return %arg0, %c0_i32, %c0_i32_0 : i32, i32, i32
  }
  func.func @transform_11(%arg0: i32) -> (i32, i32, i32) {
    %c0_i32 = arith.constant 0 : i32
    %c0_i32_0 = arith.constant 0 : i32
    %c0_i32_1 = arith.constant 0 : i32
    return %arg0, %c0_i32, %c0_i32_0 : i32, i32, i32
  }
  func.func @transform_12(%arg0: i32) -> (i32, i32, i32) {
    %c0_i32 = arith.constant 0 : i32
    %c0_i32_0 = arith.constant 0 : i32
    %c0_i32_1 = arith.constant 0 : i32
    return %arg0, %c0_i32, %c0_i32_0 : i32, i32, i32
  }
  func.func @transform_13(%arg0: i32) -> (i32, i32, i32) {
    %c0_i32 = arith.constant 0 : i32
    %c0_i32_0 = arith.constant 0 : i32
    %c0_i32_1 = arith.constant 0 : i32
    %c0_i32_2 = arith.constant 0 : i32
    return %c0_i32, %c0_i32_0, %c0_i32_1 : i32, i32, i32
  }
}

</mosaic_0001>

<bundles_post_ra>
// kernel: transformer_mapper_fwd.1
= control target key start
LH: loop header
LB: loop body
LE: loop exit
PB: predicated region body
PF: predicated region fallthrough
CT: control target
= control target key end

     0   :  { %s6545_s0 = inlined_call_operand.vmem [shape: f32[32,128], index: 0, kind: input, shape index: {}]   ;;  %s6546_s1 = inlined_call_operand.vmem [shape: f32[32,32], index: 1, kind: input, shape index: {}]   ;;  %s6547_s2 = inlined_call_operand.vmem [shape: f32[2,1,128], index: 2, kind: input, shape index: {}]   ;;  %s6548_s3 = inlined_call_operand.vmem [shape: f32[2,1,128], index: 3, kind: input, shape index: {}]   ;;  %s6549_s4 = inlined_call_operand.vmem [shape: bf16[2,128,384], index: 4, kind: input, shape index: {}]   ;;  %s6550_s5 = inlined_call_operand.hbm [shape: bf16[2,128,128], index: 5, kind: input, shape index: {}]   ;;  %s6551_s6 = inlined_call_operand.vmem [shape: f32[2,1,128], index: 6, kind: input, shape index: {}]   ;;  %s6552_s7 = inlined_call_operand.vmem [shape: f32[2,1,128], index: 7, kind: input, shape index: {}]   ;;  %s6553_s8 = inlined_call_operand.vmem [shape: f32[2,1,128], index: 8, kind: input, shape index: {}]   ;;  %s6554_s9 = inlined_call_operand.vmem [shape: bf16[2,128,256], index: 9, kind: input, shape index: {}]   ;;  %s6555_s10 = inlined_call_operand.vmem [shape: f32[2,1,256], index: 10, kind: input, shape index: {}]   ;;  %s6556_s11 = inlined_call_operand.hbm [shape: bf16[2,256,128], index: 11, kind: input, shape index: {}]   ;;  %s6557_s12 = inlined_call_operand.vmem [shape: f32[2,1,128], index: 12, kind: input, shape index: {}]   ;;  %s6558_s13 = inlined_call_operand.hbm [shape: f32[2,8,128], index: 13, kind: output, shape index: {}]  }
   0x1   :  { %6566 = sst [smem:[#allocation18_spill]] %s6550_s5 }
   0x2   :  { %6567 = sst [smem:[#allocation19_spill]] %s6556_s11 }
   0x3   :  { %6568 = sst [smem:[#allocation20_spill]] %s6558_s13 }
   0x4   :  { %18 = vsyncpa [#allocation5], 0 }
   0x5   :  { %20 = vsyncpa [#allocation5 + $0x1], 0 }
   0x6   :  { %21 = vsyncpa [#allocation8], 0 }
   0x7   :  { %23 = vsyncpa [#allocation8 + $0x1], 0 }
   0x8   :  { %24 = vsyncpa [#allocation6], 0  ;;  %s5553_s25 = smov 0   ;;  %s5555_s26 = smov 0  }
   0x9   :  { %s5557_s27 = smov 0   ;;  %s5559_s28 = smov 0  }
   0xa LB: > { %6569 = sst [smem:[#allocation13_spill]] %s5458_s26  ;;  %s5572_s29 = sadd.s32 4294967295, %s5466_s28   ;;  %s5466_s28 = sphi %s5559_s28, %s6589_s28   ;;  %s5462_s27 = sphi %s5557_s27, %s6592_s27   ;;  %s5458_s26 = sphi %s5555_s26, %s6591_s26   ;;  %s5454_s25 = sphi %s5553_s25, %s6590_s25  }
   0xb   : > { %6570 = sst [smem:[#allocation14_spill]] %s5462_s27  ;;  %s5575_s30 = sadd.s32 1, %s5466_s28  }
   0xc   : > { %6571 = sst [smem:[#allocation15_spill]] %s5575_s30  ;;  %s154_s14 = ssub.s32 %s5466_s28, %s5575_s30 }
   0xd   : > { %s157_s15 = sadd.s32 1, %s5462_s27  ;;  %p155_p0 = scmp.eq.s32.totalorder %s154_s14, 0 }
   0xe   : > { %p164_p1 = scmp.ne.s32.totalorder %s5462_s27, %s5458_s26  ;;  %p165_p2 = scmp.eq.s32.totalorder %s5466_s28, 0 }
   0xf   : > { %p170_p3 = scmp.ne.s32.totalorder %s5458_s26, %s5454_s25  ;;  %p171_p5 = scmp.eq.s32.totalorder %s5572_s29, 0 }
  0x10   : > { %s5585_s16 = scalar_select %p155_p0, %s5462_s27, %s157_s15  }
  0x11   : > { %p166_p4 = por %p165_p2, %p164_p1  ;;  %p4922_p6 = scmp.lt.s32.totalorder %s5466_s28, 2 }
  0x12   : > { %6572 = sst [smem:[#allocation16_spill]] %s5585_s16  ;;  %p5589_p7 = por %p171_p5, %p170_p3 }
  0x13   : > { %s5594_s18 = sand.u32 1, %s5462_s27   ;;  %s4303_s20 = sshll.u32 %s5466_s28, 10 }
  0x14   : > { %s6573_s17 = scalar_select %p5589_p7, 1, 0 }
  0x15   : > { %s4118_s19 = sshll.u32 %s5594_s18, 6  ;;  %s6574_s5 = sld [smem:[#allocation18_spill]] }
  0x16   : > { %s427_s24 = scalar_lea.vmem [#allocation4], %s4118_s19  ;;  %p5605_p8 = pnand %p4922_p6, %p166_p4 }
  0x17   : > { %s434_s25 = sshll.u32 %s427_s24, 4  ;;  %s5603_s25 = int_to_ptr.vmem [resolvable:$true] %s434_s25 }
  0x18   : > { %p5340_p11 = pneg %p5605_p8 }
  0x1b   : > { %s5601_s23 = scalar_lea.hbm %s6574_s5, %s4303_s20  ;;  %s5343_s21 = scalar_lea.hbm %s6574_s5, 2048 }
  0x1c   : > { %s5338_s16 = scalar_lea.hbm %s5601_s23, 1024  ;;  %p5344_p0 = scmp.lt.u32.totalorder %s5601_s23, %s6574_s5 }
  0x1d   : > { %p5339_p10 = scmp.ne.s32.totalorder %s5601_s23, %s5338_s16  ;;  %p5345_p1 = scmp.lt.u32.totalorder %s5343_s21, %s5338_s16 }
  0x1e   : > { %p5347_p3 = scmp.lt.u32.totalorder %s5338_s16, %s5601_s23 }
  0x1f   : > { %p5341_p12 = pnand %p5340_p11, %p5339_p10  ;;  %p5346_p2 = por %p5345_p1, %p5344_p0 }
  0x21   : > { %p5342_p13 = pneg %p5341_p12  ;;  %p5348_p4 = por %p5347_p3, %p5346_p2 }
  0x23   : > { %p5349_p5 = pnand %p5348_p4, %p5342_p13 }
  0x25   : > { %5352 = shalt.err (!%p5349_p5)
}
  0x26   : > { %s5353_s15 = scalar_lea.vmem %s5603_s25, 1024  ;;  %s5468_s19 = smov [#allocation4]  }
  0x27   : > { %p5354_p6 = scmp.ne.s32.totalorder %s5603_s25, %s5353_s15  ;;  %s5358_s20 = sshll.u32 %s5468_s19, 4  ;;  %s5359_s20 = int_to_ptr.vmem [resolvable:$false] %s5358_s20 }
  0x28   : > { %s5360_s22 = scalar_lea.vmem %s5359_s20, 2048  ;;  %p5361_p9 = scmp.lt.s32.totalorder %s5603_s25, %s5359_s20 }
  0x29   : > { %p5356_p10 = pnand %p5354_p6, %p5340_p11  ;;  %p5362_p0 = scmp.lt.s32.totalorder %s5360_s22, %s5353_s15 }
  0x2b   : > { %p5357_p12 = pneg %p5356_p10  ;;  %p5363_p1 = por %p5362_p0, %p5361_p9 }
  0x2d   : > { %p5364_p2 = pnand %p5363_p1, %p5357_p12 }
  0x2f   : > { %5367 = shalt.err (!%p5364_p2)
}
  0x30   : > { %s5469_s16 = smov 64   ;;  %s5470_s21 = smov 4  }
  0x31   : > { %s6576_s15 = scalar_lea.sflag [#allocation5], %s5594_s18  ;;  %p502_p9 = scmp.lt.s32.totalorder %s5466_s28, 3 }
  0x32   : > { %4918 = dma.hbm_to_vmem [thread:$0]  (!%p5605_p8), %s5601_s23, 1024, %s5603_s25, %s6576_s15, %s5469_s16, %s5469_s16, %s5470_s21  }
  0x33   : > { %s4121_s24 = sshll.u32 %s5594_s18, 7  ;;  %s4304_s19 = sshll.u32 %s5466_s28, 11 }
  0x34   : > { %p6577_p13 = scmp.ge.s32.totalorder %s5466_s28, 1  ;;  %s6579_s11 = sld [smem:[#allocation19_spill]] }
  0x35   : > { %s481_s30 = scalar_lea.vmem [#allocation7], %s4121_s24  ;;  %s478_s23 = scalar_lea.sflag [#allocation8], %s5594_s18 }
  0x36   : > { %p5646_p3 = pnand %p6577_p13, %p502_p9  ;;  %s488_s13 = sshll.u32 %s481_s30, 4  ;;  %s5655_s13 = int_to_ptr.vmem [resolvable:$true] %s488_s13 }
  0x3a   : > { %s5653_s27 = scalar_lea.hbm %s6579_s11, %s4304_s19  ;;  %s5373_s5 = scalar_lea.hbm %s6579_s11, 4096 }
  0x3b   : > { %s5368_s25 = scalar_lea.hbm %s5653_s27, 2048  ;;  %p5374_p10 = scmp.lt.u32.totalorder %s5653_s27, %s6579_s11 }
  0x3c   : > { %p5369_p4 = scmp.ne.s32.totalorder %s5653_s27, %s5368_s25  ;;  %p5375_p12 = scmp.lt.u32.totalorder %s5373_s5, %s5368_s25 }
  0x3d   : > { %p5377_p1 = scmp.lt.u32.totalorder %s5368_s25, %s5653_s27 }
  0x3e   : > { %p5371_p5 = pnand %p5369_p4, %p5340_p11  ;;  %p5376_p0 = por %p5375_p12, %p5374_p10 }
  0x40   : > { %p5372_p6 = pneg %p5371_p5  ;;  %p5378_p2 = por %p5377_p1, %p5376_p0 }
  0x42   : > { %p5379_p9 = pnand %p5378_p2, %p5372_p6 }
  0x44   : > { %5382 = shalt.err (!%p5379_p9)
}
  0x45   : > { %s5383_s30 = scalar_lea.vmem %s5655_s13, 2048  ;;  %s5471_s24 = smov [#allocation7]  }
  0x46   : > { %p5384_p13 = scmp.ne.s32.totalorder %s5655_s13, %s5383_s30  ;;  %s5388_s28 = sshll.u32 %s5471_s24, 4  ;;  %s5389_s28 = int_to_ptr.vmem [resolvable:$false] %s5388_s28 }
  0x47   : > { %s5390_s15 = scalar_lea.vmem %s5389_s28, 4096  ;;  %p5391_p7 = scmp.lt.s32.totalorder %s5655_s13, %s5389_s28 }
  0x48   : > { %p5386_p4 = pnand %p5384_p13, %p5340_p11  ;;  %p5392_p10 = scmp.lt.s32.totalorder %s5390_s15, %s5383_s30 }
  0x4a   : > { %p5387_p5 = pneg %p5386_p4  ;;  %p5393_p12 = por %p5392_p10, %p5391_p7 }
  0x4c   : > { %p5394_p0 = pnand %p5393_p12, %p5387_p5 }
  0x4e   : > { %5397 = shalt.err (!%p5394_p0)
}
  0x4f   : > { %4921 = dma.hbm_to_vmem [thread:$0]  (!%p5605_p8), %s5653_s27, 2048, %s5655_s13, %s478_s23, %s5469_s16, %s5469_s16, %s5470_s21  }
  0x50   : > { %506 = sbr.rel (%p5646_p3) target bundleno = 6092 (0x17cc), region = 72 }
  0x57   : > { %s508_s25 = sand.u32 1, %s5458_s26   ;;  %p6580_p7 = scmp.ne.s32.totalorder %s6573_s17, 0 }
  0x58   : > { %s4125_s5 = sshll.u32 %s508_s25, 6  ;;  %s509_s19 = scalar_lea.sflag [#allocation5], %s508_s25 }
  0x59   : > { %s5689_s22 = scalar_lea.vmem [#allocation4], %s4125_s5 }
  0x5a   : > { %5441 = dma.done.wait (%p6580_p7), %s509_s19, 1024  }
  0x5b   : > { %5443 = vsyncadd (%p6580_p7), %s509_s19, 4294966272  ;;  %s4126_s18 = sshll.u32 %s508_s25, 7  ;;  %s518_s14 = scalar_lea.sflag [#allocation8], %s508_s25 }
  0x5c   : > { %s5695_s30 = scalar_lea.vmem [#allocation7], %s4126_s18 }
  0x5d   : > { %6581 = sst [smem:[#allocation17_spill]] %s5695_s30 }
  0x5e   : > { %5445 = dma.done.wait (%p6580_p7), %s518_s14, 2048  }
  0x5f   : > { %5447 = vsyncadd (%p6580_p7), %s518_s14, 4294965248  ;;  %p596_p8 = scmp.lt.s32.totalorder %s5572_s29, 1  ;;  %p4131_p11 = scmp.ne.s32.totalorder %s5572_s29, 0 }
  0x60   : > { %v633_v0 = vld [vmem:[%s6545_s0] sm:$0xff] (!%p4131_p11)  ;;  %v634_v1 = vld [vmem:[%s6545_s0 + $0x8] sm:$0xff] (!%p4131_p11)  ;;  %v635_v2 = vld [vmem:[%s6545_s0 + $0x10] sm:$0xff] (!%p4131_p11) }
  0x61   : > { %s5703_s13 = scalar_select %p596_p8, %s5572_s29, 1 }
  0x62   : > { %632 = sbr.rel (%p4131_p11) target bundleno = 105 (0x69), region = 84  ;;  %637 = vst [vmem:[#allocation2] sm:$0xff] (!%p4131_p11), %v633_v0  ;;  %638 = vst [vmem:[#allocation2 + $0x8] sm:$0xff] (!%p4131_p11), %v634_v1  ;;  %v636_v3 = vld [vmem:[%s6545_s0 + $0x18] sm:$0xff] (!%p4131_p11) }
  0x63   : > { %s4906_s24 = smul.u32 192, %s5703_s13  ;;  %s612_s18 = scalar_lea.vmem %s6552_s7, %s5703_s13  ;;  %639 = vst [vmem:[#allocation2 + $0x10] sm:$0xff] (!%p4131_p11), %v635_v2  ;;  %640 = vst [vmem:[#allocation2 + $0x18] sm:$0xff] (!%p4131_p11), %v636_v3 }
  0x64   : > { %s615_s16 = scalar_lea.vmem %s6553_s8, %s5703_s13  ;;  %s4305_s17 = sshll.u32 %s5703_s13, 7 }
  0x65   : > { %s5729_s21 = scalar_lea.vmem %s6549_s4, %s4906_s24  ;;  %s5735_s30 = scalar_lea.vmem %s6554_s9, %s4305_s17 }
  0x66   : > { %s4130_s28 = sshll.u32 %s5703_s13, 1  ;;  %s627_s27 = scalar_lea.vmem %s6557_s12, %s5703_s13 }
  0x67   : > { %s5741_s5 = scalar_lea.vmem %s6555_s10, %s4130_s28 }
  0x69 PF: > { %v641_v4 = vld [vmem:[#allocation2] sm:$0xff]  ;;  %v642_v6 = vld [vmem:[#allocation2 + $0x8] sm:$0xff]  ;;  %v5120_v31 = vld [vmem:[%s5729_s21 + $0x30] ss:$12 sps:$4 sm:$0xff]   ;;  %v5472_v43 = vmov 0   ;;  %s6582_s19 = scalar_lea.vmem %s6547_s2, %s5703_s13  ;;  %s6583_s26 = scalar_lea.vmem %s6548_s3, %s5703_s13  ;;  %vm976_vm0 = vcmask 130048  }
  0x6a   : > { %v643_v5 = vld [vmem:[#allocation2 + $0x10] sm:$0xff]  ;;  %647 = vadd.xlane.f32.xlu0 %v641_v4  ;;  %v644_v7 = vld [vmem:[#allocation2 + $0x18] sm:$0xff]  ;;  %v5112_v9 = vld [vmem:[%s5729_s21] ss:$12 sps:$4 sm:$0xff]   ;;  %906 = vmatprep.mubr.bf16.mxu0 %v5472_v43  ;;  %vm1098_vm2 = vcmask 261120   ;;  %s5474_s14 = smov 96  }
  0x6b   : > { %651 = vadd.xlane.f32.xlu1 %v643_v5  ;;  %v5110_v8 = vld [vmem:[%s5729_s21 + $0x4] ss:$12 sps:$4 sm:$0xff]   ;;  %v5113_v10 = vld [vmem:[%s5729_s21 + $0x1c] ss:$12 sps:$4 sm:$0xff]   ;;  %v5117_v29 = vld [vmem:[%s5729_s21 + $0x34] ss:$12 sps:$4 sm:$0xff]  }
  0x6c   : > { %v5115_v11 = vld [vmem:[%s5729_s21 + $0x8] ss:$12 sps:$4 sm:$0xff]   ;;  %874 = vmatprep.subr.bf16.mxu0 %v5110_v8  ;;  %v5116_v28 = vld [vmem:[%s5729_s21 + $0x18] ss:$12 sps:$4 sm:$0xff]   ;;  %v5119_v30 = vld [vmem:[%s5729_s21 + $0x20] ss:$12 sps:$4 sm:$0xff]  }
  0x6d   : > { %875 = vmatpush1.bf16.msra.mxu0 %v5112_v9  ;;  %4482 = vmatprep.subr.bf16.mxu1 %v5115_v11  ;;  %v5121_v32 = vld [vmem:[%s5729_s21 + $0x4c] ss:$12 sps:$4 sm:$0xff]   ;;  %v5124_v34 = vld [vmem:[%s5729_s21 + $0x48] ss:$12 sps:$4 sm:$0xff]   ;;  %v5125_v35 = vld [vmem:[%s5729_s21 + $0x64] ss:$12 sps:$4 sm:$0xff]  }
  0x6e   : > { %649 = vadd.xlane.f32.xlu0 %v642_v6  ;;  %876 = vmatprep.subr.bf16.mxu0 %v5113_v10  ;;  %v5123_v33 = vld [vmem:[%s5729_s21 + $0x38] ss:$12 sps:$4 sm:$0xff]   ;;  %v5127_v36 = vld [vmem:[%s5729_s21 + $0x50] ss:$12 sps:$4 sm:$0xff]   ;;  %v5128_v37 = vld [vmem:[%s5729_s21 + $0x60] ss:$12 sps:$4 sm:$0xff]  }
  0x6f   : > { %653 = vadd.xlane.f32.xlu1 %v644_v7  ;;  %4483 = vmatpush3.bf16.msra.mxu1 %v5115_v11  ;;  %v5129_v38 = vld [vmem:[%s5729_s21 + $0x7c] ss:$12 sps:$4 sm:$0xff]   ;;  %v5132_v40 = vld [vmem:[%s5729_s21 + $0x78] ss:$12 sps:$4 sm:$0xff]   ;;  %v5133_v41 = vld [vmem:[%s5729_s21 + $0x94] ss:$12 sps:$4 sm:$0xff]  }
  0x70   : > { %4484 = vmatprep.subr.bf16.mxu1 %v5119_v30  ;;  %v5131_v39 = vld [vmem:[%s5729_s21 + $0x68] ss:$12 sps:$4 sm:$0xff]   ;;  %v5135_v42 = vld [vmem:[%s5729_s21 + $0x80] ss:$12 sps:$4 sm:$0xff]   ;;  %v5136_v44 = vld [vmem:[%s5729_s21 + $0x90] ss:$12 sps:$4 sm:$0xff]  }
  0x71   : > { %877 = vmatpush1.bf16.msra.mxu0 %v5116_v28  ;;  %v5137_v45 = vld [vmem:[%s5729_s21 + $0xac] ss:$12 sps:$4 sm:$0xff]   ;;  %v5140_v47 = vld [vmem:[%s5729_s21 + $0xa8] ss:$12 sps:$4 sm:$0xff]   ;;  %v5141_v48 = vld [vmem:[%s5729_s21 + $0xb0] ss:$12 sps:$4 sm:$0xff]  }
  0x72   : > { %878 = vmatprep.subr.bf16.mxu0 %v5117_v29  ;;  %v5139_v46 = vld [vmem:[%s5729_s21 + $0x98] ss:$12 sps:$4 sm:$0xff]   ;;  %v4132_v63 = vld [vmem:[%s6582_s19] ss:$0 sm:$0xff]  ;;  %vm5824_vm1 = vmpackc.low %vm976_vm0, %vm976_vm0  ;;  %s5473_s19 = smov 112   ;;  %s5475_s11 = smov 80  }
  0x73   : > { %4485 = vmatpush3.bf16.msra.mxu1 %v5119_v30  ;;  %s5477_s23 = smov 48   ;;  %s5478_s17 = smov 32   ;;  %vm1546_vm3 = vcmask 261248   ;;  %vm1849_vm4 = vcmask 392448   ;;  %vm2152_vm5 = vcmask 523648   ;;  %vm2455_vm6 = vcmask 654848  }
  0x74   : > { %4486 = vmatprep.subr.bf16.mxu1 %v5123_v33  ;;  %s5479_s20 = smov 16   ;;  %vm2758_vm7 = vcmask 786048   ;;  %vm3061_vm8 = vcmask 917248   ;;  %vm3364_vm9 = vcmask 1048448   ;;  %p4298_p3 = scmp.ne.s32.totalorder %s5572_s29, 1 }
  0x75   : > { %879 = vmatpush1.bf16.msra.mxu0 %v5120_v31 }
  0x76   : > { %880 = vmatprep.subr.bf16.mxu0 %v5121_v32 }
  0x77   : > { %4487 = vmatpush3.bf16.msra.mxu1 %v5123_v33 }
  0x78   : > { %4488 = vmatprep.subr.bf16.mxu1 %v5127_v36 }
  0x79   : > { %881 = vmatpush1.bf16.msra.mxu0 %v5124_v34 }
  0x7a   : > { %882 = vmatprep.subr.bf16.mxu0 %v5125_v35 }
  0x7b   : > { %4489 = vmatpush3.bf16.msra.mxu1 %v5127_v36 }
  0x7c   : > { %4490 = vmatprep.subr.bf16.mxu1 %v5131_v39 }
  0x7d   : > { %883 = vmatpush1.bf16.msra.mxu0 %v5128_v37 }
  0x7e   : > { %884 = vmatprep.subr.bf16.mxu0 %v5129_v38 }
  0x7f   : > { %4491 = vmatpush3.bf16.msra.mxu1 %v5131_v39  ;;  %v5857_v39 = vld [vmem:[%s6546_s1 + $0x8] sm:$0xff] }
  0x80   : > { %4492 = vmatprep.subr.bf16.mxu1 %v5135_v42 }
  0x81   : > { %885 = vmatpush1.bf16.msra.mxu0 %v5132_v40 }
  0x82   : > { %886 = vmatprep.subr.bf16.mxu0 %v5133_v41 }
  0x83   : > { %4493 = vmatpush3.bf16.msra.mxu1 %v5135_v42  ;;  %v5862_v42 = vld [vmem:[%s6546_s1] sm:$0xff] }
  0x84   : > { %4494 = vmatprep.subr.bf16.mxu1 %v5139_v46 }
  0x85   : > { %887 = vmatpush1.bf16.msra.mxu0 %v5136_v44 }
  0x86   : > { %888 = vmatprep.subr.bf16.mxu0 %v5137_v45 }
  0x87   : > { %4495 = vmatpush3.bf16.msra.mxu1 %v5139_v46 }
  0x88   : > { %4496 = vmatprep.subr.bf16.mxu1 %v5141_v48 }
  0x89   : > { %889 = vmatpush1.bf16.msra.mxu0 %v5140_v47 }
  0x8b   : > { %4497 = vmatpush3.bf16.msra.mxu1 %v5141_v48  ;;  %v5869_v48 = vld [vmem:[%s6546_s1 + $0x18] sm:$0xff] }
  0xf7   : > { %v648_v12 = vpop.xlane.xlu0 %647 }
  0xf8   : > { %v652_v13 = vpop.xlane.xlu1 %651  ;;  %v656_v14 = vmul.f32 0.0078125, %v648_v12 }
  0xf9   : > { %v658_v15 = vmul.f32 0.0078125, %v652_v13 }
  0xfa   : > { %v5764_v16 = vsub.f32 %v641_v4, %v656_v14  ;;  %v4133_v4 = vld [vmem:[%s6583_s26] ss:$0 sm:$0xff]  ;;  %s5476_s26 = smov 64  }
  0xfb   : > { %v5766_v17 = vsub.f32 %v643_v5, %v658_v15  ;;  %v650_v18 = vpop.xlane.xlu0 %649 }
  0xfc   : > { %v654_v19 = vpop.xlane.xlu1 %653  ;;  %v657_v20 = vmul.f32 0.0078125, %v650_v18  ;;  %v664_v21 = vmul.f32 %v5764_v16, %v5764_v16 }
  0xfd   : > { %v659_v22 = vmul.f32 0.0078125, %v654_v19  ;;  %v666_v23 = vmul.f32 %v5766_v17, %v5766_v17 }
  0xfe   : > { %668 = vadd.xlane.f32.xlu0 %v664_v21  ;;  %v5772_v24 = vsub.f32 %v642_v6, %v657_v20 }
  0xff   : > { %v5774_v25 = vsub.f32 %v644_v7, %v659_v22 }
 0x100   : > { %v665_v26 = vmul.f32 %v5772_v24, %v5772_v24 }
 0x101   : > { %v667_v27 = vmul.f32 %v5774_v25, %v5774_v25 }
 0x102   : > { %672 = vadd.xlane.f32.xlu0 %v666_v23  ;;  %670 = vadd.xlane.f32.xlu1 %v665_v26 }
 0x106   : > { %674 = vadd.xlane.f32.xlu1 %v667_v27 }
 0x18b   : > { %v669_v49 = vpop.xlane.xlu0 %668 }
 0x18c   : > { %v676_v50 = vmul.f32 0.0078125, %v669_v49 }
 0x18e   : > { %v680_v51 = vadd.f32 1e-05, %v676_v50 }
 0x18f   : > { %v671_v52 = vpop.xlane.xlu1 %670  ;;  %v673_v53 = vpop.xlane.xlu0 %672 }
 0x190   : > { %5190 = vrsqrt.f32 %v680_v51  ;;  %v677_v54 = vmul.f32 0.0078125, %v671_v52  ;;  %v678_v55 = vmul.f32 0.0078125, %v673_v53  ;;  %v5875_v52 = vld [vmem:[%s6546_s1 + $0x10] sm:$0xff] }
 0x192   : > { %v681_v56 = vadd.f32 1e-05, %v677_v54  ;;  %v682_v57 = vadd.f32 1e-05, %v678_v55 }
 0x193   : > { %v675_v58 = vpop.xlane.xlu1 %674 }
 0x194   : > { %5192 = vrsqrt.f32 %v681_v56  ;;  %v679_v59 = vmul.f32 0.0078125, %v675_v58 }
 0x195   : > { %5194 = vrsqrt.f32 %v682_v57 }
 0x196   : > { %v683_v60 = vadd.f32 1e-05, %v679_v59 }
 0x198   : > { %5196 = vrsqrt.f32 %v683_v60 }
 0x19a   : > { %v5191_v61 = vpop.eup %5190 }
 0x19b   : > { %v688_v62 = vmul.f32 %v5191_v61, %v5764_v16 }
 0x19d   : > { %v698_v3 = vmul.f32 %v4132_v63, %v688_v62 }
 0x19e   : > { %v5193_v0 = vpop.eup %5192 }
 0x19f   : > { %v5195_v1 = vpop.eup %5194  ;;  %v689_v2 = vmul.f32 %v5193_v0, %v5772_v24  ;;  %v708_v8 = vadd.f32 %v4133_v4, %v698_v3 }
 0x1a0   : > { %v690_v5 = vmul.f32 %v5195_v1, %v5766_v17 }
 0x1a1   : > { %v699_v6 = vmul.f32 %v4132_v63, %v689_v2 }
 0x1a2   : > { %v5197_v7 = vpop.eup %5196  ;;  %v700_v11 = vmul.f32 %v4132_v63, %v690_v5 }
 0x1a3   : > { %v709_v9 = vadd.f32 %v4133_v4, %v699_v6  ;;  %v691_v10 = vmul.f32 %v5197_v7, %v5774_v25 }
 0x1a4   : > { %v710_v14 = vadd.f32 %v4133_v4, %v700_v11 }
 0x1a5   : > { %v712_v12 = vpack.c.bf16 %v709_v9, %v708_v8  ;;  %v701_v13 = vmul.f32 %v4132_v63, %v691_v10 }
 0x1a7   : > { %907 = vmatmul.mubr.bf16.vlgmr.msra.gmra.mrb[0].mxu0 %v712_v12  ;;  %4498 = vmatprep.mubr.bf16.mxu1 %v712_v12  ;;  %v711_v15 = vadd.f32 %v4133_v4, %v701_v13 }
 0x1a8   : > { %916 = vmatprep.mubr.bf16.mxu0 %v5472_v43 }
 0x1a9   : > { %v713_v16 = vpack.c.bf16 %v711_v15, %v710_v14 }
 0x1ab   : > { %4499 = vmatmul.mubr.bf16.vlgmr.msra.gmra.mrb[0].mxu1 %v713_v16 }
 0x1af   : > { %917 = vmatmul.mubr.bf16.gmra.mrb[4].mxu0 %v713_v16 }
 0x27a   : > { %v5816_v17 = vpop.f32.mrb[0].mxu0 }
 0x27b   : > { %v910_v18 = vpop.f32.mrb[1].mxu0  ;;  %4510 = vmatprep.mubr.msk.f32.mxu0 %vm976_vm0, %v5816_v17 }
 0x27c   : > { %v5820_v19 = vpop.f32.mrb[2].mxu0 }
 0x27d   : > { %v914_v20 = vpop.f32.mrb[3].mxu0 }
 0x27e   : > { %v4500_v22 = vpop.f32.mrb[0].mxu1  ;;  %v4746_v23 = vpack.c.bf16 %v914_v20, %v910_v18  ;;  %v5828_v24 = vpack.i.bf16 %v914_v20, %v910_v18 }
 0x27f   : > { %v961_v25 = vpop.f32.mrb[1].mxu1 }
 0x280   : > { %v4501_v26 = vpop.f32.mrb[2].mxu1  ;;  %4748 = vmatprep.subr.msk.bf16.mxu0 %vm5824_vm1, %v4746_v23 }
 0x281   : > { %v964_v27 = vpop.f32.mrb[3].mxu1  ;;  %4751 = vmatpush3.bf16.xpose.msk.msra.mxu0 %vm5824_vm1, %v4746_v23  ;;  %v4762_v28 = vpack.c.bf16 %v4501_v26, %v4500_v22  ;;  %v5834_v29 = vpack.i.bf16 %v4501_v26, %v4500_v22 }
 0x282   : > { %v5836_v30 = vpop.f32.mrb[4].mxu0  ;;  %v4758_v31 = vpack.c.bf16 %v964_v27, %v961_v25  ;;  %v5838_v32 = vpack.i.bf16 %v964_v27, %v961_v25 }
 0x283   : > { %v920_v33 = vpop.f32.mrb[5].mxu0 }
 0x284   : > { %v5840_v34 = vpop.f32.mrb[6].mxu0  ;;  %4759 = vmatprep.subr.bf16.mxu1 %v4758_v31 }
 0x285   : > { %v924_v35 = vpop.f32.mrb[7].mxu0  ;;  %4761 = vmatpush3.bf16.msra.mxu1 %v4758_v31 }
 0x286   : > { %4763 = vmatprep.subr.bf16.mxu1 %v4762_v28  ;;  %v4752_v36 = vpack.c.bf16 %v924_v35, %v920_v33  ;;  %v5842_v37 = vpack.i.bf16 %v924_v35, %v920_v33 }
 0x288   : > { %4754 = vmatprep.subr.msk.bf16.mxu0 %vm5824_vm1, %v4752_v36 }
 0x289   : > { %4757 = vmatpush3.bf16.xpose.msk.msra.mxu0 %vm5824_vm1, %v4752_v36  ;;  %4765 = vmatpush3.bf16.msra.mxu1 %v4762_v28 }
 0x290   : > { %4511 = vmatmul.mubr.msk.f32.vlgmr.msra.gmra.mrb[8].mxu0 %vm976_vm0, %v5820_v19 }
 0x291   : > { %4513 = vmatprep.mubr.msk.f32.mxu0 %vm976_vm0, %v5836_v30 }
 0x294   : > { %4514 = vmatmul.mubr.msk.f32.gmra.mrb[10].mxu0 %vm976_vm0, %v5840_v34 }
 0x363   : > { %v4512_v38 = vpop.f32.mrb[8].mxu0 }
 0x364   : > { %v1087_v40 = vmul.f32 0.25, %v4512_v38  ;;  %v1067_v41 = vpop.f32.mrb[9].mxu0 }
 0x365   : > { %v1086_v44 = vmul.f32 0.25, %v1067_v41 }
 0x366   : > { %v1095_v45 = vadd.f32 %v5857_v39, %v1087_v40 }
 0x367   : > { %v4515_v46 = vpop.f32.mrb[10].mxu0  ;;  %v1094_v47 = vadd.f32 %v5862_v42, %v1086_v44 }
 0x368   : > { %v1089_v49 = vmul.f32 0.25, %v4515_v46  ;;  %v1077_v50 = vpop.f32.mrb[11].mxu0  ;;  %v1102_v51 = vsel %vm1098_vm2, %v1095_v45, -inf }
 0x369   : > { %v1088_v53 = vmul.f32 0.25, %v1077_v50  ;;  %1103 = vmax.xlane.f32.xlu1 %v1102_v51  ;;  %v1099_v54 = vsel %vm1098_vm2, %v1094_v47, -inf }
 0x36a   : > { %1100 = vmax.xlane.f32.xlu0 %v1099_v54  ;;  %v1097_v55 = vadd.f32 %v5869_v48, %v1089_v49 }
 0x36b   : > { %v1096_v56 = vadd.f32 %v5875_v52, %v1088_v53 }
 0x36c   : > { %v1108_v57 = vsel %vm1098_vm2, %v1097_v55, -inf }
 0x36d   : > { %1109 = vmax.xlane.f32.xlu1 %v1108_v57  ;;  %v1105_v58 = vsel %vm1098_vm2, %v1096_v56, -inf }
 0x36e   : > { %1106 = vmax.xlane.f32.xlu0 %v1105_v58 }
 0x3f6   : > { %v1104_v59 = vpop.xlane.xlu1 %1103 }
 0x3f7   : > { %v1112_v60 = vsub.f32 %v1095_v45, %v1104_v59  ;;  %v1101_v61 = vpop.xlane.xlu0 %1100 }
 0x3f8   : > { %v1111_v62 = vsub.f32 %v1094_v47, %v1101_v61 }
 0x3f9   : > { %v1117_v63 = vmul.f32 1.442695, %v1112_v60 }
 0x3fa   : > { %v1115_v0 = vmul.f32 1.442695, %v1111_v62  ;;  %v1110_v1 = vpop.xlane.xlu1 %1109 }
 0x3fb   : > { %5198 = vpow2.f32 %v1117_v63  ;;  %v1114_v2 = vsub.f32 %v1097_v55, %v1110_v1  ;;  %v1107_v3 = vpop.xlane.xlu0 %1106 }
 0x3fc   : > { %5200 = vpow2.f32 %v1115_v0  ;;  %v1113_v4 = vsub.f32 %v1096_v56, %v1107_v3 }
 0x3fd   : > { %v1121_v5 = vmul.f32 1.442695, %v1114_v2 }
 0x3fe   : > { %v1119_v6 = vmul.f32 1.442695, %v1113_v4 }
 0x3ff   : > { %5202 = vpow2.f32 %v1121_v5 }
 0x400   : > { %5204 = vpow2.f32 %v1119_v6 }
 0x405   : > { %v5199_v7 = vpop.eup %5198 }
 0x406   : > { %v5201_v8 = vpop.eup %5200  ;;  %v1126_v9 = vsel %vm1098_vm2, %v5199_v7, 0.0 }
 0x407   : > { %1127 = vadd.xlane.f32.xlu1 %v1126_v9  ;;  %v1123_v10 = vsel %vm1098_vm2, %v5201_v8, 0.0 }
 0x408   : > { %1124 = vadd.xlane.f32.xlu0 %v1123_v10 }
 0x409   : > { %v5203_v11 = vpop.eup %5202 }
 0x40a   : > { %v5205_v12 = vpop.eup %5204  ;;  %v1132_v13 = vsel %vm1098_vm2, %v5203_v11, 0.0 }
 0x40b   : > { %1133 = vadd.xlane.f32.xlu1 %v1132_v13  ;;  %v1129_v14 = vsel %vm1098_vm2, %v5205_v12, 0.0 }
 0x40c   : > { %1130 = vadd.xlane.f32.xlu0 %v1129_v14 }
 0x41c   : > { %4976 = vrot.lane.b32.xlu1 %v5842_v37, %s5473_s19 }
 0x420   : > { %4981 = vrot.lane.b32.xlu1 %v5828_v24, %s5474_s14 }
 0x422   : > { %4971 = vrot.lane.b32.xlu0 %v5828_v24, %s5473_s19 }
 0x424   : > { %1244 = vrot.lane.b32.xlu1 %v5816_v17, %s5473_s19 }
 0x426   : > { %1246 = vrot.lane.b32.xlu0 %v5820_v19, %s5473_s19 }
 0x428   : > { %4986 = vrot.lane.b32.xlu1 %v5842_v37, %s5474_s14 }
 0x42a   : > { %1248 = vrot.lane.b32.xlu0 %v5836_v30, %s5473_s19 }
 0x42c   : > { %1250 = vrot.lane.b32.xlu1 %v5840_v34, %s5473_s19 }
 0x42e   : > { %1551 = vrot.lane.b32.xlu0 %v5816_v17, %s5474_s14 }
 0x430   : > { %1553 = vrot.lane.b32.xlu1 %v5820_v19, %s5474_s14 }
 0x432   : > { %1555 = vrot.lane.b32.xlu0 %v5836_v30, %s5474_s14 }
 0x434   : > { %1557 = vrot.lane.b32.xlu1 %v5840_v34, %s5474_s14 }
 0x494   : > { %v1128_v15 = vpop.xlane.xlu1 %1127 }
 0x495   : > { %5206 = vrcp.f32 %v1128_v15  ;;  %v1125_v16 = vpop.xlane.xlu0 %1124 }
 0x496   : > { %5208 = vrcp.f32 %v1125_v16 }
 0x498   : > { %v1134_v18 = vpop.xlane.xlu1 %1133 }
 0x499   : > { %5210 = vrcp.f32 %v1134_v18  ;;  %v1131_v20 = vpop.xlane.xlu0 %1130 }
 0x49a   : > { %5212 = vrcp.f32 %v1131_v20 }
 0x49c   : > { %v4977_v22 = vpop.permute.xlu1 %4976 }
 0x49d   : > { %v4972_v23 = vpop.permute.xlu0 %4971  ;;  %v4979_v31 = vunpack.i.h.bf16 %v4977_v22  ;;  %v4978_v33 = vunpack.i.l.bf16 %v4977_v22 }
 0x49e   : > { %v4974_v25 = vunpack.i.h.bf16 %v4972_v23  ;;  %v4973_v26 = vunpack.i.l.bf16 %v4972_v23 }
 0x49f   : > { %v5207_v27 = vpop.eup %5206  ;;  %v4772_v45 = vpack.c.bf16 %v4979_v31, %v4978_v33 }
 0x4a0   : > { %v5209_v28 = vpop.eup %5208  ;;  %v4766_v35 = vpack.c.bf16 %v4974_v25, %v4973_v26  ;;  %v4982_v36 = vpop.permute.xlu1 %4981  ;;  %v1140_v40 = vmul.f32 %v5207_v27, %v5199_v7 }
 0x4a1   : > { %v1139_v38 = vmul.f32 %v5209_v28, %v5201_v8  ;;  %v4984_v50 = vunpack.i.h.bf16 %v4982_v36  ;;  %v4983_v51 = vunpack.i.l.bf16 %v4982_v36  ;;  %v1247_v54 = vpop.permute.xlu0 %1246 }
 0x4a2   : > { %4768 = vmatprep.subr.msk.bf16.mxu1 %vm5824_vm1, %v4766_v35 }
 0x4a3   : > { %v5211_v41 = vpop.eup %5210  ;;  %4524 = vmatprep.mubr.msk.f32.mxu1 %vm1098_vm2, %v1139_v38  ;;  %v4786_v53 = vpack.c.bf16 %v4984_v50, %v4983_v51 }
 0x4a4   : > { %v5213_v44 = vpop.eup %5212  ;;  %4525 = vmatmul.mubr.msk.f32.vlgmr.msra.gmra.mrb[4].mxu1 %vm1098_vm2, %v1140_v40  ;;  %v1142_v47 = vmul.f32 %v5211_v41, %v5203_v11  ;;  %v1245_v49 = vpop.permute.xlu1 %1244 }
 0x4a5   : > { %4771 = vmatpush3.bf16.xpose.msk.msra.mxu1 %vm5824_vm1, %v4766_v35  ;;  %v1141_v46 = vmul.f32 %v5213_v44, %v5205_v12  ;;  %v1249_v58 = vpop.permute.xlu0 %1248 }
 0x4a6   : > { %4774 = vmatprep.subr.msk.bf16.mxu1 %vm5824_vm1, %v4772_v45 }
 0x4a7   : > { %4527 = vmatprep.mubr.msk.f32.mxu1 %vm1098_vm2, %v1141_v46 }
 0x4a8   : > { %4528 = vmatmul.mubr.msk.f32.gmra.mrb[6].mxu1 %vm1098_vm2, %v1142_v47  ;;  %v4987_v55 = vpop.permute.xlu1 %4986 }
 0x4a9   : > { %4538 = vmatprep.mubr.msk.f32.mxu1 %vm976_vm0, %v1245_v49  ;;  %v4989_v56 = vunpack.i.h.bf16 %v4987_v55  ;;  %v4988_v57 = vunpack.i.l.bf16 %v4987_v55  ;;  %v1552_v61 = vpop.permute.xlu0 %1551 }
 0x4ab   : > { %v4792_v59 = vpack.c.bf16 %v4989_v56, %v4988_v57 }
 0x4ac   : > { %v1251_v60 = vpop.permute.xlu1 %1250 }
 0x4ad   : > { %4777 = vmatpush3.bf16.xpose.msk.msra.mxu1 %vm5824_vm1, %v4772_v45  ;;  %v1556_v63 = vpop.permute.xlu0 %1555 }
 0x4ae   : > { %4788 = vmatprep.subr.msk.bf16.mxu1 %vm5824_vm1, %v4786_v53 }
 0x4b0   : > { %v1554_v62 = vpop.permute.xlu1 %1553 }
 0x4b4   : > { %4539 = vmatmul.mubr.msk.f32.vlgmr.msra.gmra.mrb[8].mxu1 %vm976_vm0, %v1247_v54  ;;  %v1558_v0 = vpop.permute.xlu1 %1557 }
 0x4b5   : > { %4541 = vmatprep.mubr.msk.f32.mxu1 %vm976_vm0, %v1249_v58  ;;  %4791 = vmatpush3.bf16.xpose.msk.msra.mxu1 %vm5824_vm1, %v4786_v53 }
 0x4b6   : > { %4794 = vmatprep.subr.msk.bf16.mxu1 %vm5824_vm1, %v4792_v59 }
 0x4b8   : > { %4542 = vmatmul.mubr.msk.f32.gmra.mrb[10].mxu1 %vm976_vm0, %v1251_v60 }
 0x4b9   : > { %4566 = vmatprep.mubr.msk.f32.mxu1 %vm976_vm0, %v1552_v61 }
 0x4bd   : > { %4797 = vmatpush3.bf16.xpose.msk.msra.mxu1 %vm5824_vm1, %v4792_v59 }
 0x4c4   : > { %4567 = vmatmul.mubr.msk.f32.vlgmr.msra.gmra.mrb[12].mxu1 %vm976_vm0, %v1554_v62 }
 0x4c5   : > { %4569 = vmatprep.mubr.msk.f32.mxu1 %vm976_vm0, %v1556_v63 }
 0x4c8   : > { %4570 = vmatmul.mubr.msk.f32.gmra.mrb[14].mxu1 %vm976_vm0, %v1558_v0 }
 0x577   : > { %v4526_v1 = vpop.f32.mrb[4].mxu1 }
 0x578   : > { %1241 = vst.msk [vmem:[#allocation3 + $0x8] sm:$0xff] %vm976_vm0, %v4526_v1  ;;  %v1221_v2 = vpop.f32.mrb[5].mxu1 }
 0x579   : > { %1240 = vst.msk [vmem:[#allocation3] sm:$0xff] %vm976_vm0, %v1221_v2 }
 0x57b   : > { %v4529_v3 = vpop.f32.mrb[6].mxu1 }
 0x57c   : > { %1243 = vst.msk [vmem:[#allocation3 + $0x18] sm:$0xff] %vm976_vm0, %v4529_v3  ;;  %v1231_v4 = vpop.f32.mrb[7].mxu1 }
 0x57d   : > { %1242 = vst.msk [vmem:[#allocation3 + $0x10] sm:$0xff] %vm976_vm0, %v1231_v4 }
 0x587   : > { %v5942_v5 = vpop.f32.mrb[8].mxu1 }
 0x588   : > { %v1342_v6 = vpop.f32.mrb[9].mxu1  ;;  %v1362_v62 = vmul.f32 0.25, %v5942_v5 }
 0x589   : > { %v1361_v59 = vmul.f32 0.25, %v1342_v6 }
 0x58a   : > { %v5994_v2 = vadd.f32 %v1362_v62, %v5857_v39 }
 0x58b   : > { %v4543_v7 = vpop.f32.mrb[10].mxu1  ;;  %v5985_v61 = vadd.f32 %v1361_v59, %v5862_v42 }
 0x58c   : > { %v1352_v8 = vpop.f32.mrb[11].mxu1  ;;  %v1364_v63 = vmul.f32 0.25, %v4543_v7  ;;  %v1376_v5 = vsel %vm1098_vm2, %v5994_v2, -inf }
 0x58d   : > { %v1363_v60 = vmul.f32 0.25, %v1352_v8  ;;  %v1373_v0 = vsel %vm1098_vm2, %v5985_v61, -inf }
 0x58e   : > { %v5999_v4 = vadd.f32 %v1364_v63, %v5869_v48 }
 0x58f   : > { %v5991_v1 = vadd.f32 %v1363_v60, %v5875_v52 }
 0x590   : > { %v1382_v6 = vsel %vm1098_vm2, %v5999_v4, -inf }
 0x591   : > { %v1379_v3 = vsel %vm1098_vm2, %v5991_v1, -inf }
 0x597   : > { %v4568_v9 = vpop.f32.mrb[12].mxu1 }
 0x598   : > { %v1669_v10 = vmul.f32 0.25, %v4568_v9  ;;  %v1649_v11 = vpop.f32.mrb[13].mxu1 }
 0x599   : > { %v1668_v12 = vmul.f32 0.25, %v1649_v11 }
 0x59a   : > { %v1677_v13 = vadd.f32 %v1669_v10, %v5857_v39 }
 0x59b   : > { %v4571_v14 = vpop.f32.mrb[14].mxu1  ;;  %v1676_v15 = vadd.f32 %v1668_v12, %v5862_v42 }
 0x59c   : > { %v1659_v16 = vpop.f32.mrb[15].mxu1  ;;  %v1683_v18 = vsel %vm1098_vm2, %v1677_v13, -inf  ;;  %v1671_v20 = vmul.f32 0.25, %v4571_v14 }
 0x59d   : > { %v1670_v22 = vmul.f32 0.25, %v1659_v16  ;;  %1684 = vmax.xlane.f32.xlu1 %v1683_v18  ;;  %v1680_v23 = vsel %vm1098_vm2, %v1676_v15, -inf }
 0x59e   : > { %1681 = vmax.xlane.f32.xlu0 %v1680_v23  ;;  %v1679_v27 = vadd.f32 %v1671_v20, %v5869_v48 }
 0x59f   : > { %v1678_v25 = vadd.f32 %v1670_v22, %v5875_v52 }
 0x5a0   : > { %v1689_v28 = vsel %vm1098_vm2, %v1679_v27, -inf }
 0x5a1   : > { %v1686_v26 = vsel %vm1098_vm2, %v1678_v25, -inf }
 0x5a2   : > { %1687 = vmax.xlane.f32.xlu0 %v1686_v26 }
 0x5a6   : > { %1690 = vmax.xlane.f32.xlu0 %v1689_v28 }
 0x62a   : > { %v1685_v31 = vpop.xlane.xlu1 %1684 }
 0x62b   : > { %v1693_v33 = vsub.f32 %v1677_v13, %v1685_v31  ;;  %v1682_v35 = vpop.xlane.xlu0 %1681 }
 0x62c   : > { %v1692_v36 = vsub.f32 %v1676_v15, %v1682_v35 }
 0x62d   : > { %v1698_v38 = vmul.f32 1.442695, %v1693_v33 }
 0x62e   : > { %v1696_v40 = vmul.f32 1.442695, %v1692_v36 }
 0x62f   : > { %5214 = vpow2.f32 %v1698_v38  ;;  %v1688_v47 = vpop.xlane.xlu0 %1687 }
 0x630   : > { %5216 = vpow2.f32 %v1696_v40  ;;  %v1694_v49 = vsub.f32 %v1678_v25, %v1688_v47 }
 0x632   : > { %v1700_v50 = vmul.f32 1.442695, %v1694_v49 }
 0x633   : > { %v1691_v51 = vpop.xlane.xlu0 %1690 }
 0x634   : > { %v1695_v53 = vsub.f32 %v1679_v27, %v1691_v51  ;;  %5218 = vpow2.f32 %v1700_v50 }
 0x636   : > { %v1702_v54 = vmul.f32 1.442695, %v1695_v53 }
 0x638   : > { %5220 = vpow2.f32 %v1702_v54 }
 0x639   : > { %v5952_v41 = vpop.eup %5214 }
 0x63a   : > { %v5954_v44 = vpop.eup %5216  ;;  %v1707_v45 = vsel %vm1098_vm2, %v5952_v41, 0.0 }
 0x63b   : > { %1708 = vadd.xlane.f32.xlu1 %v1707_v45  ;;  %v1704_v46 = vsel %vm1098_vm2, %v5954_v44, 0.0 }
 0x63c   : > { %1705 = vadd.xlane.f32.xlu0 %v1704_v46 }
 0x63e   : > { %v5968_v55 = vpop.eup %5218 }
 0x63f   : > { %v1710_v56 = vsel %vm1098_vm2, %v5968_v55, 0.0 }
 0x642   : > { %v5972_v57 = vpop.eup %5220 }
 0x643   : > { %v1713_v58 = vsel %vm1098_vm2, %v5972_v57, 0.0 }
 0x64c   : > { %4996 = vrot.lane.b32.xlu1 %v5834_v29, %s5474_s14 }
 0x650   : > { %5001 = vrot.lane.b32.xlu1 %v5828_v24, %s5475_s11 }
 0x652   : > { %4991 = vrot.lane.b32.xlu0 %v5838_v32, %s5474_s14 }
 0x654   : > { %5006 = vrot.lane.b32.xlu1 %v5842_v37, %s5475_s11 }
 0x671   : > { %1711 = vadd.xlane.f32.xlu0 %v1710_v56 }
 0x678   : > { %1714 = vadd.xlane.f32.xlu1 %v1713_v58 }
 0x687   : > { %1854 = vrot.lane.b32.xlu0 %v5816_v17, %s5475_s11 }
 0x689   : > { %1856 = vrot.lane.b32.xlu1 %v5820_v19, %s5475_s11 }
 0x68b   : > { %1858 = vrot.lane.b32.xlu0 %v5836_v30, %s5475_s11 }
 0x68d   : > { %1860 = vrot.lane.b32.xlu1 %v5840_v34, %s5475_s11 }
 0x6aa   : > { %1374 = vmax.xlane.f32.xlu0 %v1373_v0 }
 0x6ae   : > { %1380 = vmax.xlane.f32.xlu0 %v1379_v3 }
 0x6b1   : > { %1377 = vmax.xlane.f32.xlu1 %v1376_v5 }
 0x6b2   : > { %1383 = vmax.xlane.f32.xlu0 %v1382_v6 }
 0x6c8   : > { %v1709_v7 = vpop.xlane.xlu1 %1708 }
 0x6c9   : > { %v1706_v8 = vpop.xlane.xlu0 %1705 }
 0x6ca   : > { %5222 = vrcp.f32 %v1706_v8 }
 0x6cb   : > { %5224 = vrcp.f32 %v1709_v7 }
 0x6cc   : > { %v4997_v9 = vpop.permute.xlu1 %4996 }
 0x6cd   : > { %v4992_v10 = vpop.permute.xlu0 %4991  ;;  %v4999_v11 = vunpack.i.h.bf16 %v4997_v9  ;;  %v4998_v12 = vunpack.i.l.bf16 %v4997_v9 }
 0x6ce   : > { %v4994_v13 = vunpack.i.h.bf16 %v4992_v10  ;;  %v4993_v14 = vunpack.i.l.bf16 %v4992_v10 }
 0x6cf   : > { %v4802_v22 = vpack.c.bf16 %v4999_v11, %v4998_v12 }
 0x6d0   : > { %v5002_v15 = vpop.permute.xlu1 %5001  ;;  %v4798_v16 = vpack.c.bf16 %v4994_v13, %v4993_v14 }
 0x6d1   : > { %v5004_v18 = vunpack.i.h.bf16 %v5002_v15  ;;  %v5003_v20 = vunpack.i.l.bf16 %v5002_v15 }
 0x6d2   : > { %4799 = vmatprep.subr.bf16.mxu1 %v4798_v16 }
 0x6d3   : > { %4801 = vmatpush3.bf16.msra.mxu1 %v4798_v16  ;;  %v4806_v27 = vpack.c.bf16 %v5004_v18, %v5003_v20 }
 0x6d4   : > { %v5223_v23 = vpop.eup %5222  ;;  %4803 = vmatprep.subr.bf16.mxu1 %v4802_v22  ;;  %v5007_v31 = vpop.permute.xlu1 %5006 }
 0x6d5   : > { %v5225_v25 = vpop.eup %5224  ;;  %v1720_v26 = vmul.f32 %v5223_v23, %v5954_v44  ;;  %v5009_v33 = vunpack.i.h.bf16 %v5007_v31  ;;  %v5008_v35 = vunpack.i.l.bf16 %v5007_v31 }
 0x6d6   : > { %v1721_v28 = vmul.f32 %v5225_v25, %v5952_v41 }
 0x6d7   : > { %4805 = vmatpush3.bf16.msra.mxu1 %v4802_v22  ;;  %4580 = vmatprep.mubr.msk.f32.mxu1 %vm1098_vm2, %v1720_v26  ;;  %v4812_v36 = vpack.c.bf16 %v5009_v33, %v5008_v35 }
 0x6d8   : > { %4808 = vmatprep.subr.msk.bf16.mxu1 %vm5824_vm1, %v4806_v27 }
 0x6da   : > { %4581 = vmatmul.mubr.msk.f32.vlgmr.msra.gmra.mrb[16].mxu1 %vm1098_vm2, %v1721_v28 }
 0x6e0   : > { %4811 = vmatpush3.bf16.xpose.msk.msra.mxu1 %vm5824_vm1, %v4806_v27 }
 0x6e1   : > { %4814 = vmatprep.subr.msk.bf16.mxu1 %vm5824_vm1, %v4812_v36 }
 0x6e8   : > { %4817 = vmatpush3.bf16.xpose.msk.msra.mxu1 %vm5824_vm1, %v4812_v36 }
 0x6fe   : > { %v1712_v38 = vpop.xlane.xlu0 %1711 }
 0x6ff   : > { %5226 = vrcp.f32 %v1712_v38 }
 0x702   : > { %v1855_v46 = vpop.permute.xlu0 %1854 }
 0x705   : > { %v1715_v40 = vpop.xlane.xlu1 %1714 }
 0x706   : > { %5228 = vrcp.f32 %v1715_v40  ;;  %v1859_v50 = vpop.permute.xlu0 %1858 }
 0x709   : > { %v5227_v41 = vpop.eup %5226  ;;  %v1857_v49 = vpop.permute.xlu1 %1856 }
 0x70a   : > { %v1722_v44 = vmul.f32 %v5227_v41, %v5968_v55 }
 0x70c   : > { %4583 = vmatprep.mubr.msk.f32.mxu1 %vm1098_vm2, %v1722_v44 }
 0x70d   : > { %v1861_v51 = vpop.permute.xlu1 %1860 }
 0x710   : > { %v5229_v45 = vpop.eup %5228 }
 0x711   : > { %v1723_v47 = vmul.f32 %v5229_v45, %v5972_v57 }
 0x713   : > { %4584 = vmatmul.mubr.msk.f32.gmra.mrb[18].mxu1 %vm1098_vm2, %v1723_v47 }
 0x714   : > { %4594 = vmatprep.mubr.msk.f32.mxu1 %vm976_vm0, %v1855_v46 }
 0x717   : > { %4595 = vmatmul.mubr.msk.f32.vlgmr.msra.gmra.mrb[20].mxu1 %vm976_vm0, %v1857_v49 }
 0x718   : > { %4597 = vmatprep.mubr.msk.f32.mxu1 %vm976_vm0, %v1859_v50 }
 0x71b   : > { %4598 = vmatmul.mubr.msk.f32.gmra.mrb[22].mxu1 %vm976_vm0, %v1861_v51 }
 0x737   : > { %v1375_v53 = vpop.xlane.xlu0 %1374 }
 0x738   : > { %v1385_v54 = vsub.f32 %v5985_v61, %v1375_v53 }
 0x73a   : > { %v1389_v55 = vmul.f32 1.442695, %v1385_v54 }
 0x73b   : > { %v1381_v56 = vpop.xlane.xlu0 %1380 }
 0x73c   : > { %5230 = vpow2.f32 %v1389_v55  ;;  %v1387_v57 = vsub.f32 %v5991_v1, %v1381_v56 }
 0x73e   : > { %v1393_v58 = vmul.f32 1.442695, %v1387_v57  ;;  %v1378_v59 = vpop.xlane.xlu1 %1377 }
 0x73f   : > { %v1386_v60 = vsub.f32 %v5994_v2, %v1378_v59  ;;  %v1384_v62 = vpop.xlane.xlu0 %1383 }
 0x740   : > { %5232 = vpow2.f32 %v1393_v58  ;;  %v1388_v63 = vsub.f32 %v5999_v4, %v1384_v62 }
 0x741   : > { %v1391_v0 = vmul.f32 1.442695, %v1386_v60 }
 0x742   : > { %v1395_v3 = vmul.f32 1.442695, %v1388_v63 }
 0x743   : > { %5234 = vpow2.f32 %v1391_v0 }
 0x744   : > { %5236 = vpow2.f32 %v1395_v3 }
 0x746   : > { %v5231_v5 = vpop.eup %5230 }
 0x747   : > { %v1397_v61 = vsel %vm1098_vm2, %v5231_v5, 0.0 }
 0x748   : > { %1398 = vadd.xlane.f32.xlu0 %v1397_v61 }
 0x74a   : > { %v6030_v6 = vpop.eup %5232 }
 0x74b   : > { %v1403_v1 = vsel %vm1098_vm2, %v6030_v6, 0.0 }
 0x74c   : > { %1404 = vadd.xlane.f32.xlu0 %v1403_v1 }
 0x74d   : > { %v6034_v7 = vpop.eup %5234 }
 0x74e   : > { %v1400_v2 = vsel %vm1098_vm2, %v6034_v7, 0.0  ;;  %v6038_v4 = vpop.eup %5236 }
 0x74f   : > { %1401 = vadd.xlane.f32.xlu1 %v1400_v2  ;;  %v1406_v8 = vsel %vm1098_vm2, %v6038_v4, 0.0 }
 0x753   : > { %1407 = vadd.xlane.f32.xlu1 %v1406_v8 }
 0x7ad   : > { %v6042_v9 = vpop.f32.mrb[16].mxu1 }
 0x7ae   : > { %v6044_v10 = vpop.f32.mrb[17].mxu1 }
 0x7d5   : > { %v1399_v11 = vpop.xlane.xlu0 %1398 }
 0x7d6   : > { %5238 = vrcp.f32 %v1399_v11 }
 0x7d9   : > { %v1405_v46 = vpop.xlane.xlu0 %1404 }
 0x7dc   : > { %v1402_v44 = vpop.xlane.xlu1 %1401 }
 0x7e0   : > { %v5239_v12 = vpop.eup %5238  ;;  %v1408_v45 = vpop.xlane.xlu1 %1407 }
 0x7e1   : > { %v1413_v13 = vmul.f32 %v5239_v12, %v5231_v5 }
 0x7e3   : > { %4552 = vmatprep.mubr.msk.f32.mxu0 %vm1098_vm2, %v1413_v13 }
 0x7e6   : > { %v6047_v14 = vpop.f32.mrb[18].mxu1 }
 0x7e7   : > { %v6049_v15 = vpop.f32.mrb[19].mxu1 }
 0x7ea   : > { %v4596_v16 = vpop.f32.mrb[20].mxu1 }
 0x7eb   : > { %v1972_v18 = vmul.f32 0.25, %v4596_v16  ;;  %v1952_v20 = vpop.f32.mrb[21].mxu1 }
 0x7ec   : > { %v1971_v22 = vmul.f32 0.25, %v1952_v20 }
 0x7ed   : > { %v1980_v23 = vadd.f32 %v1972_v18, %v5857_v39 }
 0x7ee   : > { %v4599_v25 = vpop.f32.mrb[22].mxu1  ;;  %v1979_v26 = vadd.f32 %v1971_v22, %v5862_v42 }
 0x7ef   : > { %v1974_v27 = vmul.f32 0.25, %v4599_v25  ;;  %v1962_v28 = vpop.f32.mrb[23].mxu1  ;;  %v1986_v31 = vsel %vm1098_vm2, %v1980_v23, -inf }
 0x7f0   : > { %v1973_v33 = vmul.f32 0.25, %v1962_v28  ;;  %1987 = vmax.xlane.f32.xlu1 %v1986_v31  ;;  %v1983_v35 = vsel %vm1098_vm2, %v1979_v26, -inf }
 0x7f1   : > { %1984 = vmax.xlane.f32.xlu0 %v1983_v35  ;;  %v1982_v36 = vadd.f32 %v1974_v27, %v5869_v48 }
 0x7f2   : > { %v1981_v38 = vadd.f32 %v1973_v33, %v5875_v52 }
 0x7f3   : > { %v1992_v40 = vsel %vm1098_vm2, %v1982_v36, -inf }
 0x7f4   : > { %1993 = vmax.xlane.f32.xlu1 %v1992_v40  ;;  %v1989_v41 = vsel %vm1098_vm2, %v1981_v38, -inf }
 0x7f5   : > { %1990 = vmax.xlane.f32.xlu0 %v1989_v41 }
 0x805   : > { %5016 = vrot.lane.b32.xlu1 %v5834_v29, %s5473_s19 }
 0x80b   : > { %5011 = vrot.lane.b32.xlu0 %v5838_v32, %s5473_s19 }
 0x87d   : > { %v1988_v47 = vpop.xlane.xlu1 %1987 }
 0x87e   : > { %v1996_v49 = vsub.f32 %v1980_v23, %v1988_v47  ;;  %v1985_v50 = vpop.xlane.xlu0 %1984 }
 0x87f   : > { %v1995_v51 = vsub.f32 %v1979_v26, %v1985_v50 }
 0x880   : > { %v2001_v53 = vmul.f32 1.442695, %v1996_v49 }
 0x881   : > { %v1999_v54 = vmul.f32 1.442695, %v1995_v51  ;;  %v1994_v55 = vpop.xlane.xlu1 %1993 }
 0x882   : > { %5240 = vpow2.f32 %v2001_v53  ;;  %v1991_v56 = vpop.xlane.xlu0 %1990 }
 0x883   : > { %5242 = vpow2.f32 %v1999_v54  ;;  %v1997_v20 = vsub.f32 %v1981_v38, %v1991_v56 }
 0x884   : > { %5244 = vrcp.f32 %v1402_v44 }
 0x885   : > { %5246 = vrcp.f32 %v1405_v46  ;;  %v5017_v57 = vpop.permute.xlu1 %5016 }
 0x886   : > { %v5012_v58 = vpop.permute.xlu0 %5011  ;;  %v5019_v59 = vunpack.i.h.bf16 %v5017_v57  ;;  %v5018_v60 = vunpack.i.l.bf16 %v5017_v57  ;;  %5248 = vrcp.f32 %v1408_v45 }
 0x887   : > { %v5014_v62 = vunpack.i.h.bf16 %v5012_v58  ;;  %v5013_v63 = vunpack.i.l.bf16 %v5012_v58 }
 0x888   : > { %v4782_v3 = vpack.c.bf16 %v5019_v59, %v5018_v60 }
 0x889   : > { %v4778_v0 = vpack.c.bf16 %v5014_v62, %v5013_v63 }
 0x88b   : > { %4779 = vmatprep.subr.bf16.mxu0 %v4778_v0 }
 0x88c   : > { %v6063_v5 = vpop.eup %5240  ;;  %4781 = vmatpush3.bf16.msra.mxu0 %v4778_v0 }
 0x88d   : > { %v5243_v61 = vpop.eup %5242  ;;  %4783 = vmatprep.subr.bf16.mxu0 %v4782_v3  ;;  %v2010_v1 = vsel %vm1098_vm2, %v6063_v5, 0.0 }
 0x88e   : > { %v5245_v2 = vpop.eup %5244  ;;  %2011 = vadd.xlane.f32.xlu1 %v2010_v1  ;;  %v2007_v8 = vsel %vm1098_vm2, %v5243_v61, 0.0 }
 0x88f   : > { %v5247_v11 = vpop.eup %5246  ;;  %2008 = vadd.xlane.f32.xlu0 %v2007_v8  ;;  %v1414_v12 = vmul.f32 %v5245_v2, %v6034_v7 }
 0x890   : > { %4785 = vmatpush3.bf16.msra.mxu0 %v4782_v3  ;;  %v5249_v13 = vpop.eup %5248  ;;  %v1415_v16 = vmul.f32 %v5247_v11, %v6030_v6  ;;  %v1998_v6 = vsub.f32 %v1982_v36, %v1994_v55 }
 0x891   : > { %v1416_v18 = vmul.f32 %v5249_v13, %v6038_v4  ;;  %v2003_v4 = vmul.f32 1.442695, %v1997_v20 }
 0x892   : > { %v2005_v7 = vmul.f32 1.442695, %v1998_v6 }
 0x893   : > { %4553 = vmatmul.mubr.msk.f32.vlgmr.msra.gmra.mrb[12].mxu0 %vm1098_vm2, %v1414_v12 }
 0x894   : > { %4555 = vmatprep.mubr.msk.f32.mxu0 %vm1098_vm2, %v1415_v16  ;;  %5250 = vpow2.f32 %v2005_v7 }
 0x895   : > { %5252 = vpow2.f32 %v2003_v4 }
 0x897   : > { %4556 = vmatmul.mubr.msk.f32.gmra.mrb[14].mxu0 %vm1098_vm2, %v1416_v18 }
 0x89e   : > { %v5251_v22 = vpop.eup %5250 }
 0x89f   : > { %5026 = vrot.lane.b32.xlu1 %v5834_v29, %s5475_s11  ;;  %v2016_v23 = vsel %vm1098_vm2, %v5251_v22, 0.0  ;;  %v5253_v25 = vpop.eup %5252 }
 0x8a0   : > { %v2013_v26 = vsel %vm1098_vm2, %v5253_v25, 0.0 }
 0x8a3   : > { %5031 = vrot.lane.b32.xlu1 %v5828_v24, %s5476_s26 }
 0x8a5   : > { %5021 = vrot.lane.b32.xlu0 %v5838_v32, %s5475_s11 }
 0x8a7   : > { %5036 = vrot.lane.b32.xlu1 %v5842_v37, %s5476_s26 }
 0x8c4   : > { %2017 = vadd.xlane.f32.xlu0 %v2016_v23 }
 0x8cb   : > { %2014 = vadd.xlane.f32.xlu1 %v2013_v26 }
 0x8da   : > { %2157 = vrot.lane.b32.xlu0 %v5816_v17, %s5476_s26 }
 0x8dc   : > { %2159 = vrot.lane.b32.xlu1 %v5820_v19, %s5476_s26 }
 0x8de   : > { %2161 = vrot.lane.b32.xlu0 %v5836_v30, %s5476_s26 }
 0x8e0   : > { %2163 = vrot.lane.b32.xlu1 %v5840_v34, %s5476_s26 }
 0x91b   : > { %v2012_v27 = vpop.xlane.xlu1 %2011 }
 0x91c   : > { %v2009_v28 = vpop.xlane.xlu0 %2008 }
 0x91d   : > { %5254 = vrcp.f32 %v2009_v28 }
 0x91e   : > { %5256 = vrcp.f32 %v2012_v27 }
 0x91f   : > { %v5027_v31 = vpop.permute.xlu1 %5026 }
 0x920   : > { %v5022_v33 = vpop.permute.xlu0 %5021  ;;  %v5029_v35 = vunpack.i.h.bf16 %v5027_v31  ;;  %v5028_v36 = vunpack.i.l.bf16 %v5027_v31 }
 0x921   : > { %v5024_v38 = vunpack.i.h.bf16 %v5022_v33  ;;  %v5023_v40 = vunpack.i.l.bf16 %v5022_v33 }
 0x922   : > { %v4822_v47 = vpack.c.bf16 %v5029_v35, %v5028_v36 }
 0x923   : > { %v5032_v41 = vpop.permute.xlu1 %5031  ;;  %v4818_v44 = vpack.c.bf16 %v5024_v38, %v5023_v40 }
 0x924   : > { %v5034_v45 = vunpack.i.h.bf16 %v5032_v41  ;;  %v5033_v46 = vunpack.i.l.bf16 %v5032_v41 }
 0x925   : > { %4819 = vmatprep.subr.bf16.mxu0 %v4818_v44 }
 0x926   : > { %4821 = vmatpush3.bf16.msra.mxu0 %v4818_v44  ;;  %v4826_v53 = vpack.c.bf16 %v5034_v45, %v5033_v46 }
 0x927   : > { %v5255_v49 = vpop.eup %5254  ;;  %4823 = vmatprep.subr.bf16.mxu0 %v4822_v47  ;;  %v5037_v55 = vpop.permute.xlu1 %5036 }
 0x928   : > { %v5257_v50 = vpop.eup %5256  ;;  %v2023_v51 = vmul.f32 %v5255_v49, %v5243_v61  ;;  %v5039_v56 = vunpack.i.h.bf16 %v5037_v55  ;;  %v5038_v57 = vunpack.i.l.bf16 %v5037_v55 }
 0x929   : > { %v2024_v54 = vmul.f32 %v5257_v50, %v6063_v5 }
 0x92a   : > { %4825 = vmatpush3.bf16.msra.mxu0 %v4822_v47  ;;  %4608 = vmatprep.mubr.msk.f32.mxu0 %vm1098_vm2, %v2023_v51  ;;  %v4832_v58 = vpack.c.bf16 %v5039_v56, %v5038_v57 }
 0x92b   : > { %4828 = vmatprep.subr.msk.bf16.mxu0 %vm5824_vm1, %v4826_v53 }
 0x92d   : > { %4609 = vmatmul.mubr.msk.f32.vlgmr.msra.gmra.mrb[16].mxu0 %vm1098_vm2, %v2024_v54 }
 0x933   : > { %4831 = vmatpush3.bf16.xpose.msk.msra.mxu0 %vm5824_vm1, %v4826_v53 }
 0x934   : > { %4834 = vmatprep.subr.msk.bf16.mxu0 %vm5824_vm1, %v4832_v58 }
 0x93b   : > { %4837 = vmatpush3.bf16.xpose.msk.msra.mxu0 %vm5824_vm1, %v4832_v58 }
 0x951   : > { %v2018_v59 = vpop.xlane.xlu0 %2017 }
 0x952   : > { %5258 = vrcp.f32 %v2018_v59 }
 0x955   : > { %v2158_v3 = vpop.permute.xlu0 %2157 }
 0x958   : > { %v2015_v60 = vpop.xlane.xlu1 %2014 }
 0x959   : > { %5260 = vrcp.f32 %v2015_v60  ;;  %v2162_v11 = vpop.permute.xlu0 %2161 }
 0x95c   : > { %v5259_v62 = vpop.eup %5258  ;;  %v2160_v2 = vpop.permute.xlu1 %2159 }
 0x95d   : > { %v2026_v5 = vmul.f32 %v5259_v62, %v5251_v22 }
 0x960   : > { %v2164_v13 = vpop.permute.xlu1 %2163 }
 0x963   : > { %v5261_v63 = vpop.eup %5260 }
 0x964   : > { %v2025_v0 = vmul.f32 %v5261_v63, %v5253_v25 }
 0x966   : > { %v6103_v61 = vpop.f32.mrb[12].mxu0  ;;  %4611 = vmatprep.mubr.msk.f32.mxu0 %vm1098_vm2, %v2025_v0 }
 0x967   : > { %v6106_v1 = vpop.f32.mrb[13].mxu0  ;;  %4612 = vmatmul.mubr.msk.f32.gmra.mrb[18].mxu0 %vm1098_vm2, %v2026_v5 }
 0x968   : > { %4622 = vmatprep.mubr.msk.f32.mxu0 %vm976_vm0, %v2158_v3 }
 0x96a   : > { %v6110_v8 = vpop.f32.mrb[14].mxu0 }
 0x96b   : > { %v6112_v12 = vpop.f32.mrb[15].mxu0  ;;  %4623 = vmatmul.mubr.msk.f32.vlgmr.msra.gmra.mrb[20].mxu0 %vm976_vm0, %v2160_v2 }
 0x96c   : > { %4625 = vmatprep.mubr.msk.f32.mxu0 %vm976_vm0, %v2162_v11 }
 0x96f   : > { %4626 = vmatmul.mubr.msk.f32.gmra.mrb[22].mxu0 %vm976_vm0, %v2164_v13 }
 0xa00   : > { %v6117_v16 = vpop.f32.mrb[16].mxu0 }
 0xa01   : > { %v6119_v18 = vpop.f32.mrb[17].mxu0 }
 0xa3a   : > { %v6121_v6 = vpop.f32.mrb[18].mxu0 }
 0xa3b   : > { %v6123_v7 = vpop.f32.mrb[19].mxu0 }
 0xa3e   : > { %v4624_v20 = vpop.f32.mrb[20].mxu0 }
 0xa3f   : > { %v2275_v4 = vmul.f32 0.25, %v4624_v20  ;;  %v2255_v22 = vpop.f32.mrb[21].mxu0 }
 0xa40   : > { %v2274_v23 = vmul.f32 0.25, %v2255_v22 }
 0xa41   : > { %v2283_v25 = vadd.f32 %v2275_v4, %v5857_v39 }
 0xa42   : > { %v4627_v26 = vpop.f32.mrb[22].mxu0  ;;  %v2282_v27 = vadd.f32 %v2274_v23, %v5862_v42 }
 0xa43   : > { %v2265_v28 = vpop.f32.mrb[23].mxu0  ;;  %v2289_v31 = vsel %vm1098_vm2, %v2283_v25, -inf  ;;  %v2277_v33 = vmul.f32 0.25, %v4627_v26 }
 0xa44   : > { %v2276_v35 = vmul.f32 0.25, %v2265_v28  ;;  %2290 = vmax.xlane.f32.xlu1 %v2289_v31  ;;  %v2286_v36 = vsel %vm1098_vm2, %v2282_v27, -inf }
 0xa45   : > { %2287 = vmax.xlane.f32.xlu0 %v2286_v36  ;;  %v2285_v41 = vadd.f32 %v2277_v33, %v5869_v48 }
 0xa46   : > { %v2284_v38 = vadd.f32 %v2276_v35, %v5875_v52 }
 0xa47   : > { %v2295_v39 = vsel %vm1098_vm2, %v2285_v41, -inf }
 0xa48   : > { %v2292_v40 = vsel %vm1098_vm2, %v2284_v38, -inf }
 0xa49   : > { %2293 = vmax.xlane.f32.xlu0 %v2292_v40 }
 0xa4d   : > { %2296 = vmax.xlane.f32.xlu0 %v2295_v39 }
 0xad1   : > { %v2291_v42 = vpop.xlane.xlu1 %2290 }
 0xad2   : > { %v2299_v44 = vsub.f32 %v2283_v25, %v2291_v42  ;;  %v2288_v45 = vpop.xlane.xlu0 %2287 }
 0xad3   : > { %v2298_v46 = vsub.f32 %v2282_v27, %v2288_v45 }
 0xad4   : > { %v2304_v47 = vmul.f32 1.442695, %v2299_v44 }
 0xad5   : > { %v2302_v49 = vmul.f32 1.442695, %v2298_v46 }
 0xad6   : > { %5262 = vpow2.f32 %v2304_v47  ;;  %v2294_v48 = vpop.xlane.xlu0 %2293 }
 0xad7   : > { %5264 = vpow2.f32 %v2302_v49  ;;  %v2300_v54 = vsub.f32 %v2284_v38, %v2294_v48 }
 0xad9   : > { %v2306_v55 = vmul.f32 1.442695, %v2300_v54 }
 0xada   : > { %v2297_v56 = vpop.xlane.xlu0 %2296 }
 0xadb   : > { %v2301_v57 = vsub.f32 %v2285_v41, %v2297_v56  ;;  %5266 = vpow2.f32 %v2306_v55 }
 0xadd   : > { %v2308_v58 = vmul.f32 1.442695, %v2301_v57 }
 0xadf   : > { %5268 = vpow2.f32 %v2308_v58  ;;  %v6180_v58 = vld [vmem:[%s6546_s1 + $0x8] sm:$0xff] }
 0xae0   : > { %v5263_v50 = vpop.eup %5262 }
 0xae1   : > { %v5265_v51 = vpop.eup %5264  ;;  %v2313_v52 = vsel %vm1098_vm2, %v5263_v50, 0.0 }
 0xae2   : > { %2314 = vadd.xlane.f32.xlu1 %v2313_v52  ;;  %v2310_v53 = vsel %vm1098_vm2, %v5265_v51, 0.0 }
 0xae3   : > { %2311 = vadd.xlane.f32.xlu0 %v2310_v53 }
 0xae5   : > { %v5267_v59 = vpop.eup %5266 }
 0xae6   : > { %v2316_v60 = vsel %vm1098_vm2, %v5267_v59, 0.0 }
 0xae9   : > { %v5269_v62 = vpop.eup %5268 }
 0xaea   : > { %v2319_v63 = vsel %vm1098_vm2, %v5269_v62, 0.0 }
 0xaf3   : > { %5046 = vrot.lane.b32.xlu1 %v5834_v29, %s5476_s26 }
 0xaf7   : > { %5051 = vrot.lane.b32.xlu1 %v5828_v24, %s5477_s23 }
 0xaf9   : > { %5041 = vrot.lane.b32.xlu0 %v5838_v32, %s5476_s26 }
 0xafb   : > { %5056 = vrot.lane.b32.xlu1 %v5842_v37, %s5477_s23 }
 0xb18   : > { %2317 = vadd.xlane.f32.xlu0 %v2316_v60 }
 0xb1f   : > { %2320 = vadd.xlane.f32.xlu1 %v2319_v63 }
 0xb2e   : > { %2460 = vrot.lane.b32.xlu0 %v5816_v17, %s5477_s23 }
 0xb30   : > { %2462 = vrot.lane.b32.xlu1 %v5820_v19, %s5477_s23 }
 0xb32   : > { %2464 = vrot.lane.b32.xlu0 %v5836_v30, %s5477_s23 }
 0xb34   : > { %2466 = vrot.lane.b32.xlu1 %v5840_v34, %s5477_s23 }
 0xb6f   : > { %v2315_v0 = vpop.xlane.xlu1 %2314 }
 0xb70   : > { %v2312_v3 = vpop.xlane.xlu0 %2311 }
 0xb71   : > { %5270 = vrcp.f32 %v2312_v3 }
 0xb72   : > { %5272 = vrcp.f32 %v2315_v0 }
 0xb73   : > { %v5047_v5 = vpop.permute.xlu1 %5046 }
 0xb74   : > { %v5042_v2 = vpop.permute.xlu0 %5041  ;;  %v5049_v11 = vunpack.i.h.bf16 %v5047_v5  ;;  %v5048_v13 = vunpack.i.l.bf16 %v5047_v5 }
 0xb75   : > { %v5044_v20 = vunpack.i.h.bf16 %v5042_v2  ;;  %v5043_v4 = vunpack.i.l.bf16 %v5042_v2 }
 0xb76   : > { %v4842_v25 = vpack.c.bf16 %v5049_v11, %v5048_v13  ;;  %v6193_v13 = vld [vmem:[%s6546_s1 + $0x10] sm:$0xff] }
 0xb77   : > { %v4838_v22 = vpack.c.bf16 %v5044_v20, %v5043_v4  ;;  %v5052_v23 = vpop.permute.xlu1 %5051 }
 0xb78   : > { %v5054_v26 = vunpack.i.h.bf16 %v5052_v23  ;;  %v5053_v27 = vunpack.i.l.bf16 %v5052_v23  ;;  %v6199_v23 = vld [vmem:[%s6546_s1 + $0x18] sm:$0xff] }
 0xb79   : > { %4839 = vmatprep.subr.bf16.mxu1 %v4838_v22 }
 0xb7a   : > { %4841 = vmatpush3.bf16.msra.mxu1 %v4838_v22  ;;  %v4846_v35 = vpack.c.bf16 %v5054_v26, %v5053_v27 }
 0xb7b   : > { %v5271_v28 = vpop.eup %5270  ;;  %4843 = vmatprep.subr.bf16.mxu1 %v4842_v25  ;;  %v5057_v38 = vpop.permute.xlu1 %5056 }
 0xb7c   : > { %v5273_v31 = vpop.eup %5272  ;;  %v2326_v33 = vmul.f32 %v5271_v28, %v5265_v51  ;;  %v5059_v40 = vunpack.i.h.bf16 %v5057_v38  ;;  %v5058_v41 = vunpack.i.l.bf16 %v5057_v38 }
 0xb7d   : > { %v2327_v36 = vmul.f32 %v5273_v31, %v5263_v50 }
 0xb7e   : > { %4845 = vmatpush3.bf16.msra.mxu1 %v4842_v25  ;;  %4636 = vmatprep.mubr.msk.f32.mxu1 %vm1098_vm2, %v2326_v33  ;;  %v4852_v39 = vpack.c.bf16 %v5059_v40, %v5058_v41 }
 0xb7f   : > { %4848 = vmatprep.subr.msk.bf16.mxu1 %vm5824_vm1, %v4846_v35 }
 0xb81   : > { %4637 = vmatmul.mubr.msk.f32.vlgmr.msra.gmra.mrb[24].mxu1 %vm1098_vm2, %v2327_v36 }
 0xb87   : > { %4851 = vmatpush3.bf16.xpose.msk.msra.mxu1 %vm5824_vm1, %v4846_v35 }
 0xb88   : > { %4854 = vmatprep.subr.msk.bf16.mxu1 %vm5824_vm1, %v4852_v39 }
 0xb8f   : > { %4857 = vmatpush3.bf16.xpose.msk.msra.mxu1 %vm5824_vm1, %v4852_v39 }
 0xba5   : > { %v2318_v42 = vpop.xlane.xlu0 %2317 }
 0xba6   : > { %5274 = vrcp.f32 %v2318_v42 }
 0xba9   : > { %v2461_v49 = vpop.permute.xlu0 %2460 }
 0xbac   : > { %v2321_v44 = vpop.xlane.xlu1 %2320 }
 0xbad   : > { %5276 = vrcp.f32 %v2321_v44  ;;  %v2465_v52 = vpop.permute.xlu0 %2464 }
 0xbb0   : > { %v5275_v45 = vpop.eup %5274  ;;  %v2463_v51 = vpop.permute.xlu1 %2462 }
 0xbb1   : > { %v2328_v46 = vmul.f32 %v5275_v45, %v5267_v59 }
 0xbb3   : > { %4639 = vmatprep.mubr.msk.f32.mxu1 %vm1098_vm2, %v2328_v46 }
 0xbb4   : > { %v2467_v53 = vpop.permute.xlu1 %2466 }
 0xbb7   : > { %v5277_v47 = vpop.eup %5276 }
 0xbb8   : > { %v2329_v50 = vmul.f32 %v5277_v47, %v5269_v62  ;;  %v6185_v62 = vld [vmem:[%s6546_s1] sm:$0xff] }
 0xbba   : > { %4640 = vmatmul.mubr.msk.f32.gmra.mrb[26].mxu1 %vm1098_vm2, %v2329_v50 }
 0xbbb   : > { %4650 = vmatprep.mubr.msk.f32.mxu1 %vm976_vm0, %v2461_v49 }
 0xbbe   : > { %4651 = vmatmul.mubr.msk.f32.vlgmr.msra.gmra.mrb[28].mxu1 %vm976_vm0, %v2463_v51 }
 0xbbf   : > { %4653 = vmatprep.mubr.msk.f32.mxu1 %vm976_vm0, %v2465_v52 }
 0xbc2   : > { %4654 = vmatmul.mubr.msk.f32.gmra.mrb[30].mxu1 %vm976_vm0, %v2467_v53 }
 0xc54   : > { %v6169_v48 = vpop.f32.mrb[24].mxu1 }
 0xc55   : > { %v6171_v54 = vpop.f32.mrb[25].mxu1 }
 0xc8d   : > { %v6173_v55 = vpop.f32.mrb[26].mxu1 }
 0xc8e   : > { %v6175_v56 = vpop.f32.mrb[27].mxu1 }
 0xc91   : > { %v4652_v57 = vpop.f32.mrb[28].mxu1 }
 0xc92   : > { %v2578_v59 = vmul.f32 0.25, %v4652_v57  ;;  %v2558_v60 = vpop.f32.mrb[29].mxu1 }
 0xc93   : > { %v2577_v63 = vmul.f32 0.25, %v2558_v60 }
 0xc94   : > { %v2586_v0 = vadd.f32 %v6180_v58, %v2578_v59 }
 0xc95   : > { %v4655_v3 = vpop.f32.mrb[30].mxu1  ;;  %v2585_v5 = vadd.f32 %v6185_v62, %v2577_v63 }
 0xc96   : > { %v2568_v2 = vpop.f32.mrb[31].mxu1  ;;  %v2592_v11 = vsel %vm1098_vm2, %v2586_v0, -inf  ;;  %v2580_v20 = vmul.f32 0.25, %v4655_v3 }
 0xc97   : > { %v2579_v4 = vmul.f32 0.25, %v2568_v2  ;;  %2593 = vmax.xlane.f32.xlu1 %v2592_v11  ;;  %v2589_v22 = vsel %vm1098_vm2, %v2585_v5, -inf }
 0xc98   : > { %2590 = vmax.xlane.f32.xlu0 %v2589_v22  ;;  %v2588_v27 = vadd.f32 %v6199_v23, %v2580_v20 }
 0xc99   : > { %v2587_v25 = vadd.f32 %v6193_v13, %v2579_v4 }
 0xc9a   : > { %v2598_v28 = vsel %vm1098_vm2, %v2588_v27, -inf }
 0xc9b   : > { %v2595_v26 = vsel %vm1098_vm2, %v2587_v25, -inf }
 0xc9c   : > { %2596 = vmax.xlane.f32.xlu0 %v2595_v26 }
 0xca0   : > { %2599 = vmax.xlane.f32.xlu0 %v2598_v28 }
 0xd24   : > { %v2594_v31 = vpop.xlane.xlu1 %2593 }
 0xd25   : > { %v2602_v33 = vsub.f32 %v2586_v0, %v2594_v31  ;;  %v2591_v35 = vpop.xlane.xlu0 %2590 }
 0xd26   : > { %v2601_v36 = vsub.f32 %v2585_v5, %v2591_v35 }
 0xd27   : > { %v2607_v38 = vmul.f32 1.442695, %v2602_v33 }
 0xd28   : > { %v2605_v40 = vmul.f32 1.442695, %v2601_v36 }
 0xd29   : > { %5278 = vpow2.f32 %v2607_v38  ;;  %v2597_v45 = vpop.xlane.xlu0 %2596 }
 0xd2a   : > { %5280 = vpow2.f32 %v2605_v40  ;;  %v2603_v46 = vsub.f32 %v2587_v25, %v2597_v45 }
 0xd2c   : > { %v2609_v47 = vmul.f32 1.442695, %v2603_v46 }
 0xd2d   : > { %v2600_v49 = vpop.xlane.xlu0 %2599 }
 0xd2e   : > { %v2604_v50 = vsub.f32 %v2588_v27, %v2600_v49  ;;  %5282 = vpow2.f32 %v2609_v47 }
 0xd30   : > { %v2611_v51 = vmul.f32 1.442695, %v2604_v50 }
 0xd32   : > { %5284 = vpow2.f32 %v2611_v51 }
 0xd33   : > { %v5279_v41 = vpop.eup %5278 }
 0xd34   : > { %v5281_v39 = vpop.eup %5280  ;;  %v2616_v42 = vsel %vm1098_vm2, %v5279_v41, 0.0 }
 0xd35   : > { %2617 = vadd.xlane.f32.xlu1 %v2616_v42  ;;  %v2613_v44 = vsel %vm1098_vm2, %v5281_v39, 0.0 }
 0xd36   : > { %2614 = vadd.xlane.f32.xlu0 %v2613_v44 }
 0xd38   : > { %v5283_v52 = vpop.eup %5282 }
 0xd39   : > { %v2619_v53 = vsel %vm1098_vm2, %v5283_v52, 0.0 }
 0xd3c   : > { %v5285_v57 = vpop.eup %5284 }
 0xd3d   : > { %v2622_v59 = vsel %vm1098_vm2, %v5285_v57, 0.0 }
 0xd46   : > { %5066 = vrot.lane.b32.xlu1 %v5834_v29, %s5477_s23 }
 0xd4a   : > { %5071 = vrot.lane.b32.xlu1 %v5828_v24, %s5478_s17 }
 0xd4c   : > { %5061 = vrot.lane.b32.xlu0 %v5838_v32, %s5477_s23 }
 0xd4e   : > { %5076 = vrot.lane.b32.xlu1 %v5842_v37, %s5478_s17 }
 0xd6b   : > { %2620 = vadd.xlane.f32.xlu0 %v2619_v53 }
 0xd72   : > { %2623 = vadd.xlane.f32.xlu1 %v2622_v59 }
 0xd81   : > { %2763 = vrot.lane.b32.xlu0 %v5816_v17, %s5478_s17 }
 0xd83   : > { %2765 = vrot.lane.b32.xlu1 %v5820_v19, %s5478_s17 }
 0xd85   : > { %2767 = vrot.lane.b32.xlu0 %v5836_v30, %s5478_s17 }
 0xd87   : > { %2769 = vrot.lane.b32.xlu1 %v5840_v34, %s5478_s17 }
 0xdc2   : > { %v2618_v60 = vpop.xlane.xlu1 %2617 }
 0xdc3   : > { %v2615_v63 = vpop.xlane.xlu0 %2614 }
 0xdc4   : > { %5286 = vrcp.f32 %v2615_v63 }
 0xdc5   : > { %5288 = vrcp.f32 %v2618_v60 }
 0xdc6   : > { %v5067_v0 = vpop.permute.xlu1 %5066 }
 0xdc7   : > { %v5062_v3 = vpop.permute.xlu0 %5061  ;;  %v5069_v5 = vunpack.i.h.bf16 %v5067_v0  ;;  %v5068_v2 = vunpack.i.l.bf16 %v5067_v0 }
 0xdc8   : > { %v5064_v11 = vunpack.i.h.bf16 %v5062_v3  ;;  %v5063_v20 = vunpack.i.l.bf16 %v5062_v3 }
 0xdc9   : > { %v4862_v25 = vpack.c.bf16 %v5069_v5, %v5068_v2 }
 0xdca   : > { %v4858_v4 = vpack.c.bf16 %v5064_v11, %v5063_v20  ;;  %v5072_v22 = vpop.permute.xlu1 %5071 }
 0xdcb   : > { %v5074_v26 = vunpack.i.h.bf16 %v5072_v22  ;;  %v5073_v27 = vunpack.i.l.bf16 %v5072_v22 }
 0xdcc   : > { %4859 = vmatprep.subr.bf16.mxu0 %v4858_v4 }
 0xdcd   : > { %4861 = vmatpush3.bf16.msra.mxu0 %v4858_v4  ;;  %v4866_v35 = vpack.c.bf16 %v5074_v26, %v5073_v27 }
 0xdce   : > { %v5287_v28 = vpop.eup %5286  ;;  %4863 = vmatprep.subr.bf16.mxu0 %v4862_v25  ;;  %v5077_v38 = vpop.permute.xlu1 %5076 }
 0xdcf   : > { %v5289_v31 = vpop.eup %5288  ;;  %v2629_v33 = vmul.f32 %v5287_v28, %v5281_v39  ;;  %v5079_v40 = vunpack.i.h.bf16 %v5077_v38  ;;  %v5078_v42 = vunpack.i.l.bf16 %v5077_v38 }
 0xdd0   : > { %v2630_v36 = vmul.f32 %v5289_v31, %v5279_v41 }
 0xdd1   : > { %4865 = vmatpush3.bf16.msra.mxu0 %v4862_v25  ;;  %4664 = vmatprep.mubr.msk.f32.mxu0 %vm1098_vm2, %v2629_v33  ;;  %v4872_v44 = vpack.c.bf16 %v5079_v40, %v5078_v42 }
 0xdd2   : > { %4868 = vmatprep.subr.msk.bf16.mxu0 %vm5824_vm1, %v4866_v35 }
 0xdd4   : > { %4665 = vmatmul.mubr.msk.f32.vlgmr.msra.gmra.mrb[24].mxu0 %vm1098_vm2, %v2630_v36 }
 0xdda   : > { %4871 = vmatpush3.bf16.xpose.msk.msra.mxu0 %vm5824_vm1, %v4866_v35 }
 0xddb   : > { %4874 = vmatprep.subr.msk.bf16.mxu0 %vm5824_vm1, %v4872_v44 }
 0xde2   : > { %4877 = vmatpush3.bf16.xpose.msk.msra.mxu0 %vm5824_vm1, %v4872_v44 }
 0xdf8   : > { %v2621_v39 = vpop.xlane.xlu0 %2620 }
 0xdf9   : > { %5290 = vrcp.f32 %v2621_v39 }
 0xdfc   : > { %v2764_v49 = vpop.permute.xlu0 %2763 }
 0xdff   : > { %v2624_v41 = vpop.xlane.xlu1 %2623 }
 0xe00   : > { %5292 = vrcp.f32 %v2624_v41  ;;  %v2768_v53 = vpop.permute.xlu0 %2767 }
 0xe03   : > { %v5291_v45 = vpop.eup %5290  ;;  %v2766_v51 = vpop.permute.xlu1 %2765 }
 0xe04   : > { %v2631_v46 = vmul.f32 %v5291_v45, %v5283_v52 }
 0xe06   : > { %4667 = vmatprep.mubr.msk.f32.mxu0 %vm1098_vm2, %v2631_v46 }
 0xe07   : > { %v2770_v59 = vpop.permute.xlu1 %2769 }
 0xe0a   : > { %v5293_v47 = vpop.eup %5292 }
 0xe0b   : > { %v2632_v50 = vmul.f32 %v5293_v47, %v5285_v57 }
 0xe0d   : > { %4668 = vmatmul.mubr.msk.f32.gmra.mrb[26].mxu0 %vm1098_vm2, %v2632_v50 }
 0xe0e   : > { %4678 = vmatprep.mubr.msk.f32.mxu0 %vm976_vm0, %v2764_v49 }
 0xe11   : > { %4679 = vmatmul.mubr.msk.f32.vlgmr.msra.gmra.mrb[28].mxu0 %vm976_vm0, %v2766_v51 }
 0xe12   : > { %4681 = vmatprep.mubr.msk.f32.mxu0 %vm976_vm0, %v2768_v53 }
 0xe15   : > { %4682 = vmatmul.mubr.msk.f32.gmra.mrb[30].mxu0 %vm976_vm0, %v2770_v59 }
 0xea7   : > { %v6241_v60 = vpop.f32.mrb[24].mxu0 }
 0xea8   : > { %v6243_v52 = vpop.f32.mrb[25].mxu0 }
 0xee0   : > { %v6245_v63 = vpop.f32.mrb[26].mxu0 }
 0xee1   : > { %v6247_v57 = vpop.f32.mrb[27].mxu0 }
 0xee4   : > { %v4680_v0 = vpop.f32.mrb[28].mxu0 }
 0xee5   : > { %v2881_v3 = vmul.f32 0.25, %v4680_v0  ;;  %v2861_v5 = vpop.f32.mrb[29].mxu0 }
 0xee6   : > { %v2880_v2 = vmul.f32 0.25, %v2861_v5 }
 0xee7   : > { %v2889_v11 = vadd.f32 %v2881_v3, %v6180_v58 }
 0xee8   : > { %v2888_v20 = vadd.f32 %v2880_v2, %v6185_v62  ;;  %v4683_v4 = vpop.f32.mrb[30].mxu0 }
 0xee9   : > { %v2871_v22 = vpop.f32.mrb[31].mxu0  ;;  %v2895_v25 = vsel %vm1098_vm2, %v2889_v11, -inf  ;;  %v2883_v26 = vmul.f32 0.25, %v4683_v4 }
 0xeea   : > { %v2882_v27 = vmul.f32 0.25, %v2871_v22  ;;  %2896 = vmax.xlane.f32.xlu1 %v2895_v25  ;;  %v2892_v28 = vsel %vm1098_vm2, %v2888_v20, -inf }
 0xeeb   : > { %2893 = vmax.xlane.f32.xlu0 %v2892_v28  ;;  %v2891_v33 = vadd.f32 %v2883_v26, %v6199_v23 }
 0xeec   : > { %v2890_v31 = vadd.f32 %v2882_v27, %v6193_v13 }
 0xeed   : > { %v2901_v36 = vsel %vm1098_vm2, %v2891_v33, -inf }
 0xeee   : > { %v2898_v35 = vsel %vm1098_vm2, %v2890_v31, -inf }
 0xeef   : > { %2899 = vmax.xlane.f32.xlu0 %v2898_v35 }
 0xef3   : > { %2902 = vmax.xlane.f32.xlu0 %v2901_v36 }
 0xf77   : > { %v2897_v38 = vpop.xlane.xlu1 %2896 }
 0xf78   : > { %v2905_v40 = vsub.f32 %v2889_v11, %v2897_v38  ;;  %v2894_v42 = vpop.xlane.xlu0 %2893 }
 0xf79   : > { %v2904_v44 = vsub.f32 %v2888_v20, %v2894_v42 }
 0xf7a   : > { %v2910_v39 = vmul.f32 1.442695, %v2905_v40 }
 0xf7b   : > { %v2908_v41 = vmul.f32 1.442695, %v2904_v44 }
 0xf7c   : > { %5294 = vpow2.f32 %v2910_v39  ;;  %v2900_v50 = vpop.xlane.xlu0 %2899 }
 0xf7d   : > { %5296 = vpow2.f32 %v2908_v41  ;;  %v2906_v51 = vsub.f32 %v2890_v31, %v2900_v50 }
 0xf7f   : > { %v2912_v53 = vmul.f32 1.442695, %v2906_v51 }
 0xf80   : > { %v2903_v59 = vpop.xlane.xlu0 %2902 }
 0xf81   : > { %v2907_v0 = vsub.f32 %v2891_v33, %v2903_v59  ;;  %5298 = vpow2.f32 %v2912_v53 }
 0xf83   : > { %v2914_v3 = vmul.f32 1.442695, %v2907_v0 }
 0xf85   : > { %5300 = vpow2.f32 %v2914_v3 }
 0xf86   : > { %v5295_v45 = vpop.eup %5294 }
 0xf87   : > { %v5297_v46 = vpop.eup %5296  ;;  %v2919_v47 = vsel %vm1098_vm2, %v5295_v45, 0.0 }
 0xf88   : > { %2920 = vadd.xlane.f32.xlu1 %v2919_v47  ;;  %v2916_v49 = vsel %vm1098_vm2, %v5297_v46, 0.0 }
 0xf89   : > { %2917 = vadd.xlane.f32.xlu0 %v2916_v49 }
 0xf8b   : > { %v5299_v5 = vpop.eup %5298 }
 0xf8c   : > { %v2922_v2 = vsel %vm1098_vm2, %v5299_v5, 0.0 }
 0xf8f   : > { %v5301_v11 = vpop.eup %5300 }
 0xf99   : > { %5086 = vrot.lane.b32.xlu1 %v5834_v29, %s5478_s17 }
 0xf9d   : > { %5091 = vrot.lane.b32.xlu1 %v5828_v24, %s5479_s20  ;;  %v2925_v24 = vsel %vm1098_vm2, %v5301_v11, 0.0 }
 0xf9f   : > { %5081 = vrot.lane.b32.xlu0 %v5838_v32, %s5478_s17 }
 0xfa1   : > { %5096 = vrot.lane.b32.xlu1 %v5842_v37, %s5479_s20 }
 0xfbe   : > { %2923 = vadd.xlane.f32.xlu0 %v2922_v2 }
 0xfc5   : > { %2926 = vadd.xlane.f32.xlu1 %v2925_v24 }
 0xfd4   : > { %3066 = vrot.lane.b32.xlu0 %v5816_v17, %s5479_s20 }
 0xfd6   : > { %3068 = vrot.lane.b32.xlu1 %v5820_v19, %s5479_s20 }
 0xfd8   : > { %3070 = vrot.lane.b32.xlu0 %v5836_v30, %s5479_s20 }
 0xfda   : > { %3072 = vrot.lane.b32.xlu1 %v5840_v34, %s5479_s20 }
0x1015   : > { %v2921_v37 = vpop.xlane.xlu1 %2920 }
0x1016   : > { %v2918_v20 = vpop.xlane.xlu0 %2917 }
0x1017   : > { %5302 = vrcp.f32 %v2918_v20 }
0x1018   : > { %5304 = vrcp.f32 %v2921_v37 }
0x1019   : > { %v5087_v4 = vpop.permute.xlu1 %5086 }
0x101a   : > { %v5082_v22 = vpop.permute.xlu0 %5081  ;;  %v5089_v25 = vunpack.i.h.bf16 %v5087_v4  ;;  %v5088_v26 = vunpack.i.l.bf16 %v5087_v4 }
0x101b   : > { %v5084_v27 = vunpack.i.h.bf16 %v5082_v22  ;;  %v5083_v28 = vunpack.i.l.bf16 %v5082_v22 }
0x101c   : > { %v4882_v33 = vpack.c.bf16 %v5089_v25, %v5088_v26 }
0x101d   : > { %v4878_v17 = vpack.c.bf16 %v5084_v27, %v5083_v28  ;;  %v5092_v31 = vpop.permute.xlu1 %5091 }
0x101e   : > { %v5094_v19 = vunpack.i.h.bf16 %v5092_v31  ;;  %v5093_v35 = vunpack.i.l.bf16 %v5092_v31 }
0x101f   : > { %4879 = vmatprep.subr.bf16.mxu1 %v4878_v17 }
0x1020   : > { %4881 = vmatpush3.bf16.msra.mxu1 %v4878_v17  ;;  %v4886_v38 = vpack.c.bf16 %v5094_v19, %v5093_v35 }
0x1021   : > { %v5303_v30 = vpop.eup %5302  ;;  %4883 = vmatprep.subr.bf16.mxu1 %v4882_v33  ;;  %v5097_v42 = vpop.permute.xlu1 %5096 }
0x1022   : > { %v5305_v34 = vpop.eup %5304  ;;  %v2932_v36 = vmul.f32 %v5303_v30, %v5297_v46  ;;  %v5099_v44 = vunpack.i.h.bf16 %v5097_v42  ;;  %v5098_v39 = vunpack.i.l.bf16 %v5097_v42 }
0x1023   : > { %v2933_v40 = vmul.f32 %v5305_v34, %v5295_v45 }
0x1024   : > { %4885 = vmatpush3.bf16.msra.mxu1 %v4882_v33  ;;  %4692 = vmatprep.mubr.msk.f32.mxu1 %vm1098_vm2, %v2932_v36  ;;  %v4892_v41 = vpack.c.bf16 %v5099_v44, %v5098_v39 }
0x1025   : > { %4888 = vmatprep.subr.msk.bf16.mxu1 %vm5824_vm1, %v4886_v38 }
0x1027   : > { %4693 = vmatmul.mubr.msk.f32.vlgmr.msra.gmra.mrb[32].mxu1 %vm1098_vm2, %v2933_v40 }
0x102d   : > { %4891 = vmatpush3.bf16.xpose.msk.msra.mxu1 %vm5824_vm1, %v4886_v38 }
0x102e   : > { %4894 = vmatprep.subr.msk.bf16.mxu1 %vm5824_vm1, %v4892_v41 }
0x1035   : > { %4897 = vmatpush3.bf16.xpose.msk.msra.mxu1 %vm5824_vm1, %v4892_v41 }
0x104b   : > { %v2924_v46 = vpop.xlane.xlu0 %2923 }
0x104c   : > { %5306 = vrcp.f32 %v2924_v46 }
0x104f   : > { %v3067_v51 = vpop.permute.xlu0 %3066 }
0x1052   : > { %v2927_v45 = vpop.xlane.xlu1 %2926 }
0x1053   : > { %5308 = vrcp.f32 %v2927_v45  ;;  %v3071_v0 = vpop.permute.xlu0 %3070 }
0x1056   : > { %v5307_v47 = vpop.eup %5306  ;;  %v3069_v59 = vpop.permute.xlu1 %3068 }
0x1057   : > { %v2934_v49 = vmul.f32 %v5307_v47, %v5299_v5 }
0x1059   : > { %4695 = vmatprep.mubr.msk.f32.mxu1 %vm1098_vm2, %v2934_v49 }
0x105a   : > { %v3073_v21 = vpop.permute.xlu1 %3072 }
0x105d   : > { %v5309_v50 = vpop.eup %5308 }
0x105e   : > { %v2935_v53 = vmul.f32 %v5309_v50, %v5301_v11 }
0x1060   : > { %4696 = vmatmul.mubr.msk.f32.gmra.mrb[34].mxu1 %vm1098_vm2, %v2935_v53 }
0x1061   : > { %4706 = vmatprep.mubr.msk.f32.mxu1 %vm976_vm0, %v3067_v51 }
0x1064   : > { %4707 = vmatmul.mubr.msk.f32.vlgmr.msra.gmra.mrb[36].mxu1 %vm976_vm0, %v3069_v59 }
0x1065   : > { %4709 = vmatprep.mubr.msk.f32.mxu1 %vm976_vm0, %v3071_v0 }
0x1068   : > { %4710 = vmatmul.mubr.msk.f32.gmra.mrb[38].mxu1 %vm976_vm0, %v3073_v21 }
0x1069   : > { %3707 = vmatprep.mubr.bf16.mxu1 %v5472_v43 }
0x10fa   : > { %v6294_v3 = vpop.f32.mrb[32].mxu1 }
0x10fb   : > { %v6296_v5 = vpop.f32.mrb[33].mxu1 }
0x1133   : > { %v6298_v2 = vpop.f32.mrb[34].mxu1 }
0x1134   : > { %v6300_v11 = vpop.f32.mrb[35].mxu1 }
0x1137   : > { %v4708_v24 = vpop.f32.mrb[36].mxu1 }
0x1138   : > { %v3184_v37 = vmul.f32 0.25, %v4708_v24  ;;  %v3164_v20 = vpop.f32.mrb[37].mxu1 }
0x1139   : > { %v3183_v4 = vmul.f32 0.25, %v3164_v20 }
0x113a   : > { %v3192_v22 = vadd.f32 %v3184_v37, %v6180_v58 }
0x113b   : > { %v3191_v25 = vadd.f32 %v3183_v4, %v6185_v62  ;;  %v4711_v26 = vpop.f32.mrb[38].mxu1 }
0x113c   : > { %v3174_v27 = vpop.f32.mrb[39].mxu1  ;;  %v3198_v28 = vsel %vm1098_vm2, %v3192_v22, -inf  ;;  %v3186_v17 = vmul.f32 0.25, %v4711_v26 }
0x113d   : > { %v3185_v31 = vmul.f32 0.25, %v3174_v27  ;;  %3199 = vmax.xlane.f32.xlu1 %v3198_v28  ;;  %v3195_v33 = vsel %vm1098_vm2, %v3191_v25, -inf }
0x113e   : > { %3196 = vmax.xlane.f32.xlu0 %v3195_v33  ;;  %v3194_v35 = vadd.f32 %v3186_v17, %v6199_v23 }
0x113f   : > { %v3193_v19 = vadd.f32 %v3185_v31, %v6193_v13 }
0x1140   : > { %v3204_v58 = vsel %vm1098_vm2, %v3194_v35, -inf }
0x1141   : > { %v3201_v30 = vsel %vm1098_vm2, %v3193_v19, -inf }
0x1142   : > { %3202 = vmax.xlane.f32.xlu0 %v3201_v30 }
0x1146   : > { %3205 = vmax.xlane.f32.xlu0 %v3204_v58 }
0x11ca   : > { %v3200_v62 = vpop.xlane.xlu1 %3199 }
0x11cb   : > { %v3208_v34 = vsub.f32 %v3192_v22, %v3200_v62  ;;  %v3197_v36 = vpop.xlane.xlu0 %3196 }
0x11cc   : > { %v3207_v38 = vsub.f32 %v3191_v25, %v3197_v36  ;;  %v5143_v36 = vld [vmem:[%s5689_s22 + $0x8] sm:$0xff]  }
0x11cd   : > { %v3213_v40 = vmul.f32 1.442695, %v3208_v34  ;;  %v5142_v34 = vld [vmem:[%s5689_s22] sm:$0xff]  }
0x11ce   : > { %v3211_v42 = vmul.f32 1.442695, %v3207_v38  ;;  %v5144_v38 = vld [vmem:[%s5689_s22 + $0x10] sm:$0xff]  }
0x11cf   : > { %5310 = vpow2.f32 %v3213_v40  ;;  %v3203_v44 = vpop.xlane.xlu0 %3202  ;;  %v5145_v40 = vld [vmem:[%s5689_s22 + $0x18] sm:$0xff]  }
0x11d0   : > { %5312 = vpow2.f32 %v3211_v42  ;;  %v3209_v39 = vsub.f32 %v3193_v19, %v3203_v44  ;;  %v5146_v42 = vld [vmem:[%s5689_s22 + $0x20] sm:$0xff]   ;;  %v5147_v44 = vld [vmem:[%s5689_s22 + $0x28] sm:$0xff]  }
0x11d2   : > { %v3215_v41 = vmul.f32 1.442695, %v3209_v39  ;;  %v5148_v39 = vld [vmem:[%s5689_s22 + $0x30] sm:$0xff]  }
0x11d3   : > { %v3206_v13 = vpop.xlane.xlu0 %3205 }
0x11d4   : > { %5314 = vpow2.f32 %v3215_v41  ;;  %v3210_v23 = vsub.f32 %v3194_v35, %v3206_v13  ;;  %v5149_v41 = vld [vmem:[%s5689_s22 + $0x38] sm:$0xff]  }
0x11d6   : > { %v3217_v46 = vmul.f32 1.442695, %v3210_v23 }
0x11d8   : > { %5316 = vpow2.f32 %v3217_v46 }
0x11d9   : > { %v6310_v45 = vpop.eup %5310 }
0x11da   : > { %v5313_v47 = vpop.eup %5312  ;;  %v3222_v49 = vsel %vm1098_vm2, %v6310_v45, 0.0 }
0x11db   : > { %3223 = vadd.xlane.f32.xlu1 %v3222_v49  ;;  %v3219_v50 = vsel %vm1098_vm2, %v5313_v47, 0.0 }
0x11dc   : > { %3220 = vadd.xlane.f32.xlu0 %v3219_v50 }
0x11de   : > { %v6315_v51 = vpop.eup %5314 }
0x11df   : > { %v3225_v53 = vsel %vm1098_vm2, %v6315_v51, 0.0 }
0x11e0   : > { %3226 = vadd.xlane.f32.xlu0 %v3225_v53 }
0x11e2   : > { %v6319_v59 = vpop.eup %5316 }
0x11e3   : > { %v3228_v0 = vsel %vm1098_vm2, %v6319_v59, 0.0 }
0x11e4   : > { %3229 = vadd.xlane.f32.xlu1 %v3228_v0 }
0x11f5   : > { %5106 = vrot.lane.b32.xlu1 %v5834_v29, %s5479_s20 }
0x11f6   : > { %5101 = vrot.lane.b32.xlu0 %v5838_v32, %s5479_s20 }
0x11f9   : > { %1534 = vrot.lane.b32.xlu1 %v6106_v1, %s5479_s20 }
0x11fa   : > { %1538 = vrot.lane.b32.xlu0 %v6112_v12, %s5479_s20 }
0x11fd   : > { %1536 = vrot.lane.b32.xlu1 %v6103_v61, %s5479_s20 }
0x11fe   : > { %1837 = vrot.lane.b32.xlu0 %v6044_v10, %s5478_s17 }
0x1201   : > { %1540 = vrot.lane.b32.xlu1 %v6110_v8, %s5479_s20 }
0x1202   : > { %1841 = vrot.lane.b32.xlu0 %v6049_v15, %s5478_s17 }
0x1205   : > { %1839 = vrot.lane.b32.xlu1 %v6042_v9, %s5478_s17 }
0x1206   : > { %2140 = vrot.lane.b32.xlu0 %v6119_v18, %s5477_s23 }
0x1209   : > { %1843 = vrot.lane.b32.xlu1 %v6047_v14, %s5478_s17 }
0x120a   : > { %2144 = vrot.lane.b32.xlu0 %v6123_v7, %s5477_s23 }
0x120d   : > { %2142 = vrot.lane.b32.xlu1 %v6117_v16, %s5477_s23 }
0x120e   : > { %2443 = vrot.lane.b32.xlu0 %v6171_v54, %s5476_s26 }
0x1211   : > { %2146 = vrot.lane.b32.xlu1 %v6121_v6, %s5477_s23 }
0x1212   : > { %2447 = vrot.lane.b32.xlu0 %v6175_v56, %s5476_s26 }
0x1215   : > { %2445 = vrot.lane.b32.xlu1 %v6169_v48, %s5476_s26 }
0x1216   : > { %2746 = vrot.lane.b32.xlu0 %v6243_v52, %s5475_s11 }
0x1219   : > { %2449 = vrot.lane.b32.xlu1 %v6173_v55, %s5476_s26 }
0x121a   : > { %2750 = vrot.lane.b32.xlu0 %v6247_v57, %s5475_s11 }
0x121d   : > { %2748 = vrot.lane.b32.xlu1 %v6241_v60, %s5475_s11 }
0x121e   : > { %3049 = vrot.lane.b32.xlu0 %v6296_v5, %s5474_s14 }
0x1221   : > { %2752 = vrot.lane.b32.xlu1 %v6245_v63, %s5475_s11  ;;  %s6587_s11 = sld [smem:[#allocation17_spill]] }
0x1222   : > { %3053 = vrot.lane.b32.xlu0 %v6300_v11, %s5474_s14 }
0x1225   : > { %3051 = vrot.lane.b32.xlu1 %v6294_v3, %s5474_s14 }
0x1229   : > { %3055 = vrot.lane.b32.xlu1 %v6298_v2, %s5474_s14  ;;  %s6586_s14 = scalar_lea.vmem %s6551_s6, %s5703_s13 }
0x1268   : > { %v3224_v32 = vpop.xlane.xlu1 %3223 }
0x1269   : > { %v3221_v29 = vpop.xlane.xlu0 %3220 }
0x126a   : > { %5318 = vrcp.f32 %v3221_v29 }
0x126b   : > { %5320 = vrcp.f32 %v3224_v32 }
0x126d   : > { %v3227_v9 = vpop.xlane.xlu0 %3226 }
0x126e   : > { %5322 = vrcp.f32 %v3227_v9 }
0x1271   : > { %v3230_v10 = vpop.xlane.xlu1 %3229  ;;  %v5102_v14 = vpop.permute.xlu0 %5101 }
0x1272   : > { %v5104_v15 = vunpack.i.h.bf16 %v5102_v14  ;;  %v5103_v61 = vunpack.i.l.bf16 %v5102_v14  ;;  %5324 = vrcp.f32 %v3230_v10  ;;  %v4254_v10 = vld [vmem:[%s6586_s14] ss:$0 sm:$0xff] }
0x1274   : > { %v5319_v1 = vpop.eup %5318  ;;  %v4898_v8 = vpack.c.bf16 %v5104_v15, %v5103_v61 }
0x1275   : > { %v5107_v12 = vpop.permute.xlu1 %5106  ;;  %v1539_v16 = vpop.permute.xlu0 %1538  ;;  %v3235_v18 = vmul.f32 %v5319_v1, %v5313_v47 }
0x1276   : > { %v5109_v6 = vunpack.i.h.bf16 %v5107_v12  ;;  %v5108_v7 = vunpack.i.l.bf16 %v5107_v12  ;;  %1549 = vst.msk [vmem:[#allocation3 + $0x10] sm:$0xff] %vm1546_vm3, %v1539_v16  ;;  %4899 = vmatprep.subr.bf16.mxu0 %v4898_v8  ;;  %v5321_v54 = vpop.eup %5320  ;;  %v5334_v16 = vld [vmem:[#allocation2] sm:$0xff] }
0x1277   : > { %4901 = vmatpush3.bf16.msra.mxu0 %v4898_v8  ;;  %4720 = vmatprep.mubr.msk.f32.mxu0 %vm1098_vm2, %v3235_v18  ;;  %v3236_v52 = vmul.f32 %v5321_v54, %v6310_v45  ;;  %v5336_v54 = vld [vmem:[#allocation2 + $0x10] sm:$0xff] }
0x1278   : > { %v4902_v48 = vpack.c.bf16 %v5109_v6, %v5108_v7  ;;  %v5323_v60 = vpop.eup %5322  ;;  %v5335_v7 = vld [vmem:[#allocation2 + $0x8] sm:$0xff] }
0x1279   : > { %v1535_v55 = vpop.permute.xlu1 %1534  ;;  %v1838_v56 = vpop.permute.xlu0 %1837  ;;  %v3237_v3 = vmul.f32 %v5323_v60, %v6315_v51  ;;  %v5337_v60 = vld [vmem:[#allocation2 + $0x18] sm:$0xff] }
0x127a   : > { %1547 = vst.msk [vmem:[#allocation3] sm:$0xff] %vm1546_vm3, %v1535_v55  ;;  %4903 = vmatprep.subr.bf16.mxu0 %v4902_v48 }
0x127b   : > { %1850 = vst.msk [vmem:[#allocation3] sm:$0xff] %vm1849_vm4, %v1838_v56  ;;  %4905 = vmatpush3.bf16.msra.mxu0 %v4902_v48 }
0x127c   : > { %v5325_v63 = vpop.eup %5324  ;;  %4726 = vmatprep.subr.bf16.mxu0 %v5142_v34 }
0x127d   : > { %v1537_v57 = vpop.permute.xlu1 %1536  ;;  %v1842_v21 = vpop.permute.xlu0 %1841  ;;  %v3238_v5 = vmul.f32 %v5325_v63, %v6319_v59  ;;  %v5150_v63 = vld [vmem:[%s5735_s30] ss:$8 sps:$4 sm:$0xff]  }
0x127e   : > { %1548 = vst.msk [vmem:[#allocation3 + $0x8] sm:$0xff] %vm1546_vm3, %v1537_v57  ;;  %4721 = vmatmul.mubr.msk.f32.vlgmr.msra.gmra.mrb[32].mxu0 %vm1098_vm2, %v3236_v52  ;;  %v5152_v57 = vld [vmem:[%s5735_s30 + $0x4] ss:$8 sps:$4 sm:$0xff]  }
0x127f   : > { %1852 = vst.msk [vmem:[#allocation3 + $0x10] sm:$0xff] %vm1849_vm4, %v1842_v21  ;;  %4723 = vmatprep.mubr.msk.f32.mxu0 %vm1098_vm2, %v3237_v3  ;;  %4727 = vmatpush3.bf16.msra.mxu0 %v5142_v34  ;;  %v5155_v21 = vld [vmem:[%s5735_s30 + $0x14] ss:$8 sps:$4 sm:$0xff]   ;;  %v5153_v3 = vld [vmem:[%s5735_s30 + $0x10] ss:$8 sps:$4 sm:$0xff]  }
0x1280   : > { %4728 = vmatprep.subr.bf16.mxu0 %v5143_v36  ;;  %3675 = vmatprep.subr.bf16.mxu1 %v5152_v57  ;;  %v5164_v34 = vld [vmem:[%s5735_s30 + $0x44] ss:$8 sps:$4 sm:$0xff]  }
0x1281   : > { %v1541_v2 = vpop.permute.xlu1 %1540  ;;  %v2141_v11 = vpop.permute.xlu0 %2140  ;;  %3676 = vmatpush1.bf16.msra.mxu1 %v5150_v63 }
0x1282   : > { %1550 = vst.msk [vmem:[#allocation3 + $0x18] sm:$0xff] %vm1546_vm3, %v1541_v2  ;;  %4724 = vmatmul.mubr.msk.f32.gmra.mrb[34].mxu0 %vm1098_vm2, %v3238_v5  ;;  %3677 = vmatprep.subr.bf16.mxu1 %v5155_v21 }
0x1283   : > { %2153 = vst.msk [vmem:[#allocation3] sm:$0xff] %vm2152_vm5, %v2141_v11  ;;  %4729 = vmatpush3.bf16.msra.mxu0 %v5143_v36  ;;  %v5162_v36 = vld [vmem:[%s5735_s30 + $0x40] ss:$8 sps:$4 sm:$0xff]  }
0x1284   : > { %4730 = vmatprep.subr.bf16.mxu0 %v5144_v38 }
0x1285   : > { %v1840_v24 = vpop.permute.xlu1 %1839  ;;  %v2145_v37 = vpop.permute.xlu0 %2144  ;;  %3678 = vmatpush1.bf16.msra.mxu1 %v5153_v3  ;;  %v4264_v3 = vld [vmem:[%s615_s16] ss:$0 sm:$0xff] }
0x1286   : > { %1851 = vst.msk [vmem:[#allocation3 + $0x8] sm:$0xff] %vm1849_vm4, %v1840_v24 }
0x1287   : > { %2155 = vst.msk [vmem:[#allocation3 + $0x10] sm:$0xff] %vm2152_vm5, %v2145_v37  ;;  %4731 = vmatpush3.bf16.msra.mxu0 %v5144_v38  ;;  %v5167_v38 = vld [vmem:[%s5735_s30 + $0x54] ss:$8 sps:$4 sm:$0xff]  }
0x1288   : > { %4732 = vmatprep.subr.bf16.mxu0 %v5145_v40 }
0x1289   : > { %v1844_v20 = vpop.permute.xlu1 %1843  ;;  %v2444_v4 = vpop.permute.xlu0 %2443 }
0x128a   : > { %1853 = vst.msk [vmem:[#allocation3 + $0x18] sm:$0xff] %vm1849_vm4, %v1844_v20 }
0x128b   : > { %2456 = vst.msk [vmem:[#allocation3] sm:$0xff] %vm2455_vm6, %v2444_v4  ;;  %4733 = vmatpush3.bf16.msra.mxu0 %v5145_v40  ;;  %v5165_v40 = vld [vmem:[%s5735_s30 + $0x50] ss:$8 sps:$4 sm:$0xff]  }
0x128c   : > { %4734 = vmatprep.subr.bf16.mxu0 %v5146_v42 }
0x128d   : > { %v2143_v22 = vpop.permute.xlu1 %2142  ;;  %v2448_v25 = vpop.permute.xlu0 %2447 }
0x128e   : > { %2154 = vst.msk [vmem:[#allocation3 + $0x8] sm:$0xff] %vm2152_vm5, %v2143_v22 }
0x128f   : > { %2458 = vst.msk [vmem:[#allocation3 + $0x10] sm:$0xff] %vm2455_vm6, %v2448_v25  ;;  %4735 = vmatpush3.bf16.msra.mxu0 %v5146_v42  ;;  %v5170_v42 = vld [vmem:[%s5735_s30 + $0x64] ss:$8 sps:$4 sm:$0xff]  }
0x1290   : > { %4736 = vmatprep.subr.bf16.mxu0 %v5147_v44 }
0x1291   : > { %v2147_v26 = vpop.permute.xlu1 %2146  ;;  %v2747_v27 = vpop.permute.xlu0 %2746 }
0x1292   : > { %2156 = vst.msk [vmem:[#allocation3 + $0x18] sm:$0xff] %vm2152_vm5, %v2147_v26 }
0x1293   : > { %2759 = vst.msk [vmem:[#allocation3] sm:$0xff] %vm2758_vm7, %v2747_v27  ;;  %4737 = vmatpush3.bf16.msra.mxu0 %v5147_v44  ;;  %v5168_v44 = vld [vmem:[%s5735_s30 + $0x60] ss:$8 sps:$4 sm:$0xff]  }
0x1294   : > { %4738 = vmatprep.subr.bf16.mxu0 %v5148_v39 }
0x1295   : > { %v2446_v28 = vpop.permute.xlu1 %2445  ;;  %v2751_v17 = vpop.permute.xlu0 %2750 }
0x1296   : > { %2457 = vst.msk [vmem:[#allocation3 + $0x8] sm:$0xff] %vm2455_vm6, %v2446_v28 }
0x1297   : > { %2761 = vst.msk [vmem:[#allocation3 + $0x10] sm:$0xff] %vm2758_vm7, %v2751_v17  ;;  %4739 = vmatpush3.bf16.msra.mxu0 %v5148_v39  ;;  %v5173_v39 = vld [vmem:[%s5735_s30 + $0x74] ss:$8 sps:$4 sm:$0xff]  }
0x1298   : > { %4740 = vmatprep.subr.bf16.mxu0 %v5149_v41 }
0x1299   : > { %v2450_v31 = vpop.permute.xlu1 %2449  ;;  %v3050_v33 = vpop.permute.xlu0 %3049 }
0x129a   : > { %2459 = vst.msk [vmem:[#allocation3 + $0x18] sm:$0xff] %vm2455_vm6, %v2450_v31 }
0x129b   : > { %3062 = vst.msk [vmem:[#allocation3] sm:$0xff] %vm3061_vm8, %v3050_v33  ;;  %4741 = vmatpush3.bf16.msra.mxu0 %v5149_v41  ;;  %v5171_v41 = vld [vmem:[%s5735_s30 + $0x70] ss:$8 sps:$4 sm:$0xff]  }
0x129d   : > { %v2749_v19 = vpop.permute.xlu1 %2748  ;;  %v3054_v35 = vpop.permute.xlu0 %3053 }
0x129e   : > { %2760 = vst.msk [vmem:[#allocation3 + $0x8] sm:$0xff] %vm2758_vm7, %v2749_v19 }
0x129f   : > { %3064 = vst.msk [vmem:[#allocation3 + $0x10] sm:$0xff] %vm3061_vm8, %v3054_v35  ;;  %v5158_v35 = vld [vmem:[%s5735_s30 + $0x24] ss:$8 sps:$4 sm:$0xff]  }
0x12a0   : > { %3679 = vmatprep.subr.bf16.mxu1 %v5158_v35  ;;  %v5188_v35 = vld [vmem:[%s6587_s11 + $0x78] sm:$0xff]  }
0x12a1   : > { %v2753_v30 = vpop.permute.xlu1 %2752 }
0x12a2   : > { %2762 = vst.msk [vmem:[#allocation3 + $0x18] sm:$0xff] %vm2758_vm7, %v2753_v30  ;;  %v5156_v30 = vld [vmem:[%s5735_s30 + $0x20] ss:$8 sps:$4 sm:$0xff]  }
0x12a3   : > { %3680 = vmatpush1.bf16.msra.mxu1 %v5156_v30  ;;  %v5189_v30 = vld [vmem:[%s6587_s11 + $0x38] sm:$0xff]  }
0x12a5   : > { %v3052_v58 = vpop.permute.xlu1 %3051 }
0x12a6   : > { %3063 = vst.msk [vmem:[#allocation3 + $0x8] sm:$0xff] %vm3061_vm8, %v3052_v58  ;;  %v5161_v58 = vld [vmem:[%s5735_s30 + $0x34] ss:$8 sps:$4 sm:$0xff]  }
0x12a7   : > { %3681 = vmatprep.subr.bf16.mxu1 %v5161_v58 }
0x12a9   : > { %v3056_v62 = vpop.permute.xlu1 %3055 }
0x12aa   : > { %3065 = vst.msk [vmem:[#allocation3 + $0x18] sm:$0xff] %vm3061_vm8, %v3056_v62  ;;  %v5159_v62 = vld [vmem:[%s5735_s30 + $0x30] ss:$8 sps:$4 sm:$0xff]  }
0x12ab   : > { %3682 = vmatpush1.bf16.msra.mxu1 %v5159_v62 }
0x12ac   : > { %3683 = vmatprep.subr.bf16.mxu1 %v5164_v34  ;;  %v3583_v34 = vld [vmem:[%s5741_s5] sm:$0x3] }
0x12af   : > { %3684 = vmatpush1.bf16.msra.mxu1 %v5162_v36 }
0x12b0   : > { %3685 = vmatprep.subr.bf16.mxu1 %v5167_v38 }
0x12b3   : > { %3686 = vmatpush1.bf16.msra.mxu1 %v5165_v40 }
0x12b4   : > { %3687 = vmatprep.subr.bf16.mxu1 %v5170_v42 }
0x12b7   : > { %3688 = vmatpush1.bf16.msra.mxu1 %v5168_v44 }
0x12b8   : > { %3689 = vmatprep.subr.bf16.mxu1 %v5173_v39 }
0x12bb   : > { %3690 = vmatpush1.bf16.msra.mxu1 %v5171_v41 }
0x1351   : > { %v4722_v13 = vpop.f32.mrb[32].mxu0 }
0x1352   : > { %3354 = vrot.lane.b32.xlu1 %v4722_v13, %s5473_s19  ;;  %v3329_v23 = vpop.f32.mrb[33].mxu0  ;;  %v5174_v13 = vld [vmem:[%s6587_s11 + $0x40] sm:$0xff]  }
0x1353   : > { %3352 = vrot.lane.b32.xlu0 %v3329_v23, %s5473_s19  ;;  %v5175_v23 = vld [vmem:[%s6587_s11] sm:$0xff]   ;;  %4454 = vmatprep.subr.bf16.mxu0 %v5174_v13 }
0x1355   : > { %v4725_v46 = vpop.f32.mrb[34].mxu0 }
0x1356   : > { %3358 = vrot.lane.b32.xlu1 %v4725_v46, %s5473_s19  ;;  %v3339_v45 = vpop.f32.mrb[35].mxu0  ;;  %v5176_v46 = vld [vmem:[%s6587_s11 + $0x48] sm:$0xff]  }
0x1357   : > { %3356 = vrot.lane.b32.xlu0 %v3339_v45, %s5473_s19  ;;  %v5177_v45 = vld [vmem:[%s6587_s11 + $0x8] sm:$0xff]  }
0x13c4   : > { %v3355_v47 = vpop.permute.xlu1 %3354 }
0x13c5   : > { %3366 = vst.msk [vmem:[#allocation3 + $0x8] sm:$0xff] %vm3364_vm9, %v3355_v47  ;;  %v3353_v49 = vpop.permute.xlu0 %3352  ;;  %v5178_v47 = vld [vmem:[%s6587_s11 + $0x50] sm:$0xff]  }
0x13c6   : > { %3365 = vst.msk [vmem:[#allocation3] sm:$0xff] %vm3364_vm9, %v3353_v49  ;;  %v5179_v49 = vld [vmem:[%s6587_s11 + $0x10] sm:$0xff]  }
0x13c8   : > { %v3359_v50 = vpop.permute.xlu1 %3358 }
0x13c9   : > { %3368 = vst.msk [vmem:[#allocation3 + $0x18] sm:$0xff] %vm3364_vm9, %v3359_v50  ;;  %v3357_v51 = vpop.permute.xlu0 %3356  ;;  %v5180_v50 = vld [vmem:[%s6587_s11 + $0x58] sm:$0xff]  }
0x13ca   : > { %3367 = vst.msk [vmem:[#allocation3 + $0x10] sm:$0xff] %vm3364_vm9, %v3357_v51  ;;  %v5181_v51 = vld [vmem:[%s6587_s11 + $0x18] sm:$0xff]  }
0x13cc   : > { %v3370_v53 = vld [vmem:[#allocation3 + $0x8] sm:$0xff] }
0x13cd   : > { %v3369_v59 = vld [vmem:[#allocation3] sm:$0xff] }
0x13ce   : > { %v3373_v0 = vpack.c.bf16 %v3370_v53, %v3369_v59  ;;  %v5182_v53 = vld [vmem:[%s6587_s11 + $0x60] sm:$0xff]  }
0x13cf   : > { %v5183_v59 = vld [vmem:[%s6587_s11 + $0x20] sm:$0xff]  }
0x13d0   : > { %4742 = vmatprep.mubr.bf16.mxu0 %v3373_v0  ;;  %v3372_v29 = vld [vmem:[#allocation3 + $0x18] sm:$0xff]  ;;  %v5184_v0 = vld [vmem:[%s6587_s11 + $0x68] sm:$0xff]  }
0x13d1   : > { %v3371_v32 = vld [vmem:[#allocation3 + $0x10] sm:$0xff] }
0x13d2   : > { %v3374_v9 = vpack.c.bf16 %v3372_v29, %v3371_v32 }
0x13d4   : > { %4743 = vmatmul.mubr.bf16.vlgmr.msra.gmra.mrb[36].mxu0 %v3374_v9 }
0x13d5   : > { %4455 = vmatpush3.bf16.msra.mxu0 %v5175_v23 }
0x13d6   : > { %4456 = vmatprep.subr.bf16.mxu0 %v5176_v46 }
0x13d9   : > { %4457 = vmatpush3.bf16.msra.mxu0 %v5177_v45 }
0x13da   : > { %4458 = vmatprep.subr.bf16.mxu0 %v5178_v47 }
0x13dd   : > { %4459 = vmatpush3.bf16.msra.mxu0 %v5179_v49 }
0x13de   : > { %4460 = vmatprep.subr.bf16.mxu0 %v5180_v50 }
0x13e1   : > { %4461 = vmatpush3.bf16.msra.mxu0 %v5181_v51 }
0x13e2   : > { %4462 = vmatprep.subr.bf16.mxu0 %v5182_v53 }
0x13e5   : > { %4463 = vmatpush3.bf16.msra.mxu0 %v5183_v59 }
0x13e6   : > { %4464 = vmatprep.subr.bf16.mxu0 %v5184_v0 }
0x14a7   : > { %v4744_v14 = vpop.f32.mrb[36].mxu0 }
0x14a8   : > { %v3480_v15 = vpop.f32.mrb[37].mxu0  ;;  %v3489_v12 = vadd.f32 %v4744_v14, %v4254_v10 }
0x14a9   : > { %v3481_v61 = vadd.f32 %v4254_v10, %v3480_v15  ;;  %v4745_v1 = vpop.f32.mrb[38].mxu0 }
0x14aa   : > { %v3483_v8 = vpop.f32.mrb[39].mxu0  ;;  %v6424_v55 = vadd.f32 %v5336_v54, %v3489_v12  ;;  %v3492_v56 = vadd.f32 %v4745_v1, %v4254_v10  ;;  %v4263_v54 = vld [vmem:[%s612_s18] ss:$0 sm:$0xff] }
0x14ab   : > { %v6419_v18 = vadd.f32 %v5334_v16, %v3481_v61  ;;  %v3484_v6 = vadd.f32 %v4254_v10, %v3483_v8 }
0x14ac   : > { %v6428_v52 = vadd.f32 %v5337_v60, %v3492_v56 }
0x14ad   : > { %v6421_v48 = vadd.f32 %v5335_v7, %v3484_v6  ;;  %3501 = vadd.xlane.f32.xlu0 %v6419_v18 }
0x14af   : > { %3503 = vadd.xlane.f32.xlu1 %v6421_v48 }
0x14b1   : > { %3505 = vadd.xlane.f32.xlu0 %v6424_v55 }
0x14b5   : > { %3507 = vadd.xlane.f32.xlu0 %v6428_v52 }
0x153a   : > { %v3502_v5 = vpop.xlane.xlu0 %3501 }
0x153b   : > { %v3509_v2 = vmul.f32 0.0078125, %v3502_v5 }
0x153c   : > { %v3504_v11 = vpop.xlane.xlu1 %3503 }
0x153d   : > { %v6436_v24 = vsub.f32 %v6419_v18, %v3509_v2  ;;  %v3510_v37 = vmul.f32 0.0078125, %v3504_v11 }
0x153e   : > { %v3506_v20 = vpop.xlane.xlu0 %3505 }
0x153f   : > { %v6439_v4 = vsub.f32 %v6421_v48, %v3510_v37  ;;  %v3511_v22 = vmul.f32 0.0078125, %v3506_v20  ;;  %v3517_v25 = vmul.f32 %v6436_v24, %v6436_v24 }
0x1541   : > { %v6444_v26 = vsub.f32 %v6424_v55, %v3511_v22  ;;  %3521 = vadd.xlane.f32.xlu0 %v3517_v25  ;;  %v3518_v27 = vmul.f32 %v6439_v4, %v6439_v4 }
0x1542   : > { %v3508_v28 = vpop.xlane.xlu0 %3507 }
0x1543   : > { %v3512_v17 = vmul.f32 0.0078125, %v3508_v28  ;;  %3523 = vadd.xlane.f32.xlu1 %v3518_v27  ;;  %v3519_v31 = vmul.f32 %v6444_v26, %v6444_v26 }
0x1545   : > { %v6451_v33 = vsub.f32 %v6428_v52, %v3512_v17  ;;  %3525 = vadd.xlane.f32.xlu0 %v3519_v31  ;;  %v5185_v31 = vld [vmem:[%s6587_s11 + $0x28] sm:$0xff]  }
0x1546   : > { %4465 = vmatpush3.bf16.msra.mxu0 %v5185_v31 }
0x1547   : > { %v3520_v19 = vmul.f32 %v6451_v33, %v6451_v33 }
0x1549   : > { %3527 = vadd.xlane.f32.xlu1 %v3520_v19  ;;  %v5186_v19 = vld [vmem:[%s6587_s11 + $0x70] sm:$0xff]  }
0x154a   : > { %4466 = vmatprep.subr.bf16.mxu0 %v5186_v19 }
0x15ce   : > { %v3522_v29 = vpop.xlane.xlu0 %3521 }
0x15cf   : > { %v3529_v32 = vmul.f32 0.0078125, %v3522_v29 }
0x15d0   : > { %v3524_v9 = vpop.xlane.xlu1 %3523 }
0x15d1   : > { %v3533_v10 = vadd.f32 1e-05, %v3529_v32  ;;  %v3530_v14 = vmul.f32 0.0078125, %v3524_v9 }
0x15d2   : > { %v3526_v15 = vpop.xlane.xlu0 %3525 }
0x15d3   : > { %5326 = vrsqrt.f32 %v3533_v10  ;;  %v3534_v61 = vadd.f32 1e-05, %v3530_v14  ;;  %v3531_v1 = vmul.f32 0.0078125, %v3526_v15 }
0x15d5   : > { %5328 = vrsqrt.f32 %v3534_v61  ;;  %v3535_v8 = vadd.f32 1e-05, %v3531_v1 }
0x15d6   : > { %v3528_v12 = vpop.xlane.xlu1 %3527 }
0x15d7   : > { %5330 = vrsqrt.f32 %v3535_v8  ;;  %v3532_v16 = vmul.f32 0.0078125, %v3528_v12 }
0x15d9   : > { %v3536_v6 = vadd.f32 1e-05, %v3532_v16 }
0x15db   : > { %5332 = vrsqrt.f32 %v3536_v6 }
0x15dd   : > { %v5327_v7 = vpop.eup %5326 }
0x15de   : > { %v3541_v56 = vmul.f32 %v5327_v7, %v6436_v24 }
0x15df   : > { %v5329_v60 = vpop.eup %5328 }
0x15e0   : > { %v3551_v63 = vmul.f32 %v4263_v54, %v3541_v56  ;;  %v3542_v57 = vmul.f32 %v5329_v60, %v6439_v4 }
0x15e1   : > { %v5331_v21 = vpop.eup %5330 }
0x15e2   : > { %v3552_v5 = vmul.f32 %v4263_v54, %v3542_v57  ;;  %v3561_v2 = vadd.f32 %v4264_v3, %v3551_v63  ;;  %v3543_v37 = vmul.f32 %v5331_v21, %v6444_v26  ;;  %v5187_v26 = vld [vmem:[%s6587_s11 + $0x30] sm:$0xff]   ;;  %v4297_v63 = vld [vmem:[%s627_s27] ss:$0 sm:$0xff] }
0x15e3   : > { %4467 = vmatpush3.bf16.msra.mxu0 %v5187_v26 }
0x15e4   : > { %v3562_v11 = vadd.f32 %v4264_v3, %v3552_v5  ;;  %v3553_v4 = vmul.f32 %v4263_v54, %v3543_v37  ;;  %4468 = vmatprep.subr.bf16.mxu0 %v5188_v35 }
0x15e5   : > { %v5333_v20 = vpop.eup %5332 }
0x15e6   : > { %v3565_v24 = vpack.c.bf16 %v3562_v11, %v3561_v2  ;;  %v3544_v22 = vmul.f32 %v5333_v20, %v6451_v33  ;;  %v3563_v28 = vadd.f32 %v4264_v3, %v3553_v4  ;;  %v3585_v33 = vlaneseq }
0x15e7   : > { %4469 = vmatpush3.bf16.msra.mxu0 %v5189_v30 }
0x15e8   : > { %3708 = vmatmul.mubr.bf16.vlgmr.msra.gmra.mrb[40].mxu1 %v3565_v24  ;;  %v3554_v25 = vmul.f32 %v4263_v54, %v3544_v22  ;;  %v3586_v58 = vshrl.u32 %v3585_v33, 7 }
0x15e9   : > { %3717 = vmatprep.mubr.bf16.mxu1 %v5472_v43 }
0x15ea   : > { %v3564_v27 = vadd.f32 %v4264_v3, %v3554_v25  ;;  %v3587_v62 = vsub.s32 0, %v3586_v58  ;;  %v3591_v43 = vsub.s32 1, %v3586_v58 }
0x15ec   : > { %v3566_v17 = vpack.c.bf16 %v3564_v27, %v3563_v28  ;;  %v3588_v36 = vrot.slane %v3583_v34, %v3587_v62  ;;  %v3592_v38 = vrot.slane %v3583_v34, %v3591_v43 }
0x15f0   : > { %3718 = vmatmul.mubr.bf16.gmra.mrb[44].mxu1 %v3566_v17 }
0x16bb   : > { %v3709_v40 = vpop.f32.mrb[40].mxu1 }
0x16bc   : > { %v3710_v42 = vadd.f32 %v3709_v40, %v3588_v36  ;;  %v3711_v44 = vpop.f32.mrb[41].mxu1 }
0x16bd   : > { %v3712_v39 = vadd.f32 %v3711_v44, %v3592_v38  ;;  %v3713_v41 = vpop.f32.mrb[42].mxu1 }
0x16be   : > { %v3714_v13 = vadd.f32 %v3713_v41, %v3588_v36  ;;  %v3715_v23 = vpop.f32.mrb[43].mxu1  ;;  %v3728_v45 = vmax.f32 %v3710_v42, 0.0 }
0x16bf   : > { %v3716_v46 = vadd.f32 %v3715_v23, %v3592_v38  ;;  %v3729_v49 = vmax.f32 %v3712_v39, 0.0 }
0x16c0   : > { %v3730_v47 = vmax.f32 %v3714_v13, 0.0 }
0x16c1   : > { %v3731_v50 = vmax.f32 %v3716_v46, 0.0 }
0x16c2   : > { %v3736_v51 = vpack.c.bf16 %v3730_v47, %v3728_v45 }
0x16c3   : > { %v3737_v53 = vpack.c.bf16 %v3731_v50, %v3729_v49  ;;  %v3719_v59 = vpop.f32.mrb[44].mxu1 }
0x16c4   : > { %v3720_v0 = vadd.f32 %v3719_v59, %v3588_v36  ;;  %v3721_v29 = vpop.f32.mrb[45].mxu1 }
0x16c5   : > { %v3722_v32 = vadd.f32 %v3721_v29, %v3592_v38  ;;  %v3723_v9 = vpop.f32.mrb[46].mxu1  ;;  %3900 = vmatprep.mubr.bf16.mxu0 %v3737_v53 }
0x16c6   : > { %v3724_v10 = vadd.f32 %v3723_v9, %v3588_v36  ;;  %v3725_v14 = vpop.f32.mrb[47].mxu1  ;;  %3901 = vmatmul.mubr.bf16.vlgmr.msra.gmra.mrb[40].mxu0 %v3736_v51  ;;  %v3732_v61 = vmax.f32 %v3720_v0, 0.0 }
0x16c7   : > { %v3726_v15 = vadd.f32 %v3725_v14, %v3592_v38  ;;  %v3733_v8 = vmax.f32 %v3722_v32, 0.0 }
0x16c8   : > { %v3734_v1 = vmax.f32 %v3724_v10, 0.0 }
0x16c9   : > { %v3735_v12 = vmax.f32 %v3726_v15, 0.0 }
0x16ca   : > { %v3738_v16 = vpack.c.bf16 %v3734_v1, %v3732_v61 }
0x16cb   : > { %v3739_v6 = vpack.c.bf16 %v3735_v12, %v3733_v8 }
0x16cd   : > { %3908 = vmatprep.mubr.bf16.mxu0 %v3739_v6 }
0x16ce   : > { %3909 = vmatmul.mubr.bf16.gmra.mrb[44].mxu0 %v3738_v16 }
0x1799   : > { %v4470_v7 = vpop.f32.mrb[40].mxu0 }
0x179a   : > { %v4471_v54 = vpop.f32.mrb[41].mxu0 }
0x179b   : > { %v4472_v56 = vadd.f32 %v4471_v54, %v4470_v7  ;;  %v4473_v60 = vpop.f32.mrb[42].mxu0 }
0x179c   : > { %v4474_v57 = vpop.f32.mrb[43].mxu0 }
0x179d   : > { %v3917_v21 = vadd.f32 %v4472_v56, %v6419_v18  ;;  %v4475_v3 = vadd.f32 %v4474_v57, %v4473_v60 }
0x179f   : > { %v3928_v5 = vadd.f32 %v4297_v63, %v3917_v21  ;;  %v3918_v2 = vadd.f32 %v4475_v3, %v6421_v48 }
0x17a1   : > { %3932 = vst [vmem:[#allocation2] sm:$0xff] %v3928_v5  ;;  %v3929_v11 = vadd.f32 %v4297_v63, %v3918_v2  ;;  %v4476_v37 = vpop.f32.mrb[44].mxu0 }
0x17a2   : > { %v4477_v20 = vpop.f32.mrb[45].mxu0 }
0x17a3   : > { %3933 = vst [vmem:[#allocation2 + $0x8] sm:$0xff] %v3929_v11  ;;  %v4478_v24 = vadd.f32 %v4477_v20, %v4476_v37  ;;  %v4479_v22 = vpop.f32.mrb[46].mxu0  ;;  %3940 = vst [vmem:[#allocation9] sm:$0xff] (!%p4298_p3), %v3929_v11 }
0x17a4   : > { %v4480_v4 = vpop.f32.mrb[47].mxu0 }
0x17a5   : > { %v3919_v25 = vadd.f32 %v4478_v24, %v6424_v55  ;;  %v4481_v27 = vadd.f32 %v4480_v4, %v4479_v22  ;;  %3939 = sbr.rel (%p4298_p3) target bundleno = 6060 (0x17ac), region = 88 }
0x17a7   : > { %v3930_v28 = vadd.f32 %v4297_v63, %v3919_v25  ;;  %v3920_v17 = vadd.f32 %v4481_v27, %v6428_v52 }
0x17a9   : > { %3934 = vst [vmem:[#allocation2 + $0x10] sm:$0xff] %v3930_v28  ;;  %v3931_v18 = vadd.f32 %v4297_v63, %v3920_v17 }
0x17ab   : > { %3935 = vst [vmem:[#allocation2 + $0x18] sm:$0xff] %v3931_v18  ;;  %3942 = vst [vmem:[#allocation9 + $0x8] sm:$0xff] (!%p4298_p3), %v3931_v18 }
0x17ac PF: > { %p4923_p6 = scmp.eq.s32.totalorder %s5572_s29, 1  ;;  %s5480_s13 = smov [#allocation9]  }
0x17ad   : > { %s3949_s5 = sshll.u32 %s5480_s13, 4  ;;  %s3950_s5 = int_to_ptr.vmem [resolvable:$true] %s3949_s5 }
0x17ae   : > { %s5398_s27 = scalar_lea.vmem %s3950_s5, 256  ;;  %p5405_p13 = scmp.lt.s32.totalorder %s3950_s5, %s3950_s5 }
0x17af   : > { %p5399_p1 = scmp.ne.s32.totalorder %s3950_s5, %s5398_s27  ;;  %p5406_p4 = scmp.lt.s32.totalorder %s5398_s27, %s5398_s27 }
0x17b1   : > { %p5400_p2 = pnand %p5399_p1, %p4923_p6  ;;  %p5407_p5 = por %p5406_p4, %p5405_p13 }
0x17b3   : > { %p5401_p9 = pneg %p5400_p2 }
0x17b5   : > { %p5408_p10 = pnand %p5407_p5, %p5401_p9 }
0x17b7   : > { %5411 = shalt.err (!%p5408_p10)
}
0x17b8   : > { %s6588_s15 = sld [smem:[#allocation20_spill]] }
0x17be   : > { %s5412_s24 = scalar_lea.hbm %s6588_s15, 256 }
0x17bf   : > { %p5413_p12 = scmp.ne.s32.totalorder %s6588_s15, %s5412_s24  ;;  %p5418_p8 = scmp.lt.u32.totalorder %s5412_s24, %s6588_s15 }
0x17c1   : > { %p5414_p0 = pnand %p5413_p12, %p4923_p6 }
0x17c3   : > { %p5415_p7 = pneg %p5414_p0 }
0x17c5   : > { %p5420_p11 = pnand %p5418_p8, %p5415_p7 }
0x17c7   : > { %5423 = shalt.err (!%p5420_p11)
}
0x17c8   : > { %s5481_s14 = smov 128   ;;  %s5482_s11 = smov 8  }
0x17c9   : > { %4912 = dma.vmem_to_hbm [thread:$0]  (%p4923_p6), %s3950_s5, 256, %s6588_s15, [#allocation6], %s5481_s14, %s5481_s14, %s5482_s11  }
0x17ca   : > { %5449 = dma.done.wait (%p4923_p6), [#allocation6], 256  }
0x17cb   : > { %5451 = vsyncadd (%p4923_p6), [#allocation6], 4294967040 }
0x17cc PF: > { %s6589_s28 = sld [smem:[#allocation15_spill]]  ;;  %s6590_s25 = sld [smem:[#allocation13_spill]] }
0x17cd   : > { %s6591_s26 = sld [smem:[#allocation14_spill]]  ;;  %s6592_s27 = sld [smem:[#allocation16_spill]] }
0x17d2   : > { %p27_p3 = scmp.ge.s32.totalorder %s6589_s28, 4  }
0x17d4   :  { %29 = sbr.rel (!%p27_p3) target bundleno = 10 (0xa), region = 158 }
0x17db   :  { %3965 = vsyncpa [#allocation5], 1 }
0x17dc   :  { %3967 = vsyncpa [#allocation5 + $0x1], 1 }
0x17dd   :  { %3968 = vsyncpa [#allocation8], 1 }
0x17de   :  { %3970 = vsyncpa [#allocation8 + $0x1], 1 }
0x17df   :  { %3971 = vsyncpa [#allocation6], 1 }
0x17e0   :  { %3973 = vsyncpa [#allocation6 + $0x1], 1 }

</bundles_post_ra>
